<compile_context>
chip_gen: v7x
topology: tpu7x:2x2x1
jax: 0.10.0
libtpu: 0.0.40
codegen_flags: <defaults>
</compile_context>

<pallas_src>
import functools

import jax
import jax.numpy as jnp
from jax import lax
from jax.experimental import pallas as pl
from jax.experimental.pallas import tpu as pltpu

INPUT_SIZE = 3
HIDDEN = 256
BN_EPS = 1e-5


def _round_up(n, m):
    return ((n + m - 1) // m) * m


def _cdiv(a, b):
    return (a + b - 1) // b


def _lstm_mlp_kernel(pg_ref, w_hh_ref, w1_ref, b1_ref, w2_ref, b2_ref,
                     w3_ref, b3_ref, out_ref, h_ref, c_ref,
                     *, t_total, t_block, ragged, gate_dtype, unroll):
    """One (batch_block, time_chunk) grid step.

    pg_ref : (t_block, bB, 4H) pre-gates (x @ W_ih + b), matmul_dtype, time-major
    w_hh_ref: (H, 4H) recurrent weights (matmul_dtype), resident across the grid
    h_ref  : (bB, H) matmul_dtype VMEM carry ; c_ref: (bB, H) f32 VMEM carry
    """
    H = HIDDEN
    t_chunk = pl.program_id(1)

    @pl.when(t_chunk == 0)
    def _init():
        h_ref[...] = jnp.zeros_like(h_ref)
        c_ref[...] = jnp.zeros_like(c_ref)

    w_hh = w_hh_ref[...]
    t_base = t_chunk * t_block

    def step(t, carry):
        h, c = carry                                   # h: matmul_dtype, c: f32
        # Only the recurrent matmul sits on the serial critical path; pre-gates
        # stream in matmul_dtype and are added in f32 after the f32-accumulated dot.
        gates = (jnp.dot(h, w_hh, preferred_element_type=jnp.float32)
                 + pg_ref[t].astype(jnp.float32))      # (bB, 4H) f32; order i, f, g, o
        g = gates.astype(gate_dtype)                   # bf16 EUP on v6e/v7x
        i_g = jax.nn.sigmoid(g[:, 0 * H:1 * H])
        f_g = jax.nn.sigmoid(g[:, 1 * H:2 * H])
        g_g = jnp.tanh(g[:, 2 * H:3 * H])
        o_g = jax.nn.sigmoid(g[:, 3 * H:4 * H])
        c_new = f_g.astype(jnp.float32) * c + (i_g * g_g).astype(jnp.float32)
        h_new = (o_g * jnp.tanh(c_new.astype(gate_dtype))).astype(h.dtype)
        if ragged:
            # Past-T steps read clamped (in-bounds, real) pre-gate data; it is pushed
            # through sigmoid/tanh and then DISCARDED by this select.  Keep this a
            # jnp.where (select), never arithmetic masking, so padded-step values can
            # never leak into the carried state.
            valid = (t_base + t) < t_total
            h_new = jnp.where(valid, h_new, h)
            c_new = jnp.where(valid, c_new, c)
        return h_new, c_new

    h, c = lax.fori_loop(0, t_block, step, (h_ref[...], c_ref[...]),
                         unroll=unroll)
    h_ref[...] = h
    c_ref[...] = c

    @pl.when(t_chunk == pl.num_programs(1) - 1)
    def _head():
        # linear_stack on h_n (eval mode: BN folded into W/b, dropout = identity).
        z1 = jnp.dot(h, w1_ref[...],
                     preferred_element_type=jnp.float32) + b1_ref[...]
        z1 = jnp.maximum(z1, 0.0)
        z2 = jnp.dot(z1.astype(w2_ref.dtype), w2_ref[...],
                     preferred_element_type=jnp.float32) + b2_ref[...]
        z2 = jnp.maximum(z2, 0.0)
        # (B,256)@(256,1) -> VPU multiply + lane reduction (avoids a 1-lane MXU matmul).
        logits = jnp.sum(z2 * w3_ref[...], axis=-1, keepdims=True) + b3_ref[...]
        out_ref[...] = jax.nn.sigmoid(logits)


def lstm_network_forward(x, params, *, time_block=16, batch_block=256,
                         matmul_dtype=jnp.bfloat16, gate_dtype=None,
                         unroll=4, pregate_buffers=None):
    """x: (B, T, 3) batch-first, like the PyTorch module. Returns (B, 1) float32."""
    B, T, _ = x.shape
    H = HIDDEN
    f32 = jnp.float32
    if gate_dtype is None:
        gate_dtype = matmul_dtype          # pass gate_dtype=jnp.float32 on v5e
    x = x.astype(f32)

    # --- batch blocking: fixed, 8-aligned bB; >=2 blocks when B>8 (v7x megacore) ---
    if B > 8:
        bB = min(batch_block, _round_up(_cdiv(B, 2), 8))
    else:
        bB = _round_up(max(B, 1), 8)
    bB = max(bB, 8)
    B_pad = _round_up(B, bB)
    if B_pad != B:
        x = jnp.pad(x, ((0, B_pad - B), (0, 0), (0, 0)))   # zero rows, sliced off below

    # --- hoisted input projection: time-major, lane-dense pre-gates, matmul_dtype ---
    # TODO(synk): on v5e, if profiling still shows this stream exposed, fuse the K=3
    # projection back into the kernel as a once-per-chunk matmul on an (tT,bB,3) x-tile.
    w_ih_t = params["w_ih"].T.astype(f32)                        # (3, 4H)
    bias = (params["b_ih"] + params["b_hh"]).astype(f32)         # (4H,)
    pre_gates = (jnp.einsum("btk,kg->tbg", x, w_ih_t) + bias).astype(matmul_dtype)

    # --- fold eval-mode BatchNorm into the Linear weights / biases ---
    def fold_bn(w, b, gamma, beta, mean, var):
        scale = gamma / jnp.sqrt(var + BN_EPS)                   # (H,)
        w_f = w.T * scale[None, :]                               # (in, out)
        b_f = scale * b + (beta - mean * scale)                  # (H,)
        return w_f, b_f

    w1f, b1f = fold_bn(params["w1"], params["b1"], params["bn1_gamma"],
                       params["bn1_beta"], params["bn1_mean"], params["bn1_var"])
    w2f, b2f = fold_bn(params["w2"], params["b2"], params["bn2_gamma"],
                       params["bn2_beta"], params["bn2_mean"], params["bn2_var"])

    # --- time blocking ---
    tT = min(time_block, T)
    ragged = (T % tT) != 0
    grid = (B_pad // bB, _cdiv(T, tT))

    inputs = (
        pre_gates,                                               # (T, B_pad, 4H) streamed
        params["w_hh"].T.astype(matmul_dtype),                   # (H, 4H) resident
        w1f.astype(matmul_dtype), b1f[None, :].astype(f32),      # (H, H), (1, H)
        w2f.astype(matmul_dtype), b2f[None, :].astype(f32),      # (H, H), (1, H)
        params["w3"].astype(f32),                                # (1, H)  VPU head
        params["b3"][None, :].astype(f32),                       # (1, 1)
    )

    # --- explicit VMEM budget: n_buf x pre-gate tile + 2 x weights + carries + margin ---
    mm_b = jnp.dtype(matmul_dtype).itemsize
    n_buf = 2 if pregate_buffers is None else int(pregate_buffers)
    pregate_tile = tT * bB * 4 * H * mm_b
    weight_bytes = (H * 4 * H + 2 * H * H) * mm_b + (4 * H + 2 * H + H + 1) * 4
    scratch_bytes = bB * H * (mm_b + 4)
    needed = n_buf * pregate_tile + 2 * (weight_bytes + bB * 4) + scratch_bytes
    vmem_limit = min(max(32 << 20, int(needed * 1.3)), 120 << 20)

    pg_spec_kwargs = {}
    if pregate_buffers is not None:
        pg_spec_kwargs["pipeline_mode"] = pl.Buffered(int(pregate_buffers))

    kernel = functools.partial(
        _lstm_mlp_kernel, t_total=T, t_block=tT, ragged=ragged,
        gate_dtype=gate_dtype, unroll=max(1, min(int(unroll), tT)))

    out = pl.pallas_call(
        kernel,
        out_shape=jax.ShapeDtypeStruct((B_pad, 1), jnp.float32),
        grid_spec=pltpu.PrefetchScalarGridSpec(
            num_scalar_prefetch=0,
            grid=grid,
            in_specs=[
                pl.BlockSpec((tT, bB, 4 * H), lambda b, t: (t, b, 0),
                             **pg_spec_kwargs),                  # pre-gates: streamed
                pl.BlockSpec((H, 4 * H), lambda b, t: (0, 0)),   # W_hh: resident
                pl.BlockSpec((H, H), lambda b, t: (0, 0)),       # W1' (BN folded)
                pl.BlockSpec((1, H), lambda b, t: (0, 0)),       # b1'
                pl.BlockSpec((H, H), lambda b, t: (0, 0)),       # W2'
                pl.BlockSpec((1, H), lambda b, t: (0, 0)),       # b2'
                pl.BlockSpec((1, H), lambda b, t: (0, 0)),       # w3 row
                pl.BlockSpec((1, 1), lambda b, t: (0, 0)),       # b3
            ],
            out_specs=pl.BlockSpec((bB, 1), lambda b, t: (b, 0)),
            scratch_shapes=[
                pltpu.VMEM((bB, H), matmul_dtype),   # h carry (matmul dtype)
                pltpu.VMEM((bB, H), jnp.float32),    # c carry (f32)
            ],
        ),
        compiler_params=pltpu.CompilerParams(
            dimension_semantics=("parallel", "arbitrary"),
            vmem_limit_bytes=vmem_limit,
        ),
    )(*inputs)

    return out[:B] if B_pad != B else out


def init_params(key):
    """Deterministic synthetic parameters with PyTorch-like shapes/init ranges."""
    ks = jax.random.split(key, 16)
    H = HIDDEN

    def unif(k, shape, bound):
        return jax.random.uniform(k, shape, jnp.float32, -bound, bound)

    k_lstm = 1.0 / jnp.sqrt(H)
    k_lin = 1.0 / jnp.sqrt(H)
    params = {
        "w_ih": unif(ks[0], (4 * H, INPUT_SIZE), k_lstm),
        "w_hh": unif(ks[1], (4 * H, H), k_lstm),
        "b_ih": unif(ks[2], (4 * H,), k_lstm),
        "b_hh": unif(ks[3], (4 * H,), k_lstm),
        "w1": unif(ks[4], (H, H), k_lin),
        "b1": unif(ks[5], (H,), k_lin),
        "w2": unif(ks[6], (H, H), k_lin),
        "b2": unif(ks[7], (H,), k_lin),
        "w3": unif(ks[8], (1, H), k_lin),
        "b3": unif(ks[9], (1,), k_lin),
        # BatchNorm1d eval-mode stats (deterministic, non-trivial)
        "bn1_gamma": 1.0 + 0.01 * jnp.arange(H, dtype=jnp.float32),
        "bn1_beta": 0.02 * jnp.arange(H, dtype=jnp.float32) - 0.5,
        "bn1_mean": 0.001 * jnp.arange(H, dtype=jnp.float32),
        "bn1_var": 1.0 + 0.005 * jnp.arange(H, dtype=jnp.float32),
        "bn2_gamma": 1.0 - 0.002 * jnp.arange(H, dtype=jnp.float32),
        "bn2_beta": 0.01 * jnp.arange(H, dtype=jnp.float32),
        "bn2_mean": -0.001 * jnp.arange(H, dtype=jnp.float32),
        "bn2_var": 1.0 + 0.003 * jnp.arange(H, dtype=jnp.float32),
    }
    return params


def reference_forward(x, params):
    """Pure-JAX reference matching PyTorch eval-mode semantics."""
    B, T, _ = x.shape
    H = HIDDEN
    h = jnp.zeros((B, H), jnp.float32)
    c = jnp.zeros((B, H), jnp.float32)
    w_ih_t = params["w_ih"].T
    w_hh_t = params["w_hh"].T
    b = params["b_ih"] + params["b_hh"]
    for t in range(T):
        gates = x[:, t, :] @ w_ih_t + h @ w_hh_t + b
        i = jax.nn.sigmoid(gates[:, 0:H])
        f = jax.nn.sigmoid(gates[:, H:2 * H])
        g = jnp.tanh(gates[:, 2 * H:3 * H])
        o = jax.nn.sigmoid(gates[:, 3 * H:4 * H])
        c = f * c + i * g
        h = o * jnp.tanh(c)

    def bn(z, g, bta, m, v):
        return g * (z - m) / jnp.sqrt(v + BN_EPS) + bta

    z = h @ params["w1"].T + params["b1"]
    z = jnp.maximum(bn(z, params["bn1_gamma"], params["bn1_beta"],
                       params["bn1_mean"], params["bn1_var"]), 0.0)
    z = z @ params["w2"].T + params["b2"]
    z = jnp.maximum(bn(z, params["bn2_gamma"], params["bn2_beta"],
                       params["bn2_mean"], params["bn2_var"]), 0.0)
    return jax.nn.sigmoid(z @ params["w3"].T + params["b3"])


if __name__ == "__main__":
    key = jax.random.PRNGKey(0)
    k_x, k_p = jax.random.split(key)
    params = init_params(k_p)

    # Test 1: fast path — bf16 streamed pre-gates / bf16 h carry / bf16 gates,
    # f32 c accumulator and f32 matmul accumulation; two streamed time chunks.
    B, T = 8, 8
    x = jax.random.normal(k_x, (B, T, INPUT_SIZE), jnp.float32)
    ref = reference_forward(x, params)
    out_bf16 = jax.block_until_ready(lstm_network_forward(x, params, time_block=4))
    assert out_bf16.shape == (B, 1)
    assert jnp.allclose(out_bf16, ref, atol=3e-2, rtol=3e-2)

    # Test 2: full-f32 path with ragged time chunks (exercises the masked last chunk);
    # verifies exact eval-mode semantics.
    out_f32 = jax.block_until_ready(
        lstm_network_forward(x, params, time_block=3, matmul_dtype=jnp.float32))
    assert out_f32.shape == (B, 1)
    assert jnp.allclose(out_f32, ref, atol=1e-3, rtol=1e-3)

    # Test 3: non-8-divisible batch + ragged time (exercises wrapper batch padding).
    B2, T2 = 5, 6
    x2 = jax.random.normal(jax.random.PRNGKey(7), (B2, T2, INPUT_SIZE), jnp.float32)
    ref2 = reference_forward(x2, params)
    out2 = jax.block_until_ready(
        lstm_network_forward(x2, params, time_block=4, matmul_dtype=jnp.float32))
    assert out2.shape == (B2, 1)
    assert jnp.allclose(out2, ref2, atol=1e-3, rtol=1e-3)

    # TODO(synk): Dropout(0.2) is stochastic in training mode; eval-mode identity used.
    print("KERNEL_OK")
</pallas_src>

<mosaic_0001>
module attributes {stable_mosaic.version = 11 : i64} {
  func.func @_lstm_mlp_kernel(%arg0: i32, %arg1: i32, %arg2: memref<4x8x1024xbf16, #tpu.memory_space<vmem>>, %arg3: memref<256x1024xbf16, #tpu.memory_space<vmem>>, %arg4: memref<256x256xbf16, #tpu.memory_space<vmem>>, %arg5: memref<1x256xf32, #tpu.memory_space<vmem>>, %arg6: memref<256x256xbf16, #tpu.memory_space<vmem>>, %arg7: memref<1x256xf32, #tpu.memory_space<vmem>>, %arg8: memref<1x256xf32, #tpu.memory_space<vmem>>, %arg9: memref<1x1xf32, #tpu.memory_space<vmem>>, %arg10: memref<8x1xf32, #tpu.memory_space<vmem>>, %arg11: memref<8x256xbf16, #tpu.memory_space<vmem>>, %arg12: memref<8x256xf32, #tpu.memory_space<vmem>>) attributes {dimension_semantics = [#tpu.dimension_semantics<parallel>, #tpu.dimension_semantics<arbitrary>], iteration_bounds = array<i64: 1, 2>, scalar_prefetch = 0 : i64, scratch_operands = 2 : i64, tpu.core_type = #tpu.core_type<tc>, window_params = [{transform_indices = @transform_0, window_bounds = array<i64: 4, 8, 1024>}, {pipeline_mode = #tpu.pipeline_mode<synchronous>, transform_indices = @transform_1, window_bounds = array<i64: 256, 1024>}, {pipeline_mode = #tpu.pipeline_mode<synchronous>, transform_indices = @transform_2, window_bounds = array<i64: 256, 256>}, {pipeline_mode = #tpu.pipeline_mode<synchronous>, transform_indices = @transform_3, window_bounds = array<i64: 1, 256>}, {pipeline_mode = #tpu.pipeline_mode<synchronous>, transform_indices = @transform_4, window_bounds = array<i64: 256, 256>}, {pipeline_mode = #tpu.pipeline_mode<synchronous>, transform_indices = @transform_5, window_bounds = array<i64: 1, 256>}, {pipeline_mode = #tpu.pipeline_mode<synchronous>, transform_indices = @transform_6, window_bounds = array<i64: 1, 256>}, {pipeline_mode = #tpu.pipeline_mode<synchronous>, transform_indices = @transform_7, window_bounds = array<i64: 1, 1>}, {transform_indices = @transform_8, window_bounds = array<i64: 8, 1>}]} {
    %c0_i32 = arith.constant 0 : i32
    %0 = arith.cmpi eq, %arg1, %c0_i32 : i32
    %1 = arith.extui %0 : i1 to i32
    %c0_i32_0 = arith.constant 0 : i32
    %2 = arith.cmpi ne, %1, %c0_i32_0 : i32
    scf.if %2 {
      %cst_36 = arith.constant 0.000000e+00 : bf16
      %151 = vector.broadcast %cst_36 : bf16 to vector<8x256xbf16>
      %c0_37 = arith.constant 0 : index
      %c0_38 = arith.constant 0 : index
      %152 = vector.load %arg11[%c0_37, %c0_38] : memref<8x256xbf16, #tpu.memory_space<vmem>>, vector<8x256xbf16>
      tpu.vector_store %arg11[%c0_37, %c0_38], %151 {strides = array<i32>} : memref<8x256xbf16, #tpu.memory_space<vmem>>, vector<8x256xbf16>,
      %cst_39 = arith.constant 0.000000e+00 : f32
      %153 = vector.broadcast %cst_39 : f32 to vector<8x256xf32>
      %c0_40 = arith.constant 0 : index
      %c0_41 = arith.constant 0 : index
      %154 = vector.load %arg12[%c0_40, %c0_41] : memref<8x256xf32, #tpu.memory_space<vmem>>, vector<8x256xf32>
      tpu.vector_store %arg12[%c0_40, %c0_41], %153 {strides = array<i32>} : memref<8x256xf32, #tpu.memory_space<vmem>>, vector<8x256xf32>,
    } else {
    }
    %c0 = arith.constant 0 : index
    %c0_1 = arith.constant 0 : index
    %3 = vector.load %arg3[%c0, %c0_1] : memref<256x1024xbf16, #tpu.memory_space<vmem>>, vector<256x1024xbf16>
    %c0_2 = arith.constant 0 : index
    %c0_3 = arith.constant 0 : index
    %4 = vector.load %arg11[%c0_2, %c0_3] : memref<8x256xbf16, #tpu.memory_space<vmem>>, vector<8x256xbf16>
    %c0_4 = arith.constant 0 : index
    %c0_5 = arith.constant 0 : index
    %5 = vector.load %arg12[%c0_4, %c0_5] : memref<8x256xf32, #tpu.memory_space<vmem>>, vector<8x256xf32>
    %c0_i32_6 = arith.constant 0 : i32
    %cst = arith.constant dense<0.000000e+00> : vector<8x1024xf32>
    %6 = tpu.matmul %4, %3, %cst {dimension_numbers = #tpu.dot_dimension_numbers<[1], [0], [0], [1], [0, 0, 1, 1], [], []>} : vector<8x256xbf16>, vector<256x1024xbf16>, vector<8x1024xf32> -> vector<8x1024xf32>
    %7 = arith.index_cast %c0_i32_6 : i32 to index
    %c0_7 = arith.constant 0 : index
    %c0_8 = arith.constant 0 : index
    %8 = vector.load %arg2[%7, %c0_7, %c0_8] : memref<4x8x1024xbf16, #tpu.memory_space<vmem>>, vector<1x8x1024xbf16>
    %9 = vector.shape_cast %8 : vector<1x8x1024xbf16> to vector<8x1024xbf16>
    %10 = arith.extf %9 : vector<8x1024xbf16> to vector<8x1024xf32>
    %11 = arith.addf %6, %10 : vector<8x1024xf32>
    %12 = arith.truncf %11 : vector<8x1024xf32> to vector<8x1024xbf16>
    %13 = vector.extract_strided_slice %12 {offsets = [0, 0], sizes = [8, 256], strides = [1, 1]} : vector<8x1024xbf16> to vector<8x256xbf16>
    %14 = arith.negf %13 : vector<8x256xbf16>
    %15 = math.exp %14 : vector<8x256xbf16>
    %cst_9 = arith.constant 1.000000e+00 : bf16
    %16 = vector.broadcast %cst_9 : bf16 to vector<8x256xbf16>
    %17 = arith.addf %16, %15 : vector<8x256xbf16>
    %18 = arith.divf %16, %17 : vector<8x256xbf16>
    %19 = vector.extract_strided_slice %12 {offsets = [0, 256], sizes = [8, 256], strides = [1, 1]} : vector<8x1024xbf16> to vector<8x256xbf16>
    %20 = arith.negf %19 : vector<8x256xbf16>
    %21 = math.exp %20 : vector<8x256xbf16>
    %cst_10 = arith.constant 1.000000e+00 : bf16
    %22 = vector.broadcast %cst_10 : bf16 to vector<8x256xbf16>
    %23 = arith.addf %22, %21 : vector<8x256xbf16>
    %24 = arith.divf %22, %23 : vector<8x256xbf16>
    %25 = vector.extract_strided_slice %12 {offsets = [0, 512], sizes = [8, 256], strides = [1, 1]} : vector<8x1024xbf16> to vector<8x256xbf16>
    %26 = math.tanh %25 : vector<8x256xbf16>
    %27 = vector.extract_strided_slice %12 {offsets = [0, 768], sizes = [8, 256], strides = [1, 1]} : vector<8x1024xbf16> to vector<8x256xbf16>
    %28 = arith.negf %27 : vector<8x256xbf16>
    %29 = math.exp %28 : vector<8x256xbf16>
    %cst_11 = arith.constant 1.000000e+00 : bf16
    %30 = vector.broadcast %cst_11 : bf16 to vector<8x256xbf16>
    %31 = arith.addf %30, %29 : vector<8x256xbf16>
    %32 = arith.divf %30, %31 : vector<8x256xbf16>
    %33 = arith.extf %24 : vector<8x256xbf16> to vector<8x256xf32>
    %34 = arith.mulf %33, %5 : vector<8x256xf32>
    %35 = arith.mulf %18, %26 : vector<8x256xbf16>
    %36 = arith.extf %35 : vector<8x256xbf16> to vector<8x256xf32>
    %37 = arith.addf %34, %36 : vector<8x256xf32>
    %38 = arith.truncf %37 : vector<8x256xf32> to vector<8x256xbf16>
    %39 = math.tanh %38 : vector<8x256xbf16>
    %40 = arith.mulf %32, %39 : vector<8x256xbf16>
    %c1_i32 = arith.constant 1 : i32
    %cst_12 = arith.constant dense<0.000000e+00> : vector<8x1024xf32>
    %41 = tpu.matmul %40, %3, %cst_12 {dimension_numbers = #tpu.dot_dimension_numbers<[1], [0], [0], [1], [0, 0, 1, 1], [], []>} : vector<8x256xbf16>, vector<256x1024xbf16>, vector<8x1024xf32> -> vector<8x1024xf32>
    %42 = arith.index_cast %c1_i32 : i32 to index
    %c0_13 = arith.constant 0 : index
    %c0_14 = arith.constant 0 : index
    %43 = vector.load %arg2[%42, %c0_13, %c0_14] : memref<4x8x1024xbf16, #tpu.memory_space<vmem>>, vector<1x8x1024xbf16>
    %44 = vector.shape_cast %43 : vector<1x8x1024xbf16> to vector<8x1024xbf16>
    %45 = arith.extf %44 : vector<8x1024xbf16> to vector<8x1024xf32>
    %46 = arith.addf %41, %45 : vector<8x1024xf32>
    %47 = arith.truncf %46 : vector<8x1024xf32> to vector<8x1024xbf16>
    %48 = vector.extract_strided_slice %47 {offsets = [0, 0], sizes = [8, 256], strides = [1, 1]} : vector<8x1024xbf16> to vector<8x256xbf16>
    %49 = arith.negf %48 : vector<8x256xbf16>
    %50 = math.exp %49 : vector<8x256xbf16>
    %cst_15 = arith.constant 1.000000e+00 : bf16
    %51 = vector.broadcast %cst_15 : bf16 to vector<8x256xbf16>
    %52 = arith.addf %51, %50 : vector<8x256xbf16>
    %53 = arith.divf %51, %52 : vector<8x256xbf16>
    %54 = vector.extract_strided_slice %47 {offsets = [0, 256], sizes = [8, 256], strides = [1, 1]} : vector<8x1024xbf16> to vector<8x256xbf16>
    %55 = arith.negf %54 : vector<8x256xbf16>
    %56 = math.exp %55 : vector<8x256xbf16>
    %cst_16 = arith.constant 1.000000e+00 : bf16
    %57 = vector.broadcast %cst_16 : bf16 to vector<8x256xbf16>
    %58 = arith.addf %57, %56 : vector<8x256xbf16>
    %59 = arith.divf %57, %58 : vector<8x256xbf16>
    %60 = vector.extract_strided_slice %47 {offsets = [0, 512], sizes = [8, 256], strides = [1, 1]} : vector<8x1024xbf16> to vector<8x256xbf16>
    %61 = math.tanh %60 : vector<8x256xbf16>
    %62 = vector.extract_strided_slice %47 {offsets = [0, 768], sizes = [8, 256], strides = [1, 1]} : vector<8x1024xbf16> to vector<8x256xbf16>
    %63 = arith.negf %62 : vector<8x256xbf16>
    %64 = math.exp %63 : vector<8x256xbf16>
    %cst_17 = arith.constant 1.000000e+00 : bf16
    %65 = vector.broadcast %cst_17 : bf16 to vector<8x256xbf16>
    %66 = arith.addf %65, %64 : vector<8x256xbf16>
    %67 = arith.divf %65, %66 : vector<8x256xbf16>
    %68 = arith.extf %59 : vector<8x256xbf16> to vector<8x256xf32>
    %69 = arith.mulf %68, %37 : vector<8x256xf32>
    %70 = arith.mulf %53, %61 : vector<8x256xbf16>
    %71 = arith.extf %70 : vector<8x256xbf16> to vector<8x256xf32>
    %72 = arith.addf %69, %71 : vector<8x256xf32>
    %73 = arith.truncf %72 : vector<8x256xf32> to vector<8x256xbf16>
    %74 = math.tanh %73 : vector<8x256xbf16>
    %75 = arith.mulf %67, %74 : vector<8x256xbf16>
    %c2_i32 = arith.constant 2 : i32
    %cst_18 = arith.constant dense<0.000000e+00> : vector<8x1024xf32>
    %76 = tpu.matmul %75, %3, %cst_18 {dimension_numbers = #tpu.dot_dimension_numbers<[1], [0], [0], [1], [0, 0, 1, 1], [], []>} : vector<8x256xbf16>, vector<256x1024xbf16>, vector<8x1024xf32> -> vector<8x1024xf32>
    %77 = arith.index_cast %c2_i32 : i32 to index
    %c0_19 = arith.constant 0 : index
    %c0_20 = arith.constant 0 : index
    %78 = vector.load %arg2[%77, %c0_19, %c0_20] : memref<4x8x1024xbf16, #tpu.memory_space<vmem>>, vector<1x8x1024xbf16>
    %79 = vector.shape_cast %78 : vector<1x8x1024xbf16> to vector<8x1024xbf16>
    %80 = arith.extf %79 : vector<8x1024xbf16> to vector<8x1024xf32>
    %81 = arith.addf %76, %80 : vector<8x1024xf32>
    %82 = arith.truncf %81 : vector<8x1024xf32> to vector<8x1024xbf16>
    %83 = vector.extract_strided_slice %82 {offsets = [0, 0], sizes = [8, 256], strides = [1, 1]} : vector<8x1024xbf16> to vector<8x256xbf16>
    %84 = arith.negf %83 : vector<8x256xbf16>
    %85 = math.exp %84 : vector<8x256xbf16>
    %cst_21 = arith.constant 1.000000e+00 : bf16
    %86 = vector.broadcast %cst_21 : bf16 to vector<8x256xbf16>
    %87 = arith.addf %86, %85 : vector<8x256xbf16>
    %88 = arith.divf %86, %87 : vector<8x256xbf16>
    %89 = vector.extract_strided_slice %82 {offsets = [0, 256], sizes = [8, 256], strides = [1, 1]} : vector<8x1024xbf16> to vector<8x256xbf16>
    %90 = arith.negf %89 : vector<8x256xbf16>
    %91 = math.exp %90 : vector<8x256xbf16>
    %cst_22 = arith.constant 1.000000e+00 : bf16
    %92 = vector.broadcast %cst_22 : bf16 to vector<8x256xbf16>
    %93 = arith.addf %92, %91 : vector<8x256xbf16>
    %94 = arith.divf %92, %93 : vector<8x256xbf16>
    %95 = vector.extract_strided_slice %82 {offsets = [0, 512], sizes = [8, 256], strides = [1, 1]} : vector<8x1024xbf16> to vector<8x256xbf16>
    %96 = math.tanh %95 : vector<8x256xbf16>
    %97 = vector.extract_strided_slice %82 {offsets = [0, 768], sizes = [8, 256], strides = [1, 1]} : vector<8x1024xbf16> to vector<8x256xbf16>
    %98 = arith.negf %97 : vector<8x256xbf16>
    %99 = math.exp %98 : vector<8x256xbf16>
    %cst_23 = arith.constant 1.000000e+00 : bf16
    %100 = vector.broadcast %cst_23 : bf16 to vector<8x256xbf16>
    %101 = arith.addf %100, %99 : vector<8x256xbf16>
    %102 = arith.divf %100, %101 : vector<8x256xbf16>
    %103 = arith.extf %94 : vector<8x256xbf16> to vector<8x256xf32>
    %104 = arith.mulf %103, %72 : vector<8x256xf32>
    %105 = arith.mulf %88, %96 : vector<8x256xbf16>
    %106 = arith.extf %105 : vector<8x256xbf16> to vector<8x256xf32>
    %107 = arith.addf %104, %106 : vector<8x256xf32>
    %108 = arith.truncf %107 : vector<8x256xf32> to vector<8x256xbf16>
    %109 = math.tanh %108 : vector<8x256xbf16>
    %110 = arith.mulf %102, %109 : vector<8x256xbf16>
    %c3_i32 = arith.constant 3 : i32
    %cst_24 = arith.constant dense<0.000000e+00> : vector<8x1024xf32>
    %111 = tpu.matmul %110, %3, %cst_24 {dimension_numbers = #tpu.dot_dimension_numbers<[1], [0], [0], [1], [0, 0, 1, 1], [], []>} : vector<8x256xbf16>, vector<256x1024xbf16>, vector<8x1024xf32> -> vector<8x1024xf32>
    %112 = arith.index_cast %c3_i32 : i32 to index
    %c0_25 = arith.constant 0 : index
    %c0_26 = arith.constant 0 : index
    %113 = vector.load %arg2[%112, %c0_25, %c0_26] : memref<4x8x1024xbf16, #tpu.memory_space<vmem>>, vector<1x8x1024xbf16>
    %114 = vector.shape_cast %113 : vector<1x8x1024xbf16> to vector<8x1024xbf16>
    %115 = arith.extf %114 : vector<8x1024xbf16> to vector<8x1024xf32>
    %116 = arith.addf %111, %115 : vector<8x1024xf32>
    %117 = arith.truncf %116 : vector<8x1024xf32> to vector<8x1024xbf16>
    %118 = vector.extract_strided_slice %117 {offsets = [0, 0], sizes = [8, 256], strides = [1, 1]} : vector<8x1024xbf16> to vector<8x256xbf16>
    %119 = arith.negf %118 : vector<8x256xbf16>
    %120 = math.exp %119 : vector<8x256xbf16>
    %cst_27 = arith.constant 1.000000e+00 : bf16
    %121 = vector.broadcast %cst_27 : bf16 to vector<8x256xbf16>
    %122 = arith.addf %121, %120 : vector<8x256xbf16>
    %123 = arith.divf %121, %122 : vector<8x256xbf16>
    %124 = vector.extract_strided_slice %117 {offsets = [0, 256], sizes = [8, 256], strides = [1, 1]} : vector<8x1024xbf16> to vector<8x256xbf16>
    %125 = arith.negf %124 : vector<8x256xbf16>
    %126 = math.exp %125 : vector<8x256xbf16>
    %cst_28 = arith.constant 1.000000e+00 : bf16
    %127 = vector.broadcast %cst_28 : bf16 to vector<8x256xbf16>
    %128 = arith.addf %127, %126 : vector<8x256xbf16>
    %129 = arith.divf %127, %128 : vector<8x256xbf16>
    %130 = vector.extract_strided_slice %117 {offsets = [0, 512], sizes = [8, 256], strides = [1, 1]} : vector<8x1024xbf16> to vector<8x256xbf16>
    %131 = math.tanh %130 : vector<8x256xbf16>
    %132 = vector.extract_strided_slice %117 {offsets = [0, 768], sizes = [8, 256], strides = [1, 1]} : vector<8x1024xbf16> to vector<8x256xbf16>
    %133 = arith.negf %132 : vector<8x256xbf16>
    %134 = math.exp %133 : vector<8x256xbf16>
    %cst_29 = arith.constant 1.000000e+00 : bf16
    %135 = vector.broadcast %cst_29 : bf16 to vector<8x256xbf16>
    %136 = arith.addf %135, %134 : vector<8x256xbf16>
    %137 = arith.divf %135, %136 : vector<8x256xbf16>
    %138 = arith.extf %129 : vector<8x256xbf16> to vector<8x256xf32>
    %139 = arith.mulf %138, %107 : vector<8x256xf32>
    %140 = arith.mulf %123, %131 : vector<8x256xbf16>
    %141 = arith.extf %140 : vector<8x256xbf16> to vector<8x256xf32>
    %142 = arith.addf %139, %141 : vector<8x256xf32>
    %143 = arith.truncf %142 : vector<8x256xf32> to vector<8x256xbf16>
    %144 = math.tanh %143 : vector<8x256xbf16>
    %145 = arith.mulf %137, %144 : vector<8x256xbf16>
    %c4_i32 = arith.constant 4 : i32
    %c0_30 = arith.constant 0 : index
    %c0_31 = arith.constant 0 : index
    %146 = vector.load %arg11[%c0_30, %c0_31] : memref<8x256xbf16, #tpu.memory_space<vmem>>, vector<8x256xbf16>
    tpu.vector_store %arg11[%c0_30, %c0_31], %145 {strides = array<i32>} : memref<8x256xbf16, #tpu.memory_space<vmem>>, vector<8x256xbf16>,
    %c0_32 = arith.constant 0 : index
    %c0_33 = arith.constant 0 : index
    %147 = vector.load %arg12[%c0_32, %c0_33] : memref<8x256xf32, #tpu.memory_space<vmem>>, vector<8x256xf32>
    tpu.vector_store %arg12[%c0_32, %c0_33], %142 {strides = array<i32>} : memref<8x256xf32, #tpu.memory_space<vmem>>, vector<8x256xf32>,
    %c1_i32_34 = arith.constant 1 : i32
    %148 = arith.cmpi eq, %arg1, %c1_i32_34 : i32
    %149 = arith.extui %148 : i1 to i32
    %c0_i32_35 = arith.constant 0 : i32
    %150 = arith.cmpi ne, %149, %c0_i32_35 : i32
    scf.if %150 {
      %c0_36 = arith.constant 0 : index
      %c0_37 = arith.constant 0 : index
      %151 = vector.load %arg4[%c0_36, %c0_37] : memref<256x256xbf16, #tpu.memory_space<vmem>>, vector<256x256xbf16>
      %cst_38 = arith.constant dense<0.000000e+00> : vector<8x256xf32>
      %152 = tpu.matmul %145, %151, %cst_38 {dimension_numbers = #tpu.dot_dimension_numbers<[1], [0], [0], [1], [0, 0, 1, 1], [], []>} : vector<8x256xbf16>, vector<256x256xbf16>, vector<8x256xf32> -> vector<8x256xf32>
      %c0_39 = arith.constant 0 : index
      %c0_40 = arith.constant 0 : index
      %153 = vector.load %arg5[%c0_39, %c0_40] : memref<1x256xf32, #tpu.memory_space<vmem>>, vector<1x256xf32>
      %154 = vector.broadcast %153 : vector<1x256xf32> to vector<8x256xf32>
      %155 = arith.addf %152, %154 : vector<8x256xf32>
      %cst_41 = arith.constant 0.000000e+00 : f32
      %156 = vector.broadcast %cst_41 : f32 to vector<8x256xf32>
      %157 = arith.maximumf %155, %156 : vector<8x256xf32>
      %158 = arith.truncf %157 : vector<8x256xf32> to vector<8x256xbf16>
      %c0_42 = arith.constant 0 : index
      %c0_43 = arith.constant 0 : index
      %159 = vector.load %arg6[%c0_42, %c0_43] : memref<256x256xbf16, #tpu.memory_space<vmem>>, vector<256x256xbf16>
      %cst_44 = arith.constant dense<0.000000e+00> : vector<8x256xf32>
      %160 = tpu.matmul %158, %159, %cst_44 {dimension_numbers = #tpu.dot_dimension_numbers<[1], [0], [0], [1], [0, 0, 1, 1], [], []>} : vector<8x256xbf16>, vector<256x256xbf16>, vector<8x256xf32> -> vector<8x256xf32>
      %c0_45 = arith.constant 0 : index
      %c0_46 = arith.constant 0 : index
      %161 = vector.load %arg7[%c0_45, %c0_46] : memref<1x256xf32, #tpu.memory_space<vmem>>, vector<1x256xf32>
      %162 = vector.broadcast %161 : vector<1x256xf32> to vector<8x256xf32>
      %163 = arith.addf %160, %162 : vector<8x256xf32>
      %cst_47 = arith.constant 0.000000e+00 : f32
      %164 = vector.broadcast %cst_47 : f32 to vector<8x256xf32>
      %165 = arith.maximumf %163, %164 : vector<8x256xf32>
      %c0_48 = arith.constant 0 : index
      %c0_49 = arith.constant 0 : index
      %166 = vector.load %arg8[%c0_48, %c0_49] : memref<1x256xf32, #tpu.memory_space<vmem>>, vector<1x256xf32>
      %167 = vector.broadcast %166 : vector<1x256xf32> to vector<8x256xf32>
      %168 = arith.mulf %165, %167 : vector<8x256xf32>
      %cst_50 = arith.constant dense<0.000000e+00> : vector<8xf32>
      %169 = vector.multi_reduction <add>, %168, %cst_50 [1] : vector<8x256xf32> to vector<8xf32>
      %170 = vector.shape_cast %169 : vector<8xf32> to vector<8x1xf32>
      %c0_51 = arith.constant 0 : index
      %c0_52 = arith.constant 0 : index
      %171 = vector.load %arg9[%c0_51, %c0_52] : memref<1x1xf32, #tpu.memory_space<vmem>>, vector<1x1xf32>
      %172 = vector.broadcast %171 : vector<1x1xf32> to vector<8x1xf32>
      %173 = arith.addf %170, %172 : vector<8x1xf32>
      %174 = arith.negf %173 : vector<8x1xf32>
      %175 = math.exp %174 : vector<8x1xf32>
      %cst_53 = arith.constant 1.000000e+00 : f32
      %176 = vector.broadcast %cst_53 : f32 to vector<8x1xf32>
      %177 = arith.addf %176, %175 : vector<8x1xf32>
      %178 = arith.divf %176, %177 : vector<8x1xf32>
      %c0_54 = arith.constant 0 : index
      %c0_55 = arith.constant 0 : index
      %179 = vector.load %arg10[%c0_54, %c0_55] : memref<8x1xf32, #tpu.memory_space<vmem>>, vector<8x1xf32>
      tpu.vector_store %arg10[%c0_54, %c0_55], %178 {strides = array<i32>} : memref<8x1xf32, #tpu.memory_space<vmem>>, vector<8x1xf32>,
    } else {
    }
    return
  }
  func.func @transform_0(%arg0: i32, %arg1: i32) -> (i32, i32, i32) {
    %c0_i32 = arith.constant 0 : i32
    %c0_i32_0 = arith.constant 0 : i32
    return %arg1, %arg0, %c0_i32 : i32, i32, i32
  }
  func.func @transform_1(%arg0: i32, %arg1: i32) -> (i32, i32) {
    %c0_i32 = arith.constant 0 : i32
    %c0_i32_0 = arith.constant 0 : i32
    %c0_i32_1 = arith.constant 0 : i32
    return %c0_i32, %c0_i32_0 : i32, i32
  }
  func.func @transform_2(%arg0: i32, %arg1: i32) -> (i32, i32) {
    %c0_i32 = arith.constant 0 : i32
    %c0_i32_0 = arith.constant 0 : i32
    %c0_i32_1 = arith.constant 0 : i32
    return %c0_i32, %c0_i32_0 : i32, i32
  }
  func.func @transform_3(%arg0: i32, %arg1: i32) -> (i32, i32) {
    %c0_i32 = arith.constant 0 : i32
    %c0_i32_0 = arith.constant 0 : i32
    %c0_i32_1 = arith.constant 0 : i32
    return %c0_i32, %c0_i32_0 : i32, i32
  }
  func.func @transform_4(%arg0: i32, %arg1: i32) -> (i32, i32) {
    %c0_i32 = arith.constant 0 : i32
    %c0_i32_0 = arith.constant 0 : i32
    %c0_i32_1 = arith.constant 0 : i32
    return %c0_i32, %c0_i32_0 : i32, i32
  }
  func.func @transform_5(%arg0: i32, %arg1: i32) -> (i32, i32) {
    %c0_i32 = arith.constant 0 : i32
    %c0_i32_0 = arith.constant 0 : i32
    %c0_i32_1 = arith.constant 0 : i32
    return %c0_i32, %c0_i32_0 : i32, i32
  }
  func.func @transform_6(%arg0: i32, %arg1: i32) -> (i32, i32) {
    %c0_i32 = arith.constant 0 : i32
    %c0_i32_0 = arith.constant 0 : i32
    %c0_i32_1 = arith.constant 0 : i32
    return %c0_i32, %c0_i32_0 : i32, i32
  }
  func.func @transform_7(%arg0: i32, %arg1: i32) -> (i32, i32) {
    %c0_i32 = arith.constant 0 : i32
    %c0_i32_0 = arith.constant 0 : i32
    %c0_i32_1 = arith.constant 0 : i32
    return %c0_i32, %c0_i32_0 : i32, i32
  }
  func.func @transform_8(%arg0: i32, %arg1: i32) -> (i32, i32) {
    %c0_i32 = arith.constant 0 : i32
    %c0_i32_0 = arith.constant 0 : i32
    return %arg0, %c0_i32 : i32, i32
  }
}

</mosaic_0001>

<bundles_post_ra>
// kernel: tpu_custom_call.1
= control target key start
LH: loop header
LB: loop body
LE: loop exit
PB: predicated region body
PF: predicated region fallthrough
CT: control target
= control target key end

     0   :  { %s4691_s0 = inlined_call_operand.hbm [shape: bf16[8,8,1024], index: 0, kind: input, shape index: {}]   ;;  %s4692_s1 = inlined_call_operand.hbm [shape: bf16[256,1024], index: 1, kind: input, shape index: {}]   ;;  %s4693_s2 = inlined_call_operand.hbm [shape: bf16[256,256], index: 2, kind: input, shape index: {}]   ;;  %s4694_s3 = inlined_call_operand.vmem [shape: f32[1,256], index: 3, kind: input, shape index: {}]   ;;  %s4695_s4 = inlined_call_operand.hbm [shape: bf16[256,256], index: 4, kind: input, shape index: {}]   ;;  %s4696_s5 = inlined_call_operand.vmem [shape: f32[1,256], index: 5, kind: input, shape index: {}]   ;;  %s4697_s6 = inlined_call_operand.vmem [shape: f32[1,256], index: 6, kind: input, shape index: {}]   ;;  %s4698_s7 = inlined_call_operand.<no memory space> [shape: f32[1,1], index: 7, kind: input, shape index: {}]   ;;  %s4699_s8 = inlined_call_operand.vmem [shape: f32[8,1], index: 8, kind: output, shape index: {}]  }
   0x1   :  { %4921 = sst [smem:[#allocation138_spill]] %s4692_s1  ;;  %v13_v0 = vstv %s4698_s7 }
   0x2   :  { %14 = vst [vmem:[#allocation4] sm:$0x1] %v13_v0 }
   0x3   :  { %15 = vsyncpa [#allocation6], 0 }
   0x4   :  { %17 = vsyncpa [#allocation6 + $0x1], 0 }
   0x5   :  { %18 = vsyncpa [#allocation8], 0 }
   0x6   :  { %19 = vsyncpa [#allocation11], 0  ;;  %s3607_s29 = smov 0   ;;  %s3609_s30 = smov 0  }
   0x7   :  { %s3611_s9 = smov 0   ;;  %s3613_s10 = smov 0  }
   0x8   :  { %s3615_s11 = smov 0   ;;  %s3617_s12 = smov 0  }
   0x9 LB: > { %s2798_s7 = sadd.s32 4294967295, %s3547_s12   ;;  %p59_p0 = scmp.ne.s32.totalorder %s3531_s30, %s3527_s29  ;;  %s3547_s12 = sphi %s3617_s12, %s25_s12   ;;  %s3543_s11 = sphi %s3615_s11, %s5285_s11   ;;  %s3539_s10 = sphi %s3613_s10, %s5284_s10   ;;  %s3535_s9 = sphi %s3611_s9, %s5283_s9   ;;  %s3531_s30 = sphi %s3609_s30, %s5282_s30   ;;  %s3527_s29 = sphi %s3607_s29, %s5281_s29  }
   0xa   : > { %p3637_p1 = scmp.eq.s32.totalorder %s2798_s7, 0  ;;  %p2799_p2 = scmp.ge.s32.totalorder %s3547_s12, 1 }
   0xb   : > { %p243_p3 = scmp.lt.s32.totalorder %s3547_s12, 3  ;;  %s3549_s16 = smov [#allocation7]  }
   0xc   : > { %s4922_s13 = scalar_select %p3637_p1, 1, 0 }
   0xd   : > { %p3645_p4 = por %p3637_p1, %p59_p0  ;;  %p3649_p5 = pnand %p2799_p2, %p243_p3 }
   0xe   : > { %s255_s17 = sshll.u32 %s3549_s16, 4  ;;  %s3550_s19 = smov [#allocation9]   ;;  %s256_s17 = int_to_ptr.vmem [resolvable:$true] %s255_s17 }
   0xf   : > { %s4923_s14 = scalar_select %p3645_p4, 1, 0 }
  0x10   : > { %s4924_s15 = scalar_select %p3649_p5, 1, 0 }
  0x11   : > { %p3067_p6 = pneg %p3649_p5  ;;  %s268_s20 = sshll.u32 %s3550_s19, 4  ;;  %s3661_s20 = int_to_ptr.vmem [resolvable:$true] %s268_s20 }
  0x12   : > { %s4926_s1 = sld [smem:[#allocation138_spill]] }
  0x13   : > { %p3657_p7 = pnand %p3067_p6, %p3637_p1 }
  0x15   : > { %p3671_p9 = pneg %p3657_p7 }
  0x18   : > { %s3375_s23 = scalar_lea.hbm %s4926_s1, 16384 }
  0x19   : > { %p3376_p8 = scmp.ne.s32.totalorder %s4926_s1, %s3375_s23  ;;  %p3382_p12 = scmp.lt.u32.totalorder %s3375_s23, %s4926_s1 }
  0x1b   : > { %p3378_p10 = pnand %p3671_p9, %p3376_p8 }
  0x1d   : > { %p3379_p11 = pneg %p3378_p10 }
  0x1f   : > { %p3384_p13 = pnand %p3382_p12, %p3379_p11 }
  0x21   : > { %3387 = shalt.err (!%p3384_p13)
}
  0x22   : > { %s3388_s29 = scalar_lea.vmem %s256_s17, 16384  ;;  %p3396_p6 = scmp.lt.s32.totalorder %s256_s17, %s256_s17 }
  0x23   : > { %p3389_p0 = scmp.ne.s32.totalorder %s256_s17, %s3388_s29  ;;  %p3397_p1 = scmp.lt.s32.totalorder %s3388_s29, %s3388_s29 }
  0x25   : > { %p3391_p2 = pnand %p3389_p0, %p3671_p9  ;;  %p3398_p4 = por %p3397_p1, %p3396_p6 }
  0x27   : > { %p3392_p3 = pneg %p3391_p2 }
  0x29   : > { %p3399_p5 = pnand %p3398_p4, %p3392_p3 }
  0x2b   : > { %3402 = shalt.err (!%p3399_p5)
}
  0x2c   : > { %s4704_s7 = smov 512   ;;  %s4705_s16 = smov 32  }
  0x2d   : > { %3070 = dma.hbm_to_vmem [thread:$0]  (!%p3657_p7), %s4926_s1, 16384, %s256_s17, [#allocation8], %s4704_s7, %s4704_s7, %s4705_s16  }
  0x2e   : > { %s3403_s24 = scalar_lea.hbm %s4693_s2, 4096 }
  0x2f   : > { %p3404_p1 = scmp.ne.s32.totalorder %s4693_s2, %s3403_s24  ;;  %p3410_p8 = scmp.lt.u32.totalorder %s3403_s24, %s4693_s2 }
  0x31   : > { %p3406_p4 = pnand %p3404_p1, %p3671_p9 }
  0x33   : > { %p3407_p5 = pneg %p3406_p4 }
  0x35   : > { %p3412_p10 = pnand %p3410_p8, %p3407_p5 }
  0x37   : > { %3415 = shalt.err (!%p3412_p10)
}
  0x38   : > { %s3416_s17 = scalar_lea.vmem %s3661_s20, 4096  ;;  %p3424_p0 = scmp.lt.s32.totalorder %s3661_s20, %s3661_s20 }
  0x39   : > { %p3417_p11 = scmp.ne.s32.totalorder %s3661_s20, %s3416_s17  ;;  %p3425_p2 = scmp.lt.s32.totalorder %s3416_s17, %s3416_s17 }
  0x3b   : > { %p3419_p12 = pnand %p3417_p11, %p3671_p9  ;;  %p3426_p3 = por %p3425_p2, %p3424_p0 }
  0x3d   : > { %p3420_p13 = pneg %p3419_p12 }
  0x3f   : > { %p3427_p6 = pnand %p3426_p3, %p3420_p13 }
  0x41   : > { %3430 = shalt.err (!%p3427_p6)
}
  0x42   : > { %s3553_s19 = smov 128   ;;  %s3554_s21 = smov 8  }
  0x43   : > { %3073 = dma.hbm_to_vmem [thread:$0]  (!%p3657_p7), %s4693_s2, 4096, %s3661_s20, [#allocation8], %s3553_s19, %s3553_s19, %s3554_s21  }
  0x44   : > { %s3555_s24 = smov [#allocation10]   ;;  %s3431_s29 = scalar_lea.hbm %s4695_s4, 4096 }
  0x45   : > { %s284_s25 = sshll.u32 %s3555_s24, 4  ;;  %p3432_p1 = scmp.ne.s32.totalorder %s4695_s4, %s3431_s29  ;;  %s285_s25 = int_to_ptr.vmem [resolvable:$true] %s284_s25 }
  0x46   : > { %p3438_p8 = scmp.lt.u32.totalorder %s3431_s29, %s4695_s4 }
  0x47   : > { %p3434_p4 = pnand %p3432_p1, %p3671_p9 }
  0x49   : > { %p3435_p5 = pneg %p3434_p4 }
  0x4b   : > { %p3440_p10 = pnand %p3438_p8, %p3435_p5 }
  0x4d   : > { %3443 = shalt.err (!%p3440_p10)
}
  0x4e   : > { %s3444_s20 = scalar_lea.vmem %s285_s25, 4096  ;;  %p3452_p0 = scmp.lt.s32.totalorder %s285_s25, %s285_s25 }
  0x4f   : > { %p3445_p11 = scmp.ne.s32.totalorder %s285_s25, %s3444_s20  ;;  %p3453_p2 = scmp.lt.s32.totalorder %s3444_s20, %s3444_s20 }
  0x51   : > { %p3447_p12 = pnand %p3445_p11, %p3671_p9  ;;  %p3454_p3 = por %p3453_p2, %p3452_p0 }
  0x53   : > { %p3448_p13 = pneg %p3447_p12 }
  0x55   : > { %p3455_p6 = pnand %p3454_p3, %p3448_p13 }
  0x57   : > { %3458 = shalt.err (!%p3455_p6)
}
  0x58   : > { %3076 = dma.hbm_to_vmem [thread:$0]  (!%p3657_p7), %s4695_s4, 4096, %s285_s25, [#allocation11], %s3553_s19, %s3553_s19, %s3554_s21  }
  0x59   : > { %s34_s1 = sadd.s32 1, %s3543_s11  ;;  %s46_s26 = sadd.s32 1, %s3535_s9 }
  0x5a   : > { %p35_p9 = scmp.ge.s32.totalorder %s34_s1, 2  ;;  %p53_p1 = scmp.ne.s32.totalorder %s3535_s9, %s3531_s30 }
  0x5b   : > { %p54_p4 = scmp.eq.s32.totalorder %s3547_s12, 0  ;;  %p3084_p8 = scmp.lt.s32.totalorder %s3547_s12, 2 }
  0x5c   : > { %s5287_s1 = smov (%p35_p9, %s34_s1), 0  ;;  %s307_s16 = sand.u32 1, %s3535_s9  }
  0x5d   : > { %p55_p5 = por %p54_p4, %p53_p1  ;;  %s41_s18 = ssub.s32 %s3543_s11, %s5287_s1 }
  0x5e   : > { %p44_p10 = scmp.eq.s32.totalorder %s41_s18, 0  ;;  %s2804_s23 = sshll.u32 %s307_s16, 7 }
  0x5f   : > { %s3052_s24 = sshll.u32 %s3543_s11, 11  ;;  %s311_s21 = scalar_lea.vmem [#allocation5], %s2804_s23 }
  0x60   : > { %s3744_s27 = scalar_select %p44_p10, %s3535_s9, %s46_s26  }
  0x61   : > { %s3749_s19 = scalar_lea.hbm %s4691_s0, %s3052_s24  ;;  %s321_s25 = sshll.u32 %s311_s21, 4  ;;  %s3755_s25 = int_to_ptr.vmem [resolvable:$true] %s321_s25 }
  0x62   : > { %p3751_p7 = pnand %p3084_p8, %p55_p5  ;;  %s3757_s20 = scalar_lea.sflag [#allocation6], %s307_s16 }
  0x63   : > { %s3459_s7 = scalar_lea.hbm %s3749_s19, 2048  ;;  %s3464_s18 = scalar_lea.hbm %s4691_s0, 4096 }
  0x64   : > { %p3460_p11 = scmp.ne.s32.totalorder %s3749_s19, %s3459_s7  ;;  %p3461_p12 = pneg %p3751_p7 }
  0x65   : > { %p3465_p2 = scmp.lt.u32.totalorder %s3749_s19, %s4691_s0  ;;  %p3466_p3 = scmp.lt.u32.totalorder %s3464_s18, %s3459_s7 }
  0x66   : > { %p3462_p13 = pnand %p3461_p12, %p3460_p11  ;;  %p3468_p9 = scmp.lt.u32.totalorder %s3459_s7, %s3749_s19 }
  0x67   : > { %p3467_p6 = por %p3466_p3, %p3465_p2 }
  0x68   : > { %p3463_p0 = pneg %p3462_p13 }
  0x69   : > { %p3469_p1 = por %p3468_p9, %p3467_p6 }
  0x6b   : > { %p3470_p4 = pnand %p3469_p1, %p3463_p0 }
  0x6d   : > { %3473 = shalt.err (!%p3470_p4)
}
  0x6e   : > { %s3474_s16 = scalar_lea.vmem %s3755_s25, 2048  ;;  %s3556_s28 = smov [#allocation5]  }
  0x6f   : > { %p3475_p5 = scmp.ne.s32.totalorder %s3755_s25, %s3474_s16  ;;  %s3479_s29 = sshll.u32 %s3556_s28, 4  ;;  %s3480_s29 = int_to_ptr.vmem [resolvable:$false] %s3479_s29 }
  0x70   : > { %s3481_s21 = scalar_lea.vmem %s3480_s29, 4096  ;;  %p3482_p11 = scmp.lt.s32.totalorder %s3755_s25, %s3480_s29 }
  0x71   : > { %p3477_p8 = pnand %p3475_p5, %p3461_p12  ;;  %p3483_p13 = scmp.lt.s32.totalorder %s3481_s21, %s3474_s16 }
  0x73   : > { %p3478_p10 = pneg %p3477_p8  ;;  %p3484_p2 = por %p3483_p13, %p3482_p11 }
  0x75   : > { %p3485_p3 = pnand %p3484_p2, %p3478_p10 }
  0x77   : > { %3488 = shalt.err (!%p3485_p3)
}
  0x78   : > { %s4929_s7 = smov 32   ;;  %s4930_s22 = smov 512  }
  0x79   : > { %3080 = dma.hbm_to_vmem [thread:$0]  (!%p3751_p7), %s3749_s19, 2048, %s3755_s25, %s3757_s20, %s4930_s22, %s4930_s22, %s4929_s7  }
  0x7a   : > { %p4931_p12 = scmp.ne.s32.totalorder %s4924_s15, 0 }
  0x7c   : > { %333 = sbr.rel (%p4931_p12) target bundleno = 2106 (0x83a), region = 52 }
  0x83   : > { %s335_s26 = sand.u32 1, %s3531_s30   ;;  %p4932_p0 = scmp.ne.s32.totalorder %s4923_s14, 0 }
  0x84   : > { %s2809_s18 = sshll.u32 %s335_s26, 7  ;;  %s336_s23 = scalar_lea.sflag [#allocation6], %s335_s26 }
  0x85   : > { %s3791_s24 = scalar_lea.vmem [#allocation5], %s2809_s18 }
  0x86   : > { %3514 = dma.done.wait (%p4932_p0), %s336_s23, 2048  }
  0x87   : > { %3516 = vsyncadd (%p4932_p0), %s336_s23, 4294965248  ;;  %p4933_p6 = scmp.ne.s32.totalorder %s4922_s13, 0 }
  0x89   : > { %3518 = dma.done.wait (%p4933_p6), [#allocation8], 20480  }
  0x8a   : > { %3520 = vsyncadd (%p4933_p6), [#allocation8], 4294946816 }
  0x8b   : > { %3522 = dma.done.wait (%p4933_p6), [#allocation11], 4096  }
  0x8c   : > { %3524 = vsyncadd (%p4933_p6), [#allocation11], 4294963200  ;;  %p2813_p7 = scmp.ne.s32.totalorder %s3539_s10, 0 }
  0x8d   : > { %v3557_v1 = vmov (!%p2813_p7), 0   ;;  %v3558_v2 = vmov (!%p2813_p7), 0.0  }
  0x8e   : > { %393 = sbr.rel (%p2813_p7) target bundleno = 149 (0x95), region = 72  ;;  %394 = vst [vmem:[#allocation2] sm:$0xff] (!%p2813_p7), %v3557_v1  ;;  %395 = vst [vmem:[#allocation3] sm:$0xff] (!%p2813_p7), %v3558_v2 }
  0x8f   : > { %396 = vst [vmem:[#allocation3 + $0x8] sm:$0xff] (!%p2813_p7), %v3558_v2 }
  0x95 PF: > { %v397_v3 = vld [vmem:[#allocation7] sm:$0xff]  ;;  %v398_v5 = vld [vmem:[#allocation7 + $0x8] sm:$0xff]  ;;  %p2981_p9 = scmp.ne.s32.totalorder %s3539_s10, 1 }
  0x96   : > { %v401_v4 = vld [vmem:[#allocation7 + $0x20] sm:$0xff]  ;;  %v402_v7 = vld [vmem:[#allocation7 + $0x28] sm:$0xff]  ;;  %vm2694_vm0 = vcmask (!%p2981_p9), 7168  }
  0x97   : > { %v3806_v6 = vcombine.high %v397_v3, %v401_v4  ;;  %v3808_v8 = vcombine.low %v397_v3, %v401_v4  ;;  %v405_v9 = vld [vmem:[#allocation7 + $0x40] sm:$0xff]  ;;  %v3810_v11 = vcombine.high %v398_v5, %v402_v7  ;;  %v3812_v12 = vcombine.low %v398_v5, %v402_v7  ;;  %v406_v14 = vld [vmem:[#allocation7 + $0x48] sm:$0xff] }
  0x98   : > { %v409_v10 = vld [vmem:[#allocation7 + $0x60] sm:$0xff]  ;;  %v410_v15 = vld [vmem:[#allocation7 + $0x68] sm:$0xff] }
  0x99   : > { %v3814_v13 = vcombine.high %v405_v9, %v409_v10  ;;  %v413_v16 = vld [vmem:[#allocation7 + $0x80] sm:$0xff]  ;;  %1187 = vmatprep.subr.bf16.mxu0 %v3806_v6  ;;  %v3817_v17 = vcombine.high %v406_v14, %v410_v15  ;;  %v414_v19 = vld [vmem:[#allocation7 + $0x88] sm:$0xff]  ;;  %1228 = vmatprep.subr.bf16.mxu1 %v3810_v11  ;;  %v3821_v21 = vcombine.low %v405_v9, %v409_v10 }
  0x9a   : > { %v417_v18 = vld [vmem:[#allocation7 + $0xa0] sm:$0xff]  ;;  %v418_v20 = vld [vmem:[#allocation7 + $0xa8] sm:$0xff]  ;;  %1188 = vmatpush1.bf16.msra.mxu0 %v3808_v8  ;;  %1229 = vmatpush1.bf16.msra.mxu1 %v3812_v12  ;;  %v3825_v22 = vcombine.low %v406_v14, %v410_v15 }
  0x9b   : > { %4934 = vst [vmem:[#allocation15_spill] sm:$0xff] %v3817_v17  ;;  %4935 = vst [vmem:[#allocation16_spill] sm:$0xff] %v3821_v21  ;;  %1189 = vmatprep.subr.bf16.mxu0 %v3814_v13  ;;  %v3827_v23 = vcombine.high %v413_v16, %v417_v18  ;;  %1230 = vmatprep.subr.bf16.mxu1 %v3817_v17  ;;  %v3830_v24 = vcombine.high %v414_v19, %v418_v20  ;;  %v421_v25 = vld [vmem:[#allocation7 + $0xc0] sm:$0xff]  ;;  %v422_v27 = vld [vmem:[#allocation7 + $0xc8] sm:$0xff] }
  0x9c   : > { %4936 = vst [vmem:[#allocation17_spill] sm:$0xff] %v3825_v22  ;;  %v425_v26 = vld [vmem:[#allocation7 + $0xe0] sm:$0xff]  ;;  %v426_v28 = vld [vmem:[#allocation7 + $0xe8] sm:$0xff]  ;;  %v3833_v29 = vcombine.low %v413_v16, %v417_v18  ;;  %v3837_v30 = vcombine.low %v414_v19, %v418_v20 }
  0x9d   : > { %4937 = vst [vmem:[#allocation18_spill] sm:$0xff] %v3827_v23  ;;  %4938 = vst [vmem:[#allocation19_spill] sm:$0xff] %v3830_v24  ;;  %v3839_v31 = vcombine.high %v421_v25, %v425_v26  ;;  %v3842_v32 = vcombine.high %v422_v27, %v426_v28  ;;  %v429_v33 = vld [vmem:[#allocation7 + $0x100] sm:$0xff]  ;;  %v430_v35 = vld [vmem:[#allocation7 + $0x108] sm:$0xff]  ;;  %v3845_v37 = vcombine.low %v421_v25, %v425_v26 }
  0x9e   : > { %1190 = vmatpush1.bf16.msra.mxu0 %v3821_v21  ;;  %4939 = vst [vmem:[#allocation20_spill] sm:$0xff] %v3833_v29  ;;  %1231 = vmatpush1.bf16.msra.mxu1 %v3825_v22  ;;  %4940 = vst [vmem:[#allocation21_spill] sm:$0xff] %v3837_v30  ;;  %v433_v34 = vld [vmem:[#allocation7 + $0x120] sm:$0xff]  ;;  %v434_v36 = vld [vmem:[#allocation7 + $0x128] sm:$0xff]  ;;  %v3849_v38 = vcombine.low %v422_v27, %v426_v28 }
  0x9f   : > { %1191 = vmatprep.subr.bf16.mxu0 %v3827_v23  ;;  %4941 = vst [vmem:[#allocation22_spill] sm:$0xff] %v3839_v31  ;;  %1232 = vmatprep.subr.bf16.mxu1 %v3830_v24  ;;  %4942 = vst [vmem:[#allocation23_spill] sm:$0xff] %v3842_v32  ;;  %v3851_v39 = vcombine.high %v429_v33, %v433_v34  ;;  %v3854_v40 = vcombine.high %v430_v35, %v434_v36  ;;  %v437_v41 = vld [vmem:[#allocation7 + $0x140] sm:$0xff]  ;;  %v438_v43 = vld [vmem:[#allocation7 + $0x148] sm:$0xff] }
  0xa0   : > { %4943 = vst [vmem:[#allocation24_spill] sm:$0xff] %v3845_v37  ;;  %4944 = vst [vmem:[#allocation25_spill] sm:$0xff] %v3849_v38  ;;  %v441_v42 = vld [vmem:[#allocation7 + $0x160] sm:$0xff]  ;;  %v442_v44 = vld [vmem:[#allocation7 + $0x168] sm:$0xff]  ;;  %v3857_v45 = vcombine.low %v429_v33, %v433_v34  ;;  %v3861_v46 = vcombine.low %v430_v35, %v434_v36 }
  0xa1   : > { %4945 = vst [vmem:[#allocation26_spill] sm:$0xff] %v3851_v39  ;;  %4946 = vst [vmem:[#allocation27_spill] sm:$0xff] %v3854_v40  ;;  %v3863_v47 = vcombine.high %v437_v41, %v441_v42  ;;  %v3866_v48 = vcombine.high %v438_v43, %v442_v44  ;;  %v445_v49 = vld [vmem:[#allocation7 + $0x180] sm:$0xff]  ;;  %v446_v51 = vld [vmem:[#allocation7 + $0x188] sm:$0xff]  ;;  %v3869_v53 = vcombine.low %v437_v41, %v441_v42 }
  0xa2   : > { %1192 = vmatpush1.bf16.msra.mxu0 %v3833_v29  ;;  %1233 = vmatpush1.bf16.msra.mxu1 %v3837_v30  ;;  %4947 = vst [vmem:[#allocation28_spill] sm:$0xff] %v3857_v45  ;;  %4948 = vst [vmem:[#allocation29_spill] sm:$0xff] %v3861_v46  ;;  %v449_v50 = vld [vmem:[#allocation7 + $0x1a0] sm:$0xff]  ;;  %v450_v52 = vld [vmem:[#allocation7 + $0x1a8] sm:$0xff]  ;;  %v3873_v54 = vcombine.low %v438_v43, %v442_v44 }
  0xa3   : > { %1193 = vmatprep.subr.bf16.mxu0 %v3839_v31  ;;  %1234 = vmatprep.subr.bf16.mxu1 %v3842_v32  ;;  %4949 = vst [vmem:[#allocation30_spill] sm:$0xff] %v3863_v47  ;;  %4950 = vst [vmem:[#allocation31_spill] sm:$0xff] %v3866_v48  ;;  %v3875_v55 = vcombine.high %v445_v49, %v449_v50  ;;  %v3877_v56 = vld [vmem:[#allocation2] sm:$0xff]  ;;  %v3880_v57 = vcombine.high %v446_v51, %v450_v52 }
  0xa4   : > { %4951 = vst [vmem:[#allocation32_spill] sm:$0xff] %v3869_v53  ;;  %4952 = vst [vmem:[#allocation33_spill] sm:$0xff] %v3873_v54  ;;  %v453_v58 = vld [vmem:[#allocation7 + $0x1c0] sm:$0xff]  ;;  %v3884_v60 = vcombine.high %v3877_v56, %v3877_v56  ;;  %v454_v61 = vld [vmem:[#allocation7 + $0x1c8] sm:$0xff]  ;;  %v3887_v63 = vcombine.low %v445_v49, %v449_v50  ;;  %v3892_v0 = vcombine.low %v446_v51, %v450_v52 }
  0xa5   : > { %4953 = vst [vmem:[#allocation34_spill] sm:$0xff] %v3875_v55  ;;  %4954 = vst [vmem:[#allocation35_spill] sm:$0xff] %v3880_v57  ;;  %v457_v59 = vld [vmem:[#allocation7 + $0x1e0] sm:$0xff]  ;;  %v458_v62 = vld [vmem:[#allocation7 + $0x1e8] sm:$0xff] }
  0xa6   : > { %1194 = vmatpush1.bf16.msra.mxu0 %v3845_v37  ;;  %1235 = vmatpush1.bf16.msra.mxu1 %v3849_v38  ;;  %4955 = vst [vmem:[#allocation36_spill] sm:$0xff] %v3887_v63  ;;  %4956 = vst [vmem:[#allocation37_spill] sm:$0xff] %v3892_v0  ;;  %v3894_v1 = vcombine.high %v453_v58, %v457_v59  ;;  %v3897_v2 = vcombine.high %v454_v61, %v458_v62  ;;  %v461_v3 = vld [vmem:[#allocation7 + $0x200] sm:$0xff]  ;;  %v462_v5 = vld [vmem:[#allocation7 + $0x208] sm:$0xff] }
  0xa7   : > { %1195 = vmatprep.subr.bf16.mxu0 %v3851_v39  ;;  %1236 = vmatprep.subr.bf16.mxu1 %v3854_v40  ;;  %v465_v4 = vld [vmem:[#allocation7 + $0x220] sm:$0xff]  ;;  %v466_v7 = vld [vmem:[#allocation7 + $0x228] sm:$0xff]  ;;  %v3901_v9 = vcombine.low %v453_v58, %v457_v59  ;;  %v3905_v10 = vcombine.low %v454_v61, %v458_v62 }
  0xa8   : > { %1219 = vmatprep.mubr.bf16.mxu0 %v3884_v60  ;;  %4957 = vst [vmem:[#allocation38_spill] sm:$0xff] %v3894_v1  ;;  %4958 = vst [vmem:[#allocation39_spill] sm:$0xff] %v3897_v2  ;;  %1260 = vmatprep.mubr.bf16.mxu1 %v3884_v60  ;;  %v3907_v14 = vcombine.high %v461_v3, %v465_v4  ;;  %v3910_v15 = vcombine.high %v462_v5, %v466_v7  ;;  %v469_v16 = vld [vmem:[#allocation7 + $0x240] sm:$0xff]  ;;  %v470_v19 = vld [vmem:[#allocation7 + $0x248] sm:$0xff] }
  0xa9   : > { %4959 = vst [vmem:[#allocation40_spill] sm:$0xff] %v3901_v9  ;;  %4960 = vst [vmem:[#allocation41_spill] sm:$0xff] %v3905_v10  ;;  %v473_v18 = vld [vmem:[#allocation7 + $0x260] sm:$0xff]  ;;  %v474_v20 = vld [vmem:[#allocation7 + $0x268] sm:$0xff]  ;;  %v3913_v25 = vcombine.low %v461_v3, %v465_v4  ;;  %v3917_v26 = vcombine.low %v462_v5, %v466_v7 }
  0xaa   : > { %1196 = vmatpush1.bf16.msra.mxu0 %v3857_v45  ;;  %1237 = vmatpush1.bf16.msra.mxu1 %v3861_v46  ;;  %4961 = vst [vmem:[#allocation42_spill] sm:$0xff] %v3907_v14  ;;  %4962 = vst [vmem:[#allocation43_spill] sm:$0xff] %v3910_v15  ;;  %v3919_v27 = vcombine.high %v469_v16, %v473_v18  ;;  %v3922_v28 = vcombine.high %v470_v19, %v474_v20  ;;  %v477_v33 = vld [vmem:[#allocation7 + $0x280] sm:$0xff]  ;;  %v478_v35 = vld [vmem:[#allocation7 + $0x288] sm:$0xff] }
  0xab   : > { %1197 = vmatprep.subr.bf16.mxu0 %v3863_v47  ;;  %1238 = vmatprep.subr.bf16.mxu1 %v3866_v48  ;;  %4963 = vst [vmem:[#allocation44_spill] sm:$0xff] %v3913_v25  ;;  %4964 = vst [vmem:[#allocation45_spill] sm:$0xff] %v3917_v26  ;;  %v481_v34 = vld [vmem:[#allocation7 + $0x2a0] sm:$0xff]  ;;  %v482_v36 = vld [vmem:[#allocation7 + $0x2a8] sm:$0xff]  ;;  %v3925_v41 = vcombine.low %v469_v16, %v473_v18  ;;  %v3929_v42 = vcombine.low %v470_v19, %v474_v20 }
  0xac   : > { %4965 = vst [vmem:[#allocation46_spill] sm:$0xff] %v3919_v27  ;;  %4966 = vst [vmem:[#allocation47_spill] sm:$0xff] %v3922_v28  ;;  %v3931_v43 = vcombine.high %v477_v33, %v481_v34  ;;  %v3934_v44 = vcombine.high %v478_v35, %v482_v36  ;;  %v485_v49 = vld [vmem:[#allocation7 + $0x2c0] sm:$0xff]  ;;  %v486_v51 = vld [vmem:[#allocation7 + $0x2c8] sm:$0xff]  ;;  %v3937_v58 = vcombine.low %v477_v33, %v481_v34 }
  0xad   : > { %4967 = vst [vmem:[#allocation48_spill] sm:$0xff] %v3925_v41  ;;  %4968 = vst [vmem:[#allocation49_spill] sm:$0xff] %v3929_v42  ;;  %v489_v50 = vld [vmem:[#allocation7 + $0x2e0] sm:$0xff]  ;;  %v490_v52 = vld [vmem:[#allocation7 + $0x2e8] sm:$0xff]  ;;  %v3941_v59 = vcombine.low %v478_v35, %v482_v36 }
  0xae   : > { %1198 = vmatpush1.bf16.msra.mxu0 %v3869_v53  ;;  %1239 = vmatpush1.bf16.msra.mxu1 %v3873_v54  ;;  %4969 = vst [vmem:[#allocation50_spill] sm:$0xff] %v3931_v43  ;;  %4970 = vst [vmem:[#allocation51_spill] sm:$0xff] %v3934_v44  ;;  %v3943_v61 = vcombine.high %v485_v49, %v489_v50  ;;  %v3946_v62 = vcombine.high %v486_v51, %v490_v52  ;;  %v493_v3 = vld [vmem:[#allocation7 + $0x300] sm:$0xff]  ;;  %v494_v5 = vld [vmem:[#allocation7 + $0x308] sm:$0xff] }
  0xaf   : > { %1199 = vmatprep.subr.bf16.mxu0 %v3875_v55  ;;  %1240 = vmatprep.subr.bf16.mxu1 %v3880_v57  ;;  %4971 = vst [vmem:[#allocation52_spill] sm:$0xff] %v3937_v58  ;;  %4972 = vst [vmem:[#allocation53_spill] sm:$0xff] %v3941_v59  ;;  %v497_v4 = vld [vmem:[#allocation7 + $0x320] sm:$0xff]  ;;  %v498_v7 = vld [vmem:[#allocation7 + $0x328] sm:$0xff]  ;;  %v3949_v16 = vcombine.low %v485_v49, %v489_v50  ;;  %v3953_v18 = vcombine.low %v486_v51, %v490_v52 }
  0xb0   : > { %4973 = vst [vmem:[#allocation54_spill] sm:$0xff] %v3943_v61  ;;  %4974 = vst [vmem:[#allocation55_spill] sm:$0xff] %v3946_v62  ;;  %v3955_v19 = vcombine.high %v493_v3, %v497_v4  ;;  %v3958_v20 = vcombine.high %v494_v5, %v498_v7  ;;  %v501_v33 = vld [vmem:[#allocation7 + $0x340] sm:$0xff]  ;;  %v502_v35 = vld [vmem:[#allocation7 + $0x348] sm:$0xff]  ;;  %v3961_v49 = vcombine.low %v493_v3, %v497_v4 }
  0xb1   : > { %4975 = vst [vmem:[#allocation56_spill] sm:$0xff] %v3949_v16  ;;  %4976 = vst [vmem:[#allocation57_spill] sm:$0xff] %v3953_v18  ;;  %v505_v34 = vld [vmem:[#allocation7 + $0x360] sm:$0xff]  ;;  %v506_v36 = vld [vmem:[#allocation7 + $0x368] sm:$0xff]  ;;  %v3965_v50 = vcombine.low %v494_v5, %v498_v7 }
  0xb2   : > { %1200 = vmatpush1.bf16.msra.mxu0 %v3887_v63  ;;  %1241 = vmatpush1.bf16.msra.mxu1 %v3892_v0  ;;  %4977 = vst [vmem:[#allocation58_spill] sm:$0xff] %v3955_v19  ;;  %4978 = vst [vmem:[#allocation59_spill] sm:$0xff] %v3958_v20  ;;  %v3967_v51 = vcombine.high %v501_v33, %v505_v34  ;;  %v3970_v52 = vcombine.high %v502_v35, %v506_v36 }
  0xb3   : > { %1201 = vmatprep.subr.bf16.mxu0 %v3894_v1  ;;  %1242 = vmatprep.subr.bf16.mxu1 %v3897_v2  ;;  %4979 = vst [vmem:[#allocation60_spill] sm:$0xff] %v3961_v49  ;;  %4980 = vst [vmem:[#allocation61_spill] sm:$0xff] %v3965_v50  ;;  %v3973_v3 = vcombine.low %v501_v33, %v505_v34  ;;  %v3977_v4 = vcombine.low %v502_v35, %v506_v36 }
  0xb4   : > { %4981 = vst [vmem:[#allocation62_spill] sm:$0xff] %v3967_v51  ;;  %4982 = vst [vmem:[#allocation63_spill] sm:$0xff] %v3970_v52 }
  0xb5   : > { %4983 = vst [vmem:[#allocation64_spill] sm:$0xff] %v3973_v3  ;;  %4984 = vst [vmem:[#allocation65_spill] sm:$0xff] %v3977_v4 }
  0xb6   : > { %1202 = vmatpush1.bf16.msra.mxu0 %v3901_v9  ;;  %1243 = vmatpush1.bf16.msra.mxu1 %v3905_v10 }
  0xb7   : > { %1203 = vmatprep.subr.bf16.mxu0 %v3907_v14  ;;  %1244 = vmatprep.subr.bf16.mxu1 %v3910_v15 }
  0xba   : > { %1204 = vmatpush1.bf16.msra.mxu0 %v3913_v25  ;;  %1245 = vmatpush1.bf16.msra.mxu1 %v3917_v26 }
  0xbb   : > { %1205 = vmatprep.subr.bf16.mxu0 %v3919_v27  ;;  %1246 = vmatprep.subr.bf16.mxu1 %v3922_v28 }
  0xbe   : > { %1206 = vmatpush1.bf16.msra.mxu0 %v3925_v41  ;;  %1247 = vmatpush1.bf16.msra.mxu1 %v3929_v42 }
  0xbf   : > { %1207 = vmatprep.subr.bf16.mxu0 %v3931_v43  ;;  %1248 = vmatprep.subr.bf16.mxu1 %v3934_v44 }
  0xc2   : > { %1208 = vmatpush1.bf16.msra.mxu0 %v3937_v58  ;;  %1249 = vmatpush1.bf16.msra.mxu1 %v3941_v59  ;;  %v510_v59 = vld [vmem:[#allocation7 + $0x388] sm:$0xff] }
  0xc3   : > { %1209 = vmatprep.subr.bf16.mxu0 %v3943_v61  ;;  %1250 = vmatprep.subr.bf16.mxu1 %v3946_v62  ;;  %v509_v62 = vld [vmem:[#allocation7 + $0x380] sm:$0xff]  ;;  %v514_v58 = vld [vmem:[#allocation7 + $0x3a8] sm:$0xff] }
  0xc4   : > { %v513_v61 = vld [vmem:[#allocation7 + $0x3a0] sm:$0xff]  ;;  %v3982_v7 = vcombine.high %v510_v59, %v514_v58  ;;  %v3989_v34 = vcombine.low %v510_v59, %v514_v58 }
  0xc5   : > { %v3979_v5 = vcombine.high %v509_v62, %v513_v61  ;;  %v3985_v33 = vcombine.low %v509_v62, %v513_v61 }
  0xc6   : > { %1210 = vmatpush1.bf16.msra.mxu0 %v3949_v16  ;;  %1251 = vmatpush1.bf16.msra.mxu1 %v3953_v18  ;;  %4986 = vst [vmem:[#allocation67_spill] sm:$0xff] %v3982_v7  ;;  %v518_v18 = vld [vmem:[#allocation7 + $0x3c8] sm:$0xff]  ;;  %4988 = vst [vmem:[#allocation69_spill] sm:$0xff] %v3989_v34 }
  0xc7   : > { %1211 = vmatprep.subr.bf16.mxu0 %v3955_v19  ;;  %1252 = vmatprep.subr.bf16.mxu1 %v3958_v20  ;;  %4985 = vst [vmem:[#allocation66_spill] sm:$0xff] %v3979_v5  ;;  %v517_v20 = vld [vmem:[#allocation7 + $0x3c0] sm:$0xff]  ;;  %v522_v16 = vld [vmem:[#allocation7 + $0x3e8] sm:$0xff]  ;;  %4987 = vst [vmem:[#allocation68_spill] sm:$0xff] %v3985_v33 }
  0xc8   : > { %v521_v19 = vld [vmem:[#allocation7 + $0x3e0] sm:$0xff]  ;;  %v3994_v36 = vcombine.high %v518_v18, %v522_v16  ;;  %v4001_v58 = vcombine.low %v518_v18, %v522_v16 }
  0xc9   : > { %v3991_v35 = vcombine.high %v517_v20, %v521_v19  ;;  %v3997_v61 = vcombine.low %v517_v20, %v521_v19  ;;  %v408_v19 = vld [vmem:[#allocation7 + $0x58] sm:$0xff] }
  0xca   : > { %1212 = vmatpush1.bf16.msra.mxu0 %v3961_v49  ;;  %1253 = vmatpush1.bf16.msra.mxu1 %v3965_v50  ;;  %4990 = vst [vmem:[#allocation71_spill] sm:$0xff] %v3994_v36  ;;  %v400_v50 = vld [vmem:[#allocation7 + $0x18] sm:$0xff]  ;;  %4992 = vst [vmem:[#allocation73_spill] sm:$0xff] %v4001_v58 }
  0xcb   : > { %1213 = vmatprep.subr.bf16.mxu0 %v3967_v51  ;;  %1254 = vmatprep.subr.bf16.mxu1 %v3970_v52  ;;  %4989 = vst [vmem:[#allocation70_spill] sm:$0xff] %v3991_v35  ;;  %v399_v52 = vld [vmem:[#allocation7 + $0x10] sm:$0xff]  ;;  %v404_v49 = vld [vmem:[#allocation7 + $0x38] sm:$0xff]  ;;  %4991 = vst [vmem:[#allocation72_spill] sm:$0xff] %v3997_v61 }
  0xcc   : > { %v403_v51 = vld [vmem:[#allocation7 + $0x30] sm:$0xff]  ;;  %v4006_v62 = vcombine.high %v400_v50, %v404_v49  ;;  %v412_v20 = vld [vmem:[#allocation7 + $0x78] sm:$0xff]  ;;  %v4017_v16 = vcombine.low %v400_v50, %v404_v49 }
  0xcd   : > { %v4003_v59 = vcombine.high %v399_v52, %v403_v51  ;;  %v4031_v49 = vcombine.low %v408_v19, %v412_v20 }
  0xce   : > { %1214 = vmatpush1.bf16.msra.mxu0 %v3973_v3  ;;  %1255 = vmatpush1.bf16.msra.mxu1 %v3977_v4  ;;  %4994 = vst [vmem:[#allocation75_spill] sm:$0xff] %v4006_v62  ;;  %v4010_v4 = vcombine.low %v3877_v56, %v3877_v56  ;;  %4996 = vst [vmem:[#allocation77_spill] sm:$0xff] %v4017_v16  ;;  %v415_v56 = vld [vmem:[#allocation7 + $0x90] sm:$0xff] }
  0xcf   : > { %1215 = vmatprep.subr.bf16.mxu0 %v3979_v5  ;;  %1256 = vmatprep.subr.bf16.mxu1 %v3982_v7  ;;  %4993 = vst [vmem:[#allocation74_spill] sm:$0xff] %v4003_v59  ;;  %v407_v7 = vld [vmem:[#allocation7 + $0x50] sm:$0xff]  ;;  %5000 = vst [vmem:[#allocation81_spill] sm:$0xff] %v4031_v49 }
  0xd0   : > { %v411_v5 = vld [vmem:[#allocation7 + $0x70] sm:$0xff] }
  0xd1   : > { %v4019_v18 = vcombine.high %v407_v7, %v411_v5 }
  0xd2   : > { %1216 = vmatpush1.bf16.msra.mxu0 %v3985_v33  ;;  %1257 = vmatpush1.bf16.msra.mxu1 %v3989_v34  ;;  %v4013_v34 = vcombine.low %v399_v52, %v403_v51  ;;  %v416_v33 = vld [vmem:[#allocation7 + $0x98] sm:$0xff]  ;;  %v4027_v51 = vcombine.low %v407_v7, %v411_v5 }
  0xd3   : > { %1217 = vmatprep.subr.bf16.mxu0 %v3991_v35  ;;  %1258 = vmatprep.subr.bf16.mxu1 %v3994_v36  ;;  %4997 = vst [vmem:[#allocation78_spill] sm:$0xff] %v4019_v18  ;;  %v4022_v36 = vcombine.high %v408_v19, %v412_v20  ;;  %v419_v35 = vld [vmem:[#allocation7 + $0xb0] sm:$0xff] }
  0xd4   : > { %4995 = vst [vmem:[#allocation76_spill] sm:$0xff] %v4013_v34  ;;  %4999 = vst [vmem:[#allocation80_spill] sm:$0xff] %v4027_v51  ;;  %v4033_v50 = vcombine.high %v415_v56, %v419_v35  ;;  %v4041_v5 = vcombine.low %v415_v56, %v419_v35 }
  0xd5   : > { %4998 = vst [vmem:[#allocation79_spill] sm:$0xff] %v4022_v36 }
  0xd6   : > { %1218 = vmatpush1.bf16.msra.mxu0 %v3997_v61  ;;  %1259 = vmatpush1.bf16.msra.mxu1 %v4001_v58  ;;  %v420_v61 = vld [vmem:[#allocation7 + $0xb8] sm:$0xff]  ;;  %5001 = vst [vmem:[#allocation82_spill] sm:$0xff] %v4033_v50  ;;  %5003 = vst [vmem:[#allocation84_spill] sm:$0xff] %v4041_v5 }
  0xd7   : > { %1269 = vmatprep.subr.bf16.mxu0 %v4003_v59  ;;  %1310 = vmatprep.subr.bf16.mxu1 %v4006_v62  ;;  %v4036_v52 = vcombine.high %v416_v33, %v420_v61  ;;  %v423_v62 = vld [vmem:[#allocation7 + $0xd0] sm:$0xff]  ;;  %v424_v58 = vld [vmem:[#allocation7 + $0xd8] sm:$0xff]  ;;  %v4045_v7 = vcombine.low %v416_v33, %v420_v61 }
  0xd8   : > { %v427_v59 = vld [vmem:[#allocation7 + $0xf0] sm:$0xff] }
  0xd9   : > { %1220 = vmatmul.mubr.bf16.vlgmr.msra.gmra.mrb[0].mxu0 %v4010_v4  ;;  %1261 = vmatmul.mubr.bf16.vlgmr.msra.gmra.mrb[0].mxu1 %v4010_v4  ;;  %5002 = vst [vmem:[#allocation83_spill] sm:$0xff] %v4036_v52  ;;  %5004 = vst [vmem:[#allocation85_spill] sm:$0xff] %v4045_v7  ;;  %v4047_v19 = vcombine.high %v423_v62, %v427_v59  ;;  %v4053_v35 = vcombine.low %v423_v62, %v427_v59 }
  0xda   : > { %1270 = vmatpush1.bf16.msra.mxu0 %v4013_v34  ;;  %1311 = vmatpush1.bf16.msra.mxu1 %v4017_v16  ;;  %v428_v34 = vld [vmem:[#allocation7 + $0xf8] sm:$0xff] }
  0xdb   : > { %1271 = vmatprep.subr.bf16.mxu0 %v4019_v18  ;;  %1312 = vmatprep.subr.bf16.mxu1 %v4022_v36  ;;  %5005 = vst [vmem:[#allocation86_spill] sm:$0xff] %v4047_v19  ;;  %v4050_v20 = vcombine.high %v424_v58, %v428_v34  ;;  %v431_v36 = vld [vmem:[#allocation7 + $0x110] sm:$0xff]  ;;  %v432_v16 = vld [vmem:[#allocation7 + $0x118] sm:$0xff]  ;;  %5007 = vst [vmem:[#allocation88_spill] sm:$0xff] %v4053_v35  ;;  %v4057_v33 = vcombine.low %v424_v58, %v428_v34 }
  0xdc   : > { %1301 = vmatprep.mubr.bf16.mxu0 %v3884_v60  ;;  %1342 = vmatprep.mubr.bf16.mxu1 %v3884_v60  ;;  %v435_v18 = vld [vmem:[#allocation7 + $0x130] sm:$0xff]  ;;  %v436_v60 = vld [vmem:[#allocation7 + $0x138] sm:$0xff] }
  0xdd   : > { %5006 = vst [vmem:[#allocation87_spill] sm:$0xff] %v4050_v20  ;;  %5008 = vst [vmem:[#allocation89_spill] sm:$0xff] %v4057_v33  ;;  %v4059_v61 = vcombine.high %v431_v36, %v435_v18  ;;  %v4062_v56 = vcombine.high %v432_v16, %v436_v60  ;;  %v4065_v59 = vcombine.low %v431_v36, %v435_v18 }
  0xde   : > { %1272 = vmatpush1.bf16.msra.mxu0 %v4027_v51  ;;  %1313 = vmatpush1.bf16.msra.mxu1 %v4031_v49  ;;  %v440_v49 = vld [vmem:[#allocation7 + $0x158] sm:$0xff]  ;;  %v4069_v34 = vcombine.low %v432_v16, %v436_v60 }
  0xdf   : > { %1273 = vmatprep.subr.bf16.mxu0 %v4033_v50  ;;  %1314 = vmatprep.subr.bf16.mxu1 %v4036_v52  ;;  %5009 = vst [vmem:[#allocation90_spill] sm:$0xff] %v4059_v61  ;;  %5010 = vst [vmem:[#allocation91_spill] sm:$0xff] %v4062_v56  ;;  %v439_v52 = vld [vmem:[#allocation7 + $0x150] sm:$0xff]  ;;  %v444_v51 = vld [vmem:[#allocation7 + $0x178] sm:$0xff] }
  0xe0   : > { %v443_v50 = vld [vmem:[#allocation7 + $0x170] sm:$0xff]  ;;  %5011 = vst [vmem:[#allocation92_spill] sm:$0xff] %v4065_v59  ;;  %5012 = vst [vmem:[#allocation93_spill] sm:$0xff] %v4069_v34  ;;  %v4074_v62 = vcombine.high %v440_v49, %v444_v51  ;;  %v4081_v16 = vcombine.low %v440_v49, %v444_v51 }
  0xe1   : > { %v4071_v58 = vcombine.high %v439_v52, %v443_v50  ;;  %v4077_v36 = vcombine.low %v439_v52, %v443_v50 }
  0xe2   : > { %1274 = vmatpush1.bf16.msra.mxu0 %v4041_v5  ;;  %1315 = vmatpush1.bf16.msra.mxu1 %v4045_v7  ;;  %5014 = vst [vmem:[#allocation95_spill] sm:$0xff] %v4074_v62  ;;  %v448_v7 = vld [vmem:[#allocation7 + $0x198] sm:$0xff]  ;;  %5016 = vst [vmem:[#allocation97_spill] sm:$0xff] %v4081_v16 }
  0xe3   : > { %1275 = vmatprep.subr.bf16.mxu0 %v4047_v19  ;;  %1316 = vmatprep.subr.bf16.mxu1 %v4050_v20  ;;  %5013 = vst [vmem:[#allocation94_spill] sm:$0xff] %v4071_v58  ;;  %v447_v20 = vld [vmem:[#allocation7 + $0x190] sm:$0xff]  ;;  %v452_v5 = vld [vmem:[#allocation7 + $0x1b8] sm:$0xff]  ;;  %5015 = vst [vmem:[#allocation96_spill] sm:$0xff] %v4077_v36 }
  0xe4   : > { %v451_v19 = vld [vmem:[#allocation7 + $0x1b0] sm:$0xff]  ;;  %v4086_v60 = vcombine.high %v448_v7, %v452_v5  ;;  %v4093_v51 = vcombine.low %v448_v7, %v452_v5 }
  0xe5   : > { %v4083_v18 = vcombine.high %v447_v20, %v451_v19  ;;  %v4089_v50 = vcombine.low %v447_v20, %v451_v19 }
  0xe6   : > { %1276 = vmatpush1.bf16.msra.mxu0 %v4053_v35  ;;  %1317 = vmatpush1.bf16.msra.mxu1 %v4057_v33  ;;  %5018 = vst [vmem:[#allocation99_spill] sm:$0xff] %v4086_v60  ;;  %v456_v33 = vld [vmem:[#allocation7 + $0x1d8] sm:$0xff]  ;;  %5020 = vst [vmem:[#allocation101_spill] sm:$0xff] %v4093_v51 }
  0xe7   : > { %1277 = vmatprep.subr.bf16.mxu0 %v4059_v61  ;;  %1318 = vmatprep.subr.bf16.mxu1 %v4062_v56  ;;  %5017 = vst [vmem:[#allocation98_spill] sm:$0xff] %v4083_v18  ;;  %v455_v56 = vld [vmem:[#allocation7 + $0x1d0] sm:$0xff]  ;;  %v460_v35 = vld [vmem:[#allocation7 + $0x1f8] sm:$0xff]  ;;  %5019 = vst [vmem:[#allocation100_spill] sm:$0xff] %v4089_v50 }
  0xe8   : > { %v459_v61 = vld [vmem:[#allocation7 + $0x1f0] sm:$0xff]  ;;  %v4098_v52 = vcombine.high %v456_v33, %v460_v35  ;;  %v4105_v5 = vcombine.low %v456_v33, %v460_v35 }
  0xe9   : > { %v4095_v49 = vcombine.high %v455_v56, %v459_v61  ;;  %v4101_v19 = vcombine.low %v455_v56, %v459_v61 }
  0xea   : > { %1278 = vmatpush1.bf16.msra.mxu0 %v4065_v59  ;;  %1319 = vmatpush1.bf16.msra.mxu1 %v4069_v34  ;;  %5022 = vst [vmem:[#allocation103_spill] sm:$0xff] %v4098_v52  ;;  %v464_v34 = vld [vmem:[#allocation7 + $0x218] sm:$0xff]  ;;  %5024 = vst [vmem:[#allocation105_spill] sm:$0xff] %v4105_v5 }
  0xeb   : > { %1279 = vmatprep.subr.bf16.mxu0 %v4071_v58  ;;  %1320 = vmatprep.subr.bf16.mxu1 %v4074_v62  ;;  %5021 = vst [vmem:[#allocation102_spill] sm:$0xff] %v4095_v49  ;;  %v463_v62 = vld [vmem:[#allocation7 + $0x210] sm:$0xff]  ;;  %v468_v59 = vld [vmem:[#allocation7 + $0x238] sm:$0xff]  ;;  %5023 = vst [vmem:[#allocation104_spill] sm:$0xff] %v4101_v19 }
  0xec   : > { %v467_v58 = vld [vmem:[#allocation7 + $0x230] sm:$0xff]  ;;  %v4110_v20 = vcombine.high %v464_v34, %v468_v59  ;;  %v4117_v35 = vcombine.low %v464_v34, %v468_v59 }
  0xed   : > { %v4107_v7 = vcombine.high %v463_v62, %v467_v58  ;;  %v4113_v61 = vcombine.low %v463_v62, %v467_v58 }
  0xee   : > { %1280 = vmatpush1.bf16.msra.mxu0 %v4077_v36  ;;  %1321 = vmatpush1.bf16.msra.mxu1 %v4081_v16  ;;  %5026 = vst [vmem:[#allocation107_spill] sm:$0xff] %v4110_v20  ;;  %v472_v16 = vld [vmem:[#allocation7 + $0x258] sm:$0xff]  ;;  %5028 = vst [vmem:[#allocation109_spill] sm:$0xff] %v4117_v35 }
  0xef   : > { %1281 = vmatprep.subr.bf16.mxu0 %v4083_v18  ;;  %1322 = vmatprep.subr.bf16.mxu1 %v4086_v60  ;;  %5025 = vst [vmem:[#allocation106_spill] sm:$0xff] %v4107_v7  ;;  %v471_v60 = vld [vmem:[#allocation7 + $0x250] sm:$0xff]  ;;  %v476_v36 = vld [vmem:[#allocation7 + $0x278] sm:$0xff]  ;;  %5027 = vst [vmem:[#allocation108_spill] sm:$0xff] %v4113_v61 }
  0xf0   : > { %v475_v18 = vld [vmem:[#allocation7 + $0x270] sm:$0xff]  ;;  %v4122_v56 = vcombine.high %v472_v16, %v476_v36  ;;  %v4129_v59 = vcombine.low %v472_v16, %v476_v36 }
  0xf1   : > { %v4119_v33 = vcombine.high %v471_v60, %v475_v18  ;;  %v4125_v58 = vcombine.low %v471_v60, %v475_v18 }
  0xf2   : > { %1282 = vmatpush1.bf16.msra.mxu0 %v4089_v50  ;;  %1323 = vmatpush1.bf16.msra.mxu1 %v4093_v51  ;;  %5030 = vst [vmem:[#allocation111_spill] sm:$0xff] %v4122_v56  ;;  %v480_v51 = vld [vmem:[#allocation7 + $0x298] sm:$0xff]  ;;  %5032 = vst [vmem:[#allocation113_spill] sm:$0xff] %v4129_v59 }
  0xf3   : > { %1283 = vmatprep.subr.bf16.mxu0 %v4095_v49  ;;  %1324 = vmatprep.subr.bf16.mxu1 %v4098_v52  ;;  %5029 = vst [vmem:[#allocation110_spill] sm:$0xff] %v4119_v33  ;;  %v479_v52 = vld [vmem:[#allocation7 + $0x290] sm:$0xff]  ;;  %v484_v50 = vld [vmem:[#allocation7 + $0x2b8] sm:$0xff]  ;;  %5031 = vst [vmem:[#allocation112_spill] sm:$0xff] %v4125_v58 }
  0xf4   : > { %v483_v49 = vld [vmem:[#allocation7 + $0x2b0] sm:$0xff]  ;;  %v4134_v62 = vcombine.high %v480_v51, %v484_v50  ;;  %v4141_v36 = vcombine.low %v480_v51, %v484_v50 }
  0xf5   : > { %v4131_v34 = vcombine.high %v479_v52, %v483_v49  ;;  %v4137_v18 = vcombine.low %v479_v52, %v483_v49 }
  0xf6   : > { %1284 = vmatpush1.bf16.msra.mxu0 %v4101_v19  ;;  %1325 = vmatpush1.bf16.msra.mxu1 %v4105_v5  ;;  %5034 = vst [vmem:[#allocation115_spill] sm:$0xff] %v4134_v62  ;;  %v488_v5 = vld [vmem:[#allocation7 + $0x2d8] sm:$0xff]  ;;  %5036 = vst [vmem:[#allocation117_spill] sm:$0xff] %v4141_v36 }
  0xf7   : > { %1285 = vmatprep.subr.bf16.mxu0 %v4107_v7  ;;  %1326 = vmatprep.subr.bf16.mxu1 %v4110_v20  ;;  %5033 = vst [vmem:[#allocation114_spill] sm:$0xff] %v4131_v34  ;;  %v487_v20 = vld [vmem:[#allocation7 + $0x2d0] sm:$0xff]  ;;  %v492_v19 = vld [vmem:[#allocation7 + $0x2f8] sm:$0xff]  ;;  %5035 = vst [vmem:[#allocation116_spill] sm:$0xff] %v4137_v18 }
  0xf8   : > { %v491_v7 = vld [vmem:[#allocation7 + $0x2f0] sm:$0xff]  ;;  %v4146_v60 = vcombine.high %v488_v5, %v492_v19  ;;  %v4153_v50 = vcombine.low %v488_v5, %v492_v19 }
  0xf9   : > { %v4143_v16 = vcombine.high %v487_v20, %v491_v7  ;;  %v4149_v49 = vcombine.low %v487_v20, %v491_v7 }
  0xfa   : > { %1286 = vmatpush1.bf16.msra.mxu0 %v4113_v61  ;;  %1327 = vmatpush1.bf16.msra.mxu1 %v4117_v35  ;;  %5038 = vst [vmem:[#allocation119_spill] sm:$0xff] %v4146_v60  ;;  %v496_v35 = vld [vmem:[#allocation7 + $0x318] sm:$0xff]  ;;  %5040 = vst [vmem:[#allocation121_spill] sm:$0xff] %v4153_v50 }
  0xfb   : > { %1287 = vmatprep.subr.bf16.mxu0 %v4119_v33  ;;  %1328 = vmatprep.subr.bf16.mxu1 %v4122_v56  ;;  %5037 = vst [vmem:[#allocation118_spill] sm:$0xff] %v4143_v16  ;;  %v495_v56 = vld [vmem:[#allocation7 + $0x310] sm:$0xff]  ;;  %v500_v61 = vld [vmem:[#allocation7 + $0x338] sm:$0xff]  ;;  %5039 = vst [vmem:[#allocation120_spill] sm:$0xff] %v4149_v49 }
  0xfc   : > { %v499_v33 = vld [vmem:[#allocation7 + $0x330] sm:$0xff]  ;;  %v4158_v52 = vcombine.high %v496_v35, %v500_v61  ;;  %v4165_v19 = vcombine.low %v496_v35, %v500_v61 }
  0xfd   : > { %v4155_v51 = vcombine.high %v495_v56, %v499_v33  ;;  %v4161_v7 = vcombine.low %v495_v56, %v499_v33 }
  0xfe   : > { %1288 = vmatpush1.bf16.msra.mxu0 %v4125_v58  ;;  %1329 = vmatpush1.bf16.msra.mxu1 %v4129_v59  ;;  %5042 = vst [vmem:[#allocation123_spill] sm:$0xff] %v4158_v52  ;;  %v504_v59 = vld [vmem:[#allocation7 + $0x358] sm:$0xff]  ;;  %5044 = vst [vmem:[#allocation125_spill] sm:$0xff] %v4165_v19 }
  0xff   : > { %1289 = vmatprep.subr.bf16.mxu0 %v4131_v34  ;;  %1330 = vmatprep.subr.bf16.mxu1 %v4134_v62  ;;  %5041 = vst [vmem:[#allocation122_spill] sm:$0xff] %v4155_v51  ;;  %v503_v62 = vld [vmem:[#allocation7 + $0x350] sm:$0xff]  ;;  %v508_v58 = vld [vmem:[#allocation7 + $0x378] sm:$0xff]  ;;  %5043 = vst [vmem:[#allocation124_spill] sm:$0xff] %v4161_v7 }
 0x100   : > { %v507_v34 = vld [vmem:[#allocation7 + $0x370] sm:$0xff]  ;;  %v4170_v20 = vcombine.high %v504_v59, %v508_v58  ;;  %v4177_v61 = vcombine.low %v504_v59, %v508_v58 }
 0x101   : > { %v4167_v5 = vcombine.high %v503_v62, %v507_v34  ;;  %v4173_v33 = vcombine.low %v503_v62, %v507_v34 }
 0x102   : > { %1290 = vmatpush1.bf16.msra.mxu0 %v4137_v18  ;;  %1331 = vmatpush1.bf16.msra.mxu1 %v4141_v36  ;;  %5046 = vst [vmem:[#allocation127_spill] sm:$0xff] %v4170_v20  ;;  %v512_v36 = vld [vmem:[#allocation7 + $0x398] sm:$0xff]  ;;  %5048 = vst [vmem:[#allocation129_spill] sm:$0xff] %v4177_v61 }
 0x103   : > { %1291 = vmatprep.subr.bf16.mxu0 %v4143_v16  ;;  %1332 = vmatprep.subr.bf16.mxu1 %v4146_v60  ;;  %5045 = vst [vmem:[#allocation126_spill] sm:$0xff] %v4167_v5  ;;  %v511_v60 = vld [vmem:[#allocation7 + $0x390] sm:$0xff]  ;;  %v516_v18 = vld [vmem:[#allocation7 + $0x3b8] sm:$0xff]  ;;  %5047 = vst [vmem:[#allocation128_spill] sm:$0xff] %v4173_v33 }
 0x104   : > { %v515_v16 = vld [vmem:[#allocation7 + $0x3b0] sm:$0xff]  ;;  %v4182_v56 = vcombine.high %v512_v36, %v516_v18  ;;  %v4189_v58 = vcombine.low %v512_v36, %v516_v18  ;;  %v5059_v36 = vld [vmem:[#allocation54_spill] sm:$0xff] }
 0x105   : > { %v4179_v35 = vcombine.high %v511_v60, %v515_v16  ;;  %v4185_v34 = vcombine.low %v511_v60, %v515_v16  ;;  %v5058_v18 = vld [vmem:[#allocation53_spill] sm:$0xff]  ;;  %v5060_v60 = vld [vmem:[#allocation55_spill] sm:$0xff] }
 0x106   : > { %1292 = vmatpush1.bf16.msra.mxu0 %v4149_v49  ;;  %1333 = vmatpush1.bf16.msra.mxu1 %v4153_v50  ;;  %5050 = vst [vmem:[#allocation131_spill] sm:$0xff] %v4182_v56  ;;  %v520_v50 = vld [vmem:[#allocation7 + $0x3d8] sm:$0xff]  ;;  %5052 = vst [vmem:[#allocation133_spill] sm:$0xff] %v4189_v58 }
 0x107   : > { %1293 = vmatprep.subr.bf16.mxu0 %v4155_v51  ;;  %1334 = vmatprep.subr.bf16.mxu1 %v4158_v52  ;;  %5049 = vst [vmem:[#allocation130_spill] sm:$0xff] %v4179_v35  ;;  %v519_v52 = vld [vmem:[#allocation7 + $0x3d0] sm:$0xff]  ;;  %v524_v49 = vld [vmem:[#allocation7 + $0x3f8] sm:$0xff]  ;;  %5051 = vst [vmem:[#allocation132_spill] sm:$0xff] %v4185_v34 }
 0x108   : > { %v523_v51 = vld [vmem:[#allocation7 + $0x3f0] sm:$0xff]  ;;  %v4194_v62 = vcombine.high %v520_v50, %v524_v49  ;;  %v4201_v16 = vcombine.low %v520_v50, %v524_v49  ;;  %v5061_v49 = vld [vmem:[#allocation56_spill] sm:$0xff] }
 0x109   : > { %v4191_v59 = vcombine.high %v519_v52, %v523_v51  ;;  %v5062_v50 = vld [vmem:[#allocation57_spill] sm:$0xff] }
 0x10a   : > { %1294 = vmatpush1.bf16.msra.mxu0 %v4161_v7  ;;  %1335 = vmatpush1.bf16.msra.mxu1 %v4165_v19  ;;  %5054 = vst [vmem:[#allocation135_spill] sm:$0xff] %v4194_v62  ;;  %5056 = vst [vmem:[#allocation137_spill] sm:$0xff] %v4201_v16 }
 0x10b   : > { %1295 = vmatprep.subr.bf16.mxu0 %v4167_v5  ;;  %1336 = vmatprep.subr.bf16.mxu1 %v4170_v20  ;;  %5053 = vst [vmem:[#allocation134_spill] sm:$0xff] %v4191_v59  ;;  %v4197_v20 = vcombine.low %v519_v52, %v523_v51  ;;  %v5063_v51 = vld [vmem:[#allocation58_spill] sm:$0xff]  ;;  %v5064_v52 = vld [vmem:[#allocation59_spill] sm:$0xff] }
 0x10d   : > { %5055 = vst [vmem:[#allocation136_spill] sm:$0xff] %v4197_v20 }
 0x10e   : > { %1296 = vmatpush1.bf16.msra.mxu0 %v4173_v33  ;;  %1337 = vmatpush1.bf16.msra.mxu1 %v4177_v61 }
 0x10f   : > { %1297 = vmatprep.subr.bf16.mxu0 %v4179_v35  ;;  %1338 = vmatprep.subr.bf16.mxu1 %v4182_v56 }
 0x112   : > { %1298 = vmatpush1.bf16.msra.mxu0 %v4185_v34  ;;  %1339 = vmatpush1.bf16.msra.mxu1 %v4189_v58 }
 0x113   : > { %1299 = vmatprep.subr.bf16.mxu0 %v4191_v59  ;;  %1340 = vmatprep.subr.bf16.mxu1 %v4194_v62 }
 0x116   : > { %1300 = vmatpush1.bf16.msra.mxu0 %v4197_v20  ;;  %1341 = vmatpush1.bf16.msra.mxu1 %v4201_v16 }
 0x117   : > { %1432 = vmatprep.subr.bf16.mxu0 %v3806_v6  ;;  %1473 = vmatprep.subr.bf16.mxu1 %v3810_v11 }
 0x119   : > { %1302 = vmatmul.mubr.bf16.vlgmr.msra.gmra.mrb[4].mxu0 %v4010_v4  ;;  %1343 = vmatmul.mubr.bf16.vlgmr.msra.gmra.mrb[4].mxu1 %v4010_v4  ;;  %v5057_v4 = vld [vmem:[#allocation52_spill] sm:$0xff] }
 0x11a   : > { %1433 = vmatpush1.bf16.msra.mxu0 %v3808_v8  ;;  %1474 = vmatpush1.bf16.msra.mxu1 %v3812_v12 }
 0x11b   : > { %1434 = vmatprep.subr.bf16.mxu0 %v3814_v13  ;;  %1475 = vmatprep.subr.bf16.mxu1 %v3817_v17 }
 0x11e   : > { %1435 = vmatpush1.bf16.msra.mxu0 %v3821_v21  ;;  %1476 = vmatpush1.bf16.msra.mxu1 %v3825_v22 }
 0x11f   : > { %1436 = vmatprep.subr.bf16.mxu0 %v3827_v23  ;;  %1477 = vmatprep.subr.bf16.mxu1 %v3830_v24 }
 0x122   : > { %1437 = vmatpush1.bf16.msra.mxu0 %v3833_v29  ;;  %1478 = vmatpush1.bf16.msra.mxu1 %v3837_v30 }
 0x123   : > { %1438 = vmatprep.subr.bf16.mxu0 %v3839_v31  ;;  %1479 = vmatprep.subr.bf16.mxu1 %v3842_v32 }
 0x126   : > { %1439 = vmatpush1.bf16.msra.mxu0 %v3845_v37  ;;  %1480 = vmatpush1.bf16.msra.mxu1 %v3849_v38 }
 0x127   : > { %1440 = vmatprep.subr.bf16.mxu0 %v3851_v39  ;;  %1481 = vmatprep.subr.bf16.mxu1 %v3854_v40 }
 0x12a   : > { %1441 = vmatpush1.bf16.msra.mxu0 %v3857_v45  ;;  %1482 = vmatpush1.bf16.msra.mxu1 %v3861_v46 }
 0x12b   : > { %1442 = vmatprep.subr.bf16.mxu0 %v3863_v47  ;;  %1483 = vmatprep.subr.bf16.mxu1 %v3866_v48 }
 0x12e   : > { %1443 = vmatpush1.bf16.msra.mxu0 %v3869_v53  ;;  %1484 = vmatpush1.bf16.msra.mxu1 %v3873_v54 }
 0x12f   : > { %1444 = vmatprep.subr.bf16.mxu0 %v3875_v55  ;;  %1485 = vmatprep.subr.bf16.mxu1 %v3880_v57 }
 0x132   : > { %1445 = vmatpush1.bf16.msra.mxu0 %v3887_v63  ;;  %1486 = vmatpush1.bf16.msra.mxu1 %v3892_v0 }
 0x133   : > { %1446 = vmatprep.subr.bf16.mxu0 %v3894_v1  ;;  %1487 = vmatprep.subr.bf16.mxu1 %v3897_v2 }
 0x136   : > { %1447 = vmatpush1.bf16.msra.mxu0 %v3901_v9  ;;  %1488 = vmatpush1.bf16.msra.mxu1 %v3905_v10 }
 0x137   : > { %1448 = vmatprep.subr.bf16.mxu0 %v3907_v14  ;;  %1489 = vmatprep.subr.bf16.mxu1 %v3910_v15 }
 0x13a   : > { %1449 = vmatpush1.bf16.msra.mxu0 %v3913_v25  ;;  %1490 = vmatpush1.bf16.msra.mxu1 %v3917_v26  ;;  %v528_v26 = vld [vmem:[%s3791_s24] sm:$0xff] }
 0x13b   : > { %1450 = vmatprep.subr.bf16.mxu0 %v3919_v27  ;;  %1491 = vmatprep.subr.bf16.mxu1 %v3922_v28  ;;  %v532_v25 = vunpack.c.l.bf16 %v528_v26  ;;  %v533_v15 = vunpack.c.h.bf16 %v528_v26 }
 0x13e   : > { %1451 = vmatpush1.bf16.msra.mxu0 %v3925_v41  ;;  %1492 = vmatpush1.bf16.msra.mxu1 %v3929_v42  ;;  %v5065_v42 = vld [vmem:[#allocation60_spill] sm:$0xff] }
 0x13f   : > { %1452 = vmatprep.subr.bf16.mxu0 %v3931_v43  ;;  %1493 = vmatprep.subr.bf16.mxu1 %v3934_v44  ;;  %v5066_v43 = vld [vmem:[#allocation61_spill] sm:$0xff]  ;;  %v5067_v44 = vld [vmem:[#allocation62_spill] sm:$0xff] }
 0x142   : > { %1453 = vmatpush1.bf16.msra.mxu0 %v5057_v4  ;;  %1494 = vmatpush1.bf16.msra.mxu1 %v5058_v18  ;;  %v5068_v4 = vld [vmem:[#allocation63_spill] sm:$0xff] }
 0x143   : > { %1454 = vmatprep.subr.bf16.mxu0 %v5059_v36  ;;  %1495 = vmatprep.subr.bf16.mxu1 %v5060_v60  ;;  %v5069_v36 = vld [vmem:[#allocation65_spill] sm:$0xff]  ;;  %v5070_v60 = vld [vmem:[#allocation66_spill] sm:$0xff] }
 0x146   : > { %1455 = vmatpush1.bf16.msra.mxu0 %v5061_v49  ;;  %1496 = vmatpush1.bf16.msra.mxu1 %v5062_v50  ;;  %v5071_v49 = vld [vmem:[#allocation67_spill] sm:$0xff]  ;;  %v5072_v50 = vld [vmem:[#allocation68_spill] sm:$0xff] }
 0x147   : > { %1456 = vmatprep.subr.bf16.mxu0 %v5063_v51  ;;  %1497 = vmatprep.subr.bf16.mxu1 %v5064_v52  ;;  %v5073_v51 = vld [vmem:[#allocation69_spill] sm:$0xff] }
 0x14a   : > { %1457 = vmatpush1.bf16.msra.mxu0 %v5065_v42  ;;  %1498 = vmatpush1.bf16.msra.mxu1 %v5066_v43  ;;  %v5074_v42 = vld [vmem:[#allocation70_spill] sm:$0xff]  ;;  %v5075_v43 = vld [vmem:[#allocation71_spill] sm:$0xff] }
 0x14b   : > { %1458 = vmatprep.subr.bf16.mxu0 %v5067_v44  ;;  %1499 = vmatprep.subr.bf16.mxu1 %v5068_v4  ;;  %v5076_v44 = vld [vmem:[#allocation72_spill] sm:$0xff]  ;;  %v5077_v4 = vld [vmem:[#allocation73_spill] sm:$0xff] }
 0x14e   : > { %1459 = vmatpush1.bf16.msra.mxu0 %v3973_v3  ;;  %1500 = vmatpush1.bf16.msra.mxu1 %v5069_v36  ;;  %v5078_v3 = vld [vmem:[#allocation74_spill] sm:$0xff]  ;;  %v5079_v36 = vld [vmem:[#allocation75_spill] sm:$0xff] }
 0x14f   : > { %1460 = vmatprep.subr.bf16.mxu0 %v5070_v60  ;;  %1501 = vmatprep.subr.bf16.mxu1 %v5071_v49 }
 0x152   : > { %1461 = vmatpush1.bf16.msra.mxu0 %v5072_v50  ;;  %1502 = vmatpush1.bf16.msra.mxu1 %v5073_v51 }
 0x153   : > { %1462 = vmatprep.subr.bf16.mxu0 %v5074_v42  ;;  %1503 = vmatprep.subr.bf16.mxu1 %v5075_v43  ;;  %v529_v42 = vld [vmem:[%s3791_s24 + $0x8] sm:$0xff] }
 0x154   : > { %v534_v27 = vunpack.c.l.bf16 %v529_v42  ;;  %v535_v43 = vunpack.c.h.bf16 %v529_v42 }
 0x156   : > { %1463 = vmatpush1.bf16.msra.mxu0 %v5076_v44  ;;  %1504 = vmatpush1.bf16.msra.mxu1 %v5077_v4 }
 0x157   : > { %1514 = vmatprep.subr.bf16.mxu0 %v5078_v3  ;;  %1555 = vmatprep.subr.bf16.mxu1 %v5079_v36 }
 0x1ac   : > { %v1221_v60 = vpop.f32.mrb[0].mxu0  ;;  %v1262_v49 = vpop.f32.mrb[0].mxu1 }
 0x1ad   : > { %v1223_v52 = vpop.f32.mrb[1].mxu0  ;;  %v1264_v50 = vpop.f32.mrb[1].mxu1  ;;  %v1263_v44 = vadd.f32 %v1262_v49, %v534_v27  ;;  %v1222_v14 = vadd.f32 %v1221_v60, %v532_v25 }
 0x1ae   : > { %v1225_v18 = vpop.f32.mrb[2].mxu0  ;;  %v1266_v41 = vpop.f32.mrb[2].mxu1  ;;  %v1265_v4 = vadd.f32 %v1264_v50, %v535_v43  ;;  %v1224_v10 = vadd.f32 %v1223_v52, %v533_v15 }
 0x1af   : > { %v1226_v51 = vpop.f32.mrb[3].mxu0  ;;  %v1267_v28 = vpop.f32.mrb[3].mxu1  ;;  %v1353_v3 = vpack.c.bf16 %v1263_v44, %v1263_v44  ;;  %v1351_v9 = vpack.c.bf16 %v1222_v14, %v1222_v14  ;;  %v530_v44 = vld [vmem:[%s3791_s24 + $0x10] sm:$0xff] }
 0x1b0   : > { %v1354_v36 = vpack.c.bf16 %v1265_v4, %v1265_v4  ;;  %v1352_v18 = vpack.c.bf16 %v1224_v10, %v1224_v10  ;;  %v531_v4 = vld [vmem:[%s3791_s24 + $0x18] sm:$0xff]  ;;  %v536_v14 = vunpack.c.l.bf16 %v530_v44 }
 0x1b1   : > { %v2946_v2 = vmul.bf16 3216621497, %v1353_v3  ;;  %v2944_v51 = vmul.bf16 3216621497, %v1351_v9  ;;  %v538_v10 = vunpack.c.l.bf16 %v531_v4  ;;  %v537_v9 = vunpack.c.h.bf16 %v530_v44 }
 0x1b2   : > { %v2947_v41 = vmul.bf16 3216621497, %v1354_v36  ;;  %v2945_v28 = vmul.bf16 3216621497, %v1352_v18 }
 0x1b3   : > { %3147 = vpow.bf16 %v2946_v2  ;;  %v539_v2 = vunpack.c.h.bf16 %v531_v4 }
 0x1b4   : > { %3149 = vpow.bf16 %v2947_v41 }
 0x1b5   : > { %3151 = vpow.bf16 %v2944_v51 }
 0x1b6   : > { %3153 = vpow.bf16 %v2945_v28 }
 0x1be   : > { %v3148_v42 = vpop.eup %3147 }
 0x1bf   : > { %v3150_v27 = vpop.eup %3149  ;;  %v1381_v26 = vadd.bf16 1065369472, %v3148_v42 }
 0x1c0   : > { %v3152_v43 = vpop.eup %3151  ;;  %v1382_v25 = vadd.bf16 1065369472, %v3150_v27 }
 0x1c1   : > { %v3154_v15 = vpop.eup %3153  ;;  %v1367_v60 = vadd.bf16 1065369472, %v3152_v43  ;;  %3155 = vrcp.bf16 %v1381_v26 }
 0x1c2   : > { %v1368_v3 = vadd.bf16 1065369472, %v3154_v15  ;;  %3157 = vrcp.bf16 %v1382_v25 }
 0x1c3   : > { %3159 = vrcp.bf16 %v1367_v60 }
 0x1c4   : > { %3161 = vrcp.bf16 %v1368_v3 }
 0x1ec   : > { %v1303_v36 = vpop.f32.mrb[4].mxu0  ;;  %v1344_v50 = vpop.f32.mrb[4].mxu1 }
 0x1ed   : > { %v1304_v49 = vadd.f32 %v1303_v36, %v536_v14  ;;  %v1305_v52 = vpop.f32.mrb[5].mxu0  ;;  %v1345_v18 = vadd.f32 %v1344_v50, %v538_v10  ;;  %v1346_v51 = vpop.f32.mrb[5].mxu1 }
 0x1ee   : > { %v1306_v41 = vadd.f32 %v1305_v52, %v537_v9  ;;  %v1307_v28 = vpop.f32.mrb[6].mxu0  ;;  %v1347_v27 = vadd.f32 %v1346_v51, %v539_v2  ;;  %v1348_v43 = vpop.f32.mrb[6].mxu1  ;;  %v526_v51 = vld [vmem:[#allocation3] sm:$0xff] }
 0x1ef   : > { %v1355_v42 = vpack.c.bf16 %v1304_v49, %v1304_v49  ;;  %v1308_v26 = vpop.f32.mrb[7].mxu0  ;;  %v1357_v1 = vpack.c.bf16 %v1345_v18, %v1345_v18  ;;  %v1349_v25 = vpop.f32.mrb[7].mxu1 }
 0x1f0   : > { %v1356_v15 = vpack.c.bf16 %v1306_v41, %v1306_v41  ;;  %v1358_v44 = vpack.c.bf16 %v1347_v27, %v1347_v27  ;;  %v3156_v14 = vpop.eup %3155 }
 0x1f1   : > { %3163 = vtanh.bf16 %v1355_v42  ;;  %v2948_v4 = vmul.bf16 3216621497, %v1357_v1  ;;  %v3158_v36 = vpop.eup %3157  ;;  %v1384_v3 = vmul.bf16 1065369472, %v3156_v14  ;;  %v527_v42 = vld [vmem:[#allocation3 + $0x8] sm:$0xff] }
 0x1f2   : > { %3165 = vtanh.bf16 %v1356_v15  ;;  %v2949_v60 = vmul.bf16 3216621497, %v1358_v44  ;;  %v3160_v10 = vpop.eup %3159  ;;  %v1386_v9 = vmul.bf16 1065369472, %v3158_v36 }
 0x1f3   : > { %3167 = vpow.bf16 %v2948_v4  ;;  %v3162_v50 = vpop.eup %3161  ;;  %v1370_v49 = vmul.bf16 1065369472, %v3160_v10  ;;  %v1403_v2 = vunpack.c.l.bf16 %v1384_v3 }
 0x1f4   : > { %3169 = vpow.bf16 %v2949_v60  ;;  %v1372_v18 = vmul.bf16 1065369472, %v3162_v50  ;;  %v1404_v41 = vunpack.c.l.bf16 %v1386_v9 }
 0x1f5   : > { %v1405_v26 = vmul.f32 %v1403_v2, %v526_v51 }
 0x1f6   : > { %v1406_v44 = vmul.f32 %v1404_v41, %v527_v42  ;;  %v5080_v42 = vld [vmem:[#allocation76_spill] sm:$0xff] }
 0x1fc   : > { %v3164_v52 = vpop.eup %3163 }
 0x1fd   : > { %v3166_v28 = vpop.eup %3165  ;;  %v1407_v27 = vmul.bf16 %v3164_v52, %v1370_v49 }
 0x1fe   : > { %v1408_v1 = vmul.bf16 %v3166_v28, %v1372_v18  ;;  %v3168_v43 = vpop.eup %3167 }
 0x1ff   : > { %v1409_v15 = vunpack.c.l.bf16 %v1407_v27  ;;  %v3170_v25 = vpop.eup %3169  ;;  %v1397_v4 = vadd.bf16 1065369472, %v3168_v43  ;;  %v5081_v27 = vld [vmem:[#allocation77_spill] sm:$0xff]  ;;  %v5083_v43 = vld [vmem:[#allocation79_spill] sm:$0xff] }
 0x200   : > { %v1410_v60 = vunpack.c.l.bf16 %v1408_v1  ;;  %v1398_v36 = vadd.bf16 1065369472, %v3170_v25  ;;  %v5082_v1 = vld [vmem:[#allocation78_spill] sm:$0xff] }
 0x201   : > { %v4278_v14 = vadd.f32 %v1409_v15, %v1405_v26  ;;  %3171 = vrcp.bf16 %v1397_v4  ;;  %v5084_v26 = vld [vmem:[#allocation80_spill] sm:$0xff]  ;;  %v5085_v15 = vld [vmem:[#allocation81_spill] sm:$0xff]  ;;  %v5086_v25 = vld [vmem:[#allocation82_spill] sm:$0xff] }
 0x202   : > { %v4280_v3 = vadd.f32 %v1410_v60, %v1406_v44  ;;  %3173 = vrcp.bf16 %v1398_v36  ;;  %v5087_v44 = vld [vmem:[#allocation83_spill] sm:$0xff]  ;;  %v5088_v4 = vld [vmem:[#allocation84_spill] sm:$0xff]  ;;  %v5089_v60 = vld [vmem:[#allocation85_spill] sm:$0xff] }
 0x203   : > { %v1413_v10 = vpack.c.bf16 %v4278_v14, %v4278_v14  ;;  %v5090_v36 = vld [vmem:[#allocation86_spill] sm:$0xff] }
 0x204   : > { %v1414_v9 = vpack.c.bf16 %v4280_v3, %v4280_v3 }
 0x205   : > { %3175 = vtanh.bf16 %v1413_v10  ;;  %v5091_v10 = vld [vmem:[#allocation87_spill] sm:$0xff] }
 0x206   : > { %3177 = vtanh.bf16 %v1414_v9  ;;  %v5092_v9 = vld [vmem:[#allocation88_spill] sm:$0xff] }
 0x20c   : > { %v3172_v50 = vpop.eup %3171 }
 0x20d   : > { %v3174_v49 = vpop.eup %3173  ;;  %v1400_v2 = vmul.bf16 1065369472, %v3172_v50  ;;  %v5093_v50 = vld [vmem:[#allocation89_spill] sm:$0xff] }
 0x20e   : > { %v1402_v52 = vmul.bf16 1065369472, %v3174_v49  ;;  %v5094_v49 = vld [vmem:[#allocation90_spill] sm:$0xff] }
 0x210   : > { %v3176_v51 = vpop.eup %3175 }
 0x211   : > { %v3178_v18 = vpop.eup %3177  ;;  %v4286_v28 = vmul.bf16 %v3176_v51, %v1400_v2  ;;  %v5095_v2 = vld [vmem:[#allocation91_spill] sm:$0xff]  ;;  %v5097_v51 = vld [vmem:[#allocation93_spill] sm:$0xff] }
 0x212   : > { %v1418_v41 = vmul.bf16 %v3178_v18, %v1402_v52  ;;  %v5096_v52 = vld [vmem:[#allocation92_spill] sm:$0xff]  ;;  %v5098_v18 = vld [vmem:[#allocation94_spill] sm:$0xff] }
 0x214   : > { %1464 = vmatprep.mubr.bf16.mxu0 %v1418_v41  ;;  %1505 = vmatprep.mubr.bf16.mxu1 %v1418_v41 }
 0x215   : > { %1465 = vmatmul.mubr.bf16.vlgmr.msra.gmra.mrb[8].mxu0 %v4286_v28  ;;  %1506 = vmatmul.mubr.bf16.vlgmr.msra.gmra.mrb[8].mxu1 %v4286_v28 }
 0x216   : > { %1515 = vmatpush1.bf16.msra.mxu0 %v5080_v42  ;;  %1556 = vmatpush1.bf16.msra.mxu1 %v5081_v27 }
 0x217   : > { %1546 = vmatprep.mubr.bf16.mxu0 %v1418_v41  ;;  %1587 = vmatprep.mubr.bf16.mxu1 %v1418_v41  ;;  %v5099_v41 = vld [vmem:[#allocation95_spill] sm:$0xff] }
 0x218   : > { %1516 = vmatprep.subr.bf16.mxu0 %v5082_v1  ;;  %1557 = vmatprep.subr.bf16.mxu1 %v5083_v43 }
 0x21a   : > { %1517 = vmatpush1.bf16.msra.mxu0 %v5084_v26  ;;  %1558 = vmatpush1.bf16.msra.mxu1 %v5085_v15 }
 0x21b   : > { %1518 = vmatprep.subr.bf16.mxu0 %v5086_v25  ;;  %1559 = vmatprep.subr.bf16.mxu1 %v5087_v44 }
 0x21e   : > { %1519 = vmatpush1.bf16.msra.mxu0 %v5088_v4  ;;  %1560 = vmatpush1.bf16.msra.mxu1 %v5089_v60  ;;  %v5100_v60 = vld [vmem:[#allocation96_spill] sm:$0xff] }
 0x21f   : > { %1520 = vmatprep.subr.bf16.mxu0 %v5090_v36  ;;  %1561 = vmatprep.subr.bf16.mxu1 %v5091_v10  ;;  %v5101_v36 = vld [vmem:[#allocation97_spill] sm:$0xff]  ;;  %v5102_v10 = vld [vmem:[#allocation98_spill] sm:$0xff] }
 0x222   : > { %1521 = vmatpush1.bf16.msra.mxu0 %v5092_v9  ;;  %1562 = vmatpush1.bf16.msra.mxu1 %v5093_v50  ;;  %v5103_v9 = vld [vmem:[#allocation99_spill] sm:$0xff]  ;;  %v5104_v50 = vld [vmem:[#allocation100_spill] sm:$0xff] }
 0x223   : > { %1522 = vmatprep.subr.bf16.mxu0 %v5094_v49  ;;  %1563 = vmatprep.subr.bf16.mxu1 %v5095_v2  ;;  %v5105_v49 = vld [vmem:[#allocation101_spill] sm:$0xff]  ;;  %v5106_v2 = vld [vmem:[#allocation102_spill] sm:$0xff] }
 0x226   : > { %1523 = vmatpush1.bf16.msra.mxu0 %v5096_v52  ;;  %1564 = vmatpush1.bf16.msra.mxu1 %v5097_v51  ;;  %v5107_v52 = vld [vmem:[#allocation103_spill] sm:$0xff]  ;;  %v5108_v51 = vld [vmem:[#allocation104_spill] sm:$0xff] }
 0x227   : > { %1524 = vmatprep.subr.bf16.mxu0 %v5098_v18  ;;  %1565 = vmatprep.subr.bf16.mxu1 %v5099_v41  ;;  %v5109_v18 = vld [vmem:[#allocation105_spill] sm:$0xff]  ;;  %v5110_v41 = vld [vmem:[#allocation106_spill] sm:$0xff] }
 0x22a   : > { %1525 = vmatpush1.bf16.msra.mxu0 %v5100_v60  ;;  %1566 = vmatpush1.bf16.msra.mxu1 %v5101_v36  ;;  %v5111_v60 = vld [vmem:[#allocation107_spill] sm:$0xff]  ;;  %v5112_v36 = vld [vmem:[#allocation108_spill] sm:$0xff] }
 0x22b   : > { %1526 = vmatprep.subr.bf16.mxu0 %v5102_v10  ;;  %1567 = vmatprep.subr.bf16.mxu1 %v5103_v9  ;;  %v5113_v10 = vld [vmem:[#allocation109_spill] sm:$0xff]  ;;  %v5114_v9 = vld [vmem:[#allocation110_spill] sm:$0xff] }
 0x22e   : > { %1527 = vmatpush1.bf16.msra.mxu0 %v5104_v50  ;;  %1568 = vmatpush1.bf16.msra.mxu1 %v5105_v49  ;;  %v5115_v50 = vld [vmem:[#allocation111_spill] sm:$0xff]  ;;  %v5116_v49 = vld [vmem:[#allocation112_spill] sm:$0xff] }
 0x22f   : > { %1528 = vmatprep.subr.bf16.mxu0 %v5106_v2  ;;  %1569 = vmatprep.subr.bf16.mxu1 %v5107_v52  ;;  %v5117_v2 = vld [vmem:[#allocation113_spill] sm:$0xff]  ;;  %v5118_v52 = vld [vmem:[#allocation114_spill] sm:$0xff] }
 0x232   : > { %1529 = vmatpush1.bf16.msra.mxu0 %v5108_v51  ;;  %1570 = vmatpush1.bf16.msra.mxu1 %v5109_v18  ;;  %v5119_v51 = vld [vmem:[#allocation115_spill] sm:$0xff]  ;;  %v5120_v18 = vld [vmem:[#allocation116_spill] sm:$0xff] }
 0x233   : > { %1530 = vmatprep.subr.bf16.mxu0 %v5110_v41  ;;  %1571 = vmatprep.subr.bf16.mxu1 %v5111_v60  ;;  %v5121_v41 = vld [vmem:[#allocation117_spill] sm:$0xff]  ;;  %v5122_v60 = vld [vmem:[#allocation118_spill] sm:$0xff] }
 0x236   : > { %1531 = vmatpush1.bf16.msra.mxu0 %v5112_v36  ;;  %1572 = vmatpush1.bf16.msra.mxu1 %v5113_v10  ;;  %v5123_v36 = vld [vmem:[#allocation119_spill] sm:$0xff]  ;;  %v5124_v10 = vld [vmem:[#allocation120_spill] sm:$0xff] }
 0x237   : > { %1532 = vmatprep.subr.bf16.mxu0 %v5114_v9  ;;  %1573 = vmatprep.subr.bf16.mxu1 %v5115_v50  ;;  %v5125_v9 = vld [vmem:[#allocation121_spill] sm:$0xff]  ;;  %v5126_v50 = vld [vmem:[#allocation122_spill] sm:$0xff] }
 0x23a   : > { %1533 = vmatpush1.bf16.msra.mxu0 %v5116_v49  ;;  %1574 = vmatpush1.bf16.msra.mxu1 %v5117_v2  ;;  %v5127_v49 = vld [vmem:[#allocation123_spill] sm:$0xff] }
 0x23b   : > { %1534 = vmatprep.subr.bf16.mxu0 %v5118_v52  ;;  %1575 = vmatprep.subr.bf16.mxu1 %v5119_v51 }
 0x23e   : > { %1535 = vmatpush1.bf16.msra.mxu0 %v5120_v18  ;;  %1576 = vmatpush1.bf16.msra.mxu1 %v5121_v41  ;;  %v5128_v18 = vld [vmem:[#allocation127_spill] sm:$0xff] }
 0x23f   : > { %1536 = vmatprep.subr.bf16.mxu0 %v5122_v60  ;;  %1577 = vmatprep.subr.bf16.mxu1 %v5123_v36 }
 0x242   : > { %1537 = vmatpush1.bf16.msra.mxu0 %v5124_v10  ;;  %1578 = vmatpush1.bf16.msra.mxu1 %v5125_v9 }
 0x243   : > { %1538 = vmatprep.subr.bf16.mxu0 %v5126_v50  ;;  %1579 = vmatprep.subr.bf16.mxu1 %v5127_v49 }
 0x246   : > { %1539 = vmatpush1.bf16.msra.mxu0 %v4161_v7  ;;  %1580 = vmatpush1.bf16.msra.mxu1 %v4165_v19 }
 0x247   : > { %1540 = vmatprep.subr.bf16.mxu0 %v4167_v5  ;;  %1581 = vmatprep.subr.bf16.mxu1 %v5128_v18 }
 0x24a   : > { %1541 = vmatpush1.bf16.msra.mxu0 %v4173_v33  ;;  %1582 = vmatpush1.bf16.msra.mxu1 %v4177_v61 }
 0x24b   : > { %1542 = vmatprep.subr.bf16.mxu0 %v4179_v35  ;;  %1583 = vmatprep.subr.bf16.mxu1 %v4182_v56 }
 0x24e   : > { %1543 = vmatpush1.bf16.msra.mxu0 %v4185_v34  ;;  %1584 = vmatpush1.bf16.msra.mxu1 %v4189_v58 }
 0x24f   : > { %1544 = vmatprep.subr.bf16.mxu0 %v4191_v59  ;;  %1585 = vmatprep.subr.bf16.mxu1 %v4194_v62 }
 0x252   : > { %1545 = vmatpush1.bf16.msra.mxu0 %v4197_v20  ;;  %1586 = vmatpush1.bf16.msra.mxu1 %v4201_v16 }
 0x253   : > { %1677 = vmatprep.subr.bf16.mxu0 %v3806_v6  ;;  %1718 = vmatprep.subr.bf16.mxu1 %v3810_v11 }
 0x255   : > { %1547 = vmatmul.mubr.bf16.vlgmr.msra.gmra.mrb[12].mxu0 %v4286_v28  ;;  %1588 = vmatmul.mubr.bf16.vlgmr.msra.gmra.mrb[12].mxu1 %v4286_v28  ;;  %v5129_v28 = vld [vmem:[#allocation38_spill] sm:$0xff] }
 0x256   : > { %1678 = vmatpush1.bf16.msra.mxu0 %v3808_v8  ;;  %1719 = vmatpush1.bf16.msra.mxu1 %v3812_v12 }
 0x257   : > { %1679 = vmatprep.subr.bf16.mxu0 %v3814_v13  ;;  %1720 = vmatprep.subr.bf16.mxu1 %v3817_v17 }
 0x25a   : > { %1680 = vmatpush1.bf16.msra.mxu0 %v3821_v21  ;;  %1721 = vmatpush1.bf16.msra.mxu1 %v3825_v22 }
 0x25b   : > { %1681 = vmatprep.subr.bf16.mxu0 %v3827_v23  ;;  %1722 = vmatprep.subr.bf16.mxu1 %v3830_v24 }
 0x25e   : > { %1682 = vmatpush1.bf16.msra.mxu0 %v3833_v29  ;;  %1723 = vmatpush1.bf16.msra.mxu1 %v3837_v30 }
 0x25f   : > { %1683 = vmatprep.subr.bf16.mxu0 %v3839_v31  ;;  %1724 = vmatprep.subr.bf16.mxu1 %v3842_v32  ;;  %v2950_v32 = vld [vmem:[%s3791_s24 + $0x20] sm:$0xff] }
 0x260   : > { %v1424_v31 = vunpack.c.l.bf16 %v2950_v32  ;;  %v1425_v30 = vunpack.c.h.bf16 %v2950_v32 }
 0x262   : > { %1684 = vmatpush1.bf16.msra.mxu0 %v3845_v37  ;;  %1725 = vmatpush1.bf16.msra.mxu1 %v3849_v38 }
 0x263   : > { %1685 = vmatprep.subr.bf16.mxu0 %v3851_v39  ;;  %1726 = vmatprep.subr.bf16.mxu1 %v3854_v40 }
 0x266   : > { %1686 = vmatpush1.bf16.msra.mxu0 %v3857_v45  ;;  %1727 = vmatpush1.bf16.msra.mxu1 %v3861_v46  ;;  %v5130_v45 = vld [vmem:[#allocation39_spill] sm:$0xff]  ;;  %v5131_v46 = vld [vmem:[#allocation40_spill] sm:$0xff] }
 0x267   : > { %1687 = vmatprep.subr.bf16.mxu0 %v3863_v47  ;;  %1728 = vmatprep.subr.bf16.mxu1 %v3866_v48  ;;  %v5132_v47 = vld [vmem:[#allocation41_spill] sm:$0xff]  ;;  %v5133_v48 = vld [vmem:[#allocation42_spill] sm:$0xff] }
 0x26a   : > { %1688 = vmatpush1.bf16.msra.mxu0 %v3869_v53  ;;  %1729 = vmatpush1.bf16.msra.mxu1 %v3873_v54  ;;  %v5134_v53 = vld [vmem:[#allocation43_spill] sm:$0xff]  ;;  %v5135_v54 = vld [vmem:[#allocation44_spill] sm:$0xff] }
 0x26b   : > { %1689 = vmatprep.subr.bf16.mxu0 %v3875_v55  ;;  %1730 = vmatprep.subr.bf16.mxu1 %v3880_v57  ;;  %v5136_v55 = vld [vmem:[#allocation45_spill] sm:$0xff]  ;;  %v5137_v57 = vld [vmem:[#allocation46_spill] sm:$0xff] }
 0x26e   : > { %1690 = vmatpush1.bf16.msra.mxu0 %v3887_v63  ;;  %1731 = vmatpush1.bf16.msra.mxu1 %v3892_v0  ;;  %v5138_v63 = vld [vmem:[#allocation47_spill] sm:$0xff]  ;;  %v5139_v0 = vld [vmem:[#allocation48_spill] sm:$0xff] }
 0x26f   : > { %1691 = vmatprep.subr.bf16.mxu0 %v5129_v28  ;;  %1732 = vmatprep.subr.bf16.mxu1 %v5130_v45  ;;  %v5140_v28 = vld [vmem:[#allocation49_spill] sm:$0xff]  ;;  %v5141_v45 = vld [vmem:[#allocation50_spill] sm:$0xff] }
 0x272   : > { %1692 = vmatpush1.bf16.msra.mxu0 %v5131_v46  ;;  %1733 = vmatpush1.bf16.msra.mxu1 %v5132_v47  ;;  %v5142_v46 = vld [vmem:[#allocation51_spill] sm:$0xff]  ;;  %v5143_v47 = vld [vmem:[#allocation52_spill] sm:$0xff] }
 0x273   : > { %1693 = vmatprep.subr.bf16.mxu0 %v5133_v48  ;;  %1734 = vmatprep.subr.bf16.mxu1 %v5134_v53  ;;  %v5144_v48 = vld [vmem:[#allocation53_spill] sm:$0xff]  ;;  %v5145_v53 = vld [vmem:[#allocation54_spill] sm:$0xff] }
 0x276   : > { %1694 = vmatpush1.bf16.msra.mxu0 %v5135_v54  ;;  %1735 = vmatpush1.bf16.msra.mxu1 %v5136_v55  ;;  %v5146_v54 = vld [vmem:[#allocation55_spill] sm:$0xff]  ;;  %v5147_v55 = vld [vmem:[#allocation56_spill] sm:$0xff] }
 0x277   : > { %1695 = vmatprep.subr.bf16.mxu0 %v5137_v57  ;;  %1736 = vmatprep.subr.bf16.mxu1 %v5138_v63  ;;  %v5148_v57 = vld [vmem:[#allocation57_spill] sm:$0xff]  ;;  %v5149_v63 = vld [vmem:[#allocation58_spill] sm:$0xff] }
 0x27a   : > { %1696 = vmatpush1.bf16.msra.mxu0 %v5139_v0  ;;  %1737 = vmatpush1.bf16.msra.mxu1 %v5140_v28  ;;  %v5150_v0 = vld [vmem:[#allocation59_spill] sm:$0xff]  ;;  %v5151_v28 = vld [vmem:[#allocation60_spill] sm:$0xff] }
 0x27b   : > { %1697 = vmatprep.subr.bf16.mxu0 %v5141_v45  ;;  %1738 = vmatprep.subr.bf16.mxu1 %v5142_v46  ;;  %v5152_v45 = vld [vmem:[#allocation61_spill] sm:$0xff]  ;;  %v5153_v46 = vld [vmem:[#allocation62_spill] sm:$0xff] }
 0x27e   : > { %1698 = vmatpush1.bf16.msra.mxu0 %v5143_v47  ;;  %1739 = vmatpush1.bf16.msra.mxu1 %v5144_v48  ;;  %v5154_v47 = vld [vmem:[#allocation63_spill] sm:$0xff]  ;;  %v5155_v48 = vld [vmem:[#allocation64_spill] sm:$0xff] }
 0x27f   : > { %1699 = vmatprep.subr.bf16.mxu0 %v5145_v53  ;;  %1740 = vmatprep.subr.bf16.mxu1 %v5146_v54  ;;  %v5156_v53 = vld [vmem:[#allocation65_spill] sm:$0xff]  ;;  %v5157_v54 = vld [vmem:[#allocation66_spill] sm:$0xff] }
 0x282   : > { %1700 = vmatpush1.bf16.msra.mxu0 %v5147_v55  ;;  %1741 = vmatpush1.bf16.msra.mxu1 %v5148_v57  ;;  %v5158_v55 = vld [vmem:[#allocation67_spill] sm:$0xff]  ;;  %v5159_v57 = vld [vmem:[#allocation68_spill] sm:$0xff] }
 0x283   : > { %1701 = vmatprep.subr.bf16.mxu0 %v5149_v63  ;;  %1742 = vmatprep.subr.bf16.mxu1 %v5150_v0  ;;  %v5160_v63 = vld [vmem:[#allocation69_spill] sm:$0xff] }
 0x286   : > { %1702 = vmatpush1.bf16.msra.mxu0 %v5151_v28  ;;  %1743 = vmatpush1.bf16.msra.mxu1 %v5152_v45  ;;  %v5161_v28 = vld [vmem:[#allocation70_spill] sm:$0xff]  ;;  %v5162_v45 = vld [vmem:[#allocation71_spill] sm:$0xff] }
 0x287   : > { %1703 = vmatprep.subr.bf16.mxu0 %v5153_v46  ;;  %1744 = vmatprep.subr.bf16.mxu1 %v5154_v47  ;;  %v5163_v46 = vld [vmem:[#allocation72_spill] sm:$0xff]  ;;  %v5164_v47 = vld [vmem:[#allocation73_spill] sm:$0xff] }
 0x28a   : > { %1704 = vmatpush1.bf16.msra.mxu0 %v5155_v48  ;;  %1745 = vmatpush1.bf16.msra.mxu1 %v5156_v53  ;;  %v5165_v48 = vld [vmem:[#allocation74_spill] sm:$0xff]  ;;  %v5166_v53 = vld [vmem:[#allocation75_spill] sm:$0xff] }
 0x28b   : > { %1705 = vmatprep.subr.bf16.mxu0 %v5157_v54  ;;  %1746 = vmatprep.subr.bf16.mxu1 %v5158_v55 }
 0x28e   : > { %1706 = vmatpush1.bf16.msra.mxu0 %v5159_v57  ;;  %1747 = vmatpush1.bf16.msra.mxu1 %v5160_v63 }
 0x28f   : > { %1707 = vmatprep.subr.bf16.mxu0 %v5161_v28  ;;  %1748 = vmatprep.subr.bf16.mxu1 %v5162_v45  ;;  %v2951_v28 = vld [vmem:[%s3791_s24 + $0x28] sm:$0xff] }
 0x290   : > { %v1426_v37 = vunpack.c.l.bf16 %v2951_v28  ;;  %v1427_v45 = vunpack.c.h.bf16 %v2951_v28 }
 0x292   : > { %1708 = vmatpush1.bf16.msra.mxu0 %v5163_v46  ;;  %1749 = vmatpush1.bf16.msra.mxu1 %v5164_v47 }
 0x293   : > { %1759 = vmatprep.subr.bf16.mxu0 %v5165_v48  ;;  %1800 = vmatprep.subr.bf16.mxu1 %v5166_v53 }
 0x2e8   : > { %v1466_v54 = vpop.f32.mrb[8].mxu0  ;;  %v1507_v55 = vpop.f32.mrb[8].mxu1 }
 0x2e9   : > { %v1468_v0 = vpop.f32.mrb[9].mxu0  ;;  %v1509_v57 = vpop.f32.mrb[9].mxu1  ;;  %v1508_v46 = vadd.f32 %v1507_v55, %v1426_v37  ;;  %v1467_v29 = vadd.f32 %v1466_v54, %v1424_v31 }
 0x2ea   : > { %v1470_v40 = vpop.f32.mrb[10].mxu0  ;;  %v1511_v39 = vpop.f32.mrb[10].mxu1  ;;  %v1510_v47 = vadd.f32 %v1509_v57, %v1427_v45  ;;  %v1469_v24 = vadd.f32 %v1468_v0, %v1425_v30  ;;  %v2953_v30 = vld [vmem:[%s3791_s24 + $0x38] sm:$0xff] }
 0x2eb   : > { %v1471_v63 = vpop.f32.mrb[11].mxu0  ;;  %v1512_v38 = vpop.f32.mrb[11].mxu1  ;;  %v1598_v48 = vpack.c.bf16 %v1508_v46, %v1508_v46  ;;  %v1596_v23 = vpack.c.bf16 %v1467_v29, %v1467_v29  ;;  %v2952_v46 = vld [vmem:[%s3791_s24 + $0x30] sm:$0xff] }
 0x2ec   : > { %v1599_v53 = vpack.c.bf16 %v1510_v47, %v1510_v47  ;;  %v1597_v40 = vpack.c.bf16 %v1469_v24, %v1469_v24  ;;  %v1428_v29 = vunpack.c.l.bf16 %v2952_v46 }
 0x2ed   : > { %v2956_v22 = vmul.bf16 3216621497, %v1598_v48  ;;  %v2954_v63 = vmul.bf16 3216621497, %v1596_v23  ;;  %v1430_v48 = vunpack.c.l.bf16 %v2953_v30  ;;  %v1429_v23 = vunpack.c.h.bf16 %v2952_v46 }
 0x2ee   : > { %v2957_v39 = vmul.bf16 3216621497, %v1599_v53  ;;  %v2955_v38 = vmul.bf16 3216621497, %v1597_v40 }
 0x2ef   : > { %3179 = vpow.bf16 %v2956_v22  ;;  %v1431_v22 = vunpack.c.h.bf16 %v2953_v30 }
 0x2f0   : > { %3181 = vpow.bf16 %v2957_v39 }
 0x2f1   : > { %3183 = vpow.bf16 %v2954_v63 }
 0x2f2   : > { %3185 = vpow.bf16 %v2955_v38 }
 0x2fa   : > { %v3180_v28 = vpop.eup %3179 }
 0x2fb   : > { %v3182_v37 = vpop.eup %3181  ;;  %v1626_v32 = vadd.bf16 1065369472, %v3180_v28 }
 0x2fc   : > { %v3184_v45 = vpop.eup %3183  ;;  %v1627_v31 = vadd.bf16 1065369472, %v3182_v37 }
 0x2fd   : > { %v3186_v47 = vpop.eup %3185  ;;  %v1612_v54 = vadd.bf16 1065369472, %v3184_v45  ;;  %3187 = vrcp.bf16 %v1626_v32 }
 0x2fe   : > { %v1613_v24 = vadd.bf16 1065369472, %v3186_v47  ;;  %3189 = vrcp.bf16 %v1627_v31 }
 0x2ff   : > { %3191 = vrcp.bf16 %v1612_v54 }
 0x300   : > { %3193 = vrcp.bf16 %v1613_v24 }
 0x308   : > { %v3188_v54 = vpop.eup %3187 }
 0x328   : > { %v1548_v53 = vpop.f32.mrb[12].mxu0  ;;  %v1589_v55 = vpop.f32.mrb[12].mxu1 }
 0x329   : > { %v1549_v57 = vadd.f32 %v1548_v53, %v1428_v29  ;;  %v1590_v0 = vadd.f32 %v1589_v55, %v1430_v48  ;;  %v1550_v40 = vpop.f32.mrb[13].mxu0  ;;  %v1591_v39 = vpop.f32.mrb[13].mxu1  ;;  %v1629_v48 = vmul.bf16 1065369472, %v3188_v54 }
 0x32a   : > { %v1551_v63 = vadd.f32 %v1550_v40, %v1429_v23  ;;  %v1592_v38 = vadd.f32 %v1591_v39, %v1431_v22  ;;  %v1552_v28 = vpop.f32.mrb[14].mxu0  ;;  %v1593_v37 = vpop.f32.mrb[14].mxu1 }
 0x32b   : > { %v1600_v45 = vpack.c.bf16 %v1549_v57, %v1549_v57  ;;  %v1602_v32 = vpack.c.bf16 %v1590_v0, %v1590_v0  ;;  %v1553_v21 = vpop.f32.mrb[15].mxu0  ;;  %v1594_v17 = vpop.f32.mrb[15].mxu1  ;;  %v1648_v55 = vunpack.c.l.bf16 %v1629_v48 }
 0x32c   : > { %v1601_v47 = vpack.c.bf16 %v1551_v63, %v1551_v63  ;;  %v1603_v31 = vpack.c.bf16 %v1592_v38, %v1592_v38  ;;  %v3190_v29 = vpop.eup %3189 }
 0x32d   : > { %3195 = vtanh.bf16 %v1600_v45  ;;  %v2958_v46 = vmul.bf16 3216621497, %v1602_v32  ;;  %v3192_v24 = vpop.eup %3191  ;;  %v1631_v23 = vmul.bf16 1065369472, %v3190_v29  ;;  %v1650_v28 = vmul.f32 %v1648_v55, %v4278_v14 }
 0x32e   : > { %3197 = vtanh.bf16 %v1601_v47  ;;  %v2959_v30 = vmul.bf16 3216621497, %v1603_v31  ;;  %v3194_v22 = vpop.eup %3193  ;;  %v1615_v53 = vmul.bf16 1065369472, %v3192_v24 }
 0x32f   : > { %3199 = vpow.bf16 %v2958_v46  ;;  %v1617_v0 = vmul.bf16 1065369472, %v3194_v22  ;;  %v1649_v21 = vunpack.c.l.bf16 %v1631_v23 }
 0x330   : > { %3201 = vpow.bf16 %v2959_v30 }
 0x331   : > { %v1651_v32 = vmul.f32 %v1649_v21, %v4280_v3  ;;  %v5169_v21 = vld [vmem:[#allocation87_spill] sm:$0xff] }
 0x338   : > { %v3196_v57 = vpop.eup %3195 }
 0x339   : > { %v3198_v17 = vpop.eup %3197  ;;  %v1652_v40 = vmul.bf16 %v3196_v57, %v1615_v53  ;;  %v5167_v57 = vld [vmem:[#allocation85_spill] sm:$0xff] }
 0x33a   : > { %v3200_v39 = vpop.eup %3199  ;;  %v1653_v63 = vmul.bf16 %v3198_v17, %v1617_v0  ;;  %v5168_v0 = vld [vmem:[#allocation86_spill] sm:$0xff]  ;;  %v5170_v17 = vld [vmem:[#allocation88_spill] sm:$0xff] }
 0x33b   : > { %v3202_v38 = vpop.eup %3201  ;;  %v1654_v37 = vunpack.c.l.bf16 %v1652_v40  ;;  %v1642_v45 = vadd.bf16 1065369472, %v3200_v39  ;;  %v5171_v40 = vld [vmem:[#allocation89_spill] sm:$0xff]  ;;  %v5172_v39 = vld [vmem:[#allocation90_spill] sm:$0xff] }
 0x33c   : > { %v1655_v47 = vunpack.c.l.bf16 %v1653_v63  ;;  %v1643_v31 = vadd.bf16 1065369472, %v3202_v38  ;;  %v5173_v63 = vld [vmem:[#allocation91_spill] sm:$0xff]  ;;  %v5174_v38 = vld [vmem:[#allocation92_spill] sm:$0xff] }
 0x33d   : > { %v4426_v46 = vadd.f32 %v1654_v37, %v1650_v28  ;;  %v5175_v28 = vld [vmem:[#allocation93_spill] sm:$0xff]  ;;  %v5176_v37 = vld [vmem:[#allocation94_spill] sm:$0xff] }
 0x33e   : > { %v4428_v30 = vadd.f32 %v1655_v47, %v1651_v32  ;;  %3203 = vrcp.bf16 %v1643_v31  ;;  %v5178_v32 = vld [vmem:[#allocation96_spill] sm:$0xff]  ;;  %v5179_v47 = vld [vmem:[#allocation97_spill] sm:$0xff]  ;;  %v5180_v31 = vld [vmem:[#allocation98_spill] sm:$0xff] }
 0x33f   : > { %v1658_v54 = vpack.c.bf16 %v4426_v46, %v4426_v46  ;;  %3205 = vrcp.bf16 %v1642_v45  ;;  %v5177_v45 = vld [vmem:[#allocation95_spill] sm:$0xff] }
 0x340   : > { %v1659_v29 = vpack.c.bf16 %v4428_v30, %v4428_v30 }
 0x341   : > { %3207 = vtanh.bf16 %v1658_v54  ;;  %v5181_v54 = vld [vmem:[#allocation99_spill] sm:$0xff] }
 0x342   : > { %3209 = vtanh.bf16 %v1659_v29  ;;  %v5182_v29 = vld [vmem:[#allocation100_spill] sm:$0xff] }
 0x349   : > { %v3204_v14 = vpop.eup %3203 }
 0x34a   : > { %v3206_v48 = vpop.eup %3205  ;;  %v1647_v3 = vmul.bf16 1065369472, %v3204_v14  ;;  %v5183_v14 = vld [vmem:[#allocation101_spill] sm:$0xff] }
 0x34b   : > { %v1645_v22 = vmul.bf16 1065369472, %v3206_v48  ;;  %v5184_v48 = vld [vmem:[#allocation102_spill] sm:$0xff] }
 0x34c   : > { %v3208_v24 = vpop.eup %3207 }
 0x34d   : > { %v3210_v23 = vpop.eup %3209  ;;  %v4434_v55 = vmul.bf16 %v3208_v24, %v1645_v22  ;;  %v5185_v24 = vld [vmem:[#allocation103_spill] sm:$0xff]  ;;  %v5188_v22 = vld [vmem:[#allocation106_spill] sm:$0xff] }
 0x34e   : > { %v1663_v53 = vmul.bf16 %v3210_v23, %v1647_v3  ;;  %v5186_v3 = vld [vmem:[#allocation104_spill] sm:$0xff]  ;;  %v5187_v23 = vld [vmem:[#allocation105_spill] sm:$0xff] }
 0x350   : > { %1709 = vmatprep.mubr.bf16.mxu0 %v1663_v53  ;;  %1750 = vmatprep.mubr.bf16.mxu1 %v1663_v53 }
 0x351   : > { %1710 = vmatmul.mubr.bf16.vlgmr.msra.gmra.mrb[16].mxu0 %v4434_v55  ;;  %1751 = vmatmul.mubr.bf16.vlgmr.msra.gmra.mrb[16].mxu1 %v4434_v55 }
 0x352   : > { %1760 = vmatpush1.bf16.msra.mxu0 %v5080_v42  ;;  %1801 = vmatpush1.bf16.msra.mxu1 %v5081_v27 }
 0x353   : > { %1791 = vmatprep.mubr.bf16.mxu0 %v1663_v53  ;;  %1832 = vmatprep.mubr.bf16.mxu1 %v1663_v53  ;;  %v5189_v53 = vld [vmem:[#allocation107_spill] sm:$0xff] }
 0x354   : > { %1761 = vmatprep.subr.bf16.mxu0 %v5082_v1  ;;  %1802 = vmatprep.subr.bf16.mxu1 %v5083_v43 }
 0x356   : > { %1762 = vmatpush1.bf16.msra.mxu0 %v5084_v26  ;;  %1803 = vmatpush1.bf16.msra.mxu1 %v5085_v15 }
 0x357   : > { %1763 = vmatprep.subr.bf16.mxu0 %v5086_v25  ;;  %1804 = vmatprep.subr.bf16.mxu1 %v5087_v44 }
 0x35a   : > { %1764 = vmatpush1.bf16.msra.mxu0 %v5088_v4  ;;  %1805 = vmatpush1.bf16.msra.mxu1 %v5167_v57 }
 0x35b   : > { %1765 = vmatprep.subr.bf16.mxu0 %v5168_v0  ;;  %1806 = vmatprep.subr.bf16.mxu1 %v5169_v21 }
 0x35e   : > { %1766 = vmatpush1.bf16.msra.mxu0 %v5170_v17  ;;  %1807 = vmatpush1.bf16.msra.mxu1 %v5171_v40 }
 0x35f   : > { %1767 = vmatprep.subr.bf16.mxu0 %v5172_v39  ;;  %1808 = vmatprep.subr.bf16.mxu1 %v5173_v63 }
 0x362   : > { %1768 = vmatpush1.bf16.msra.mxu0 %v5174_v38  ;;  %1809 = vmatpush1.bf16.msra.mxu1 %v5175_v28 }
 0x363   : > { %1769 = vmatprep.subr.bf16.mxu0 %v5176_v37  ;;  %1810 = vmatprep.subr.bf16.mxu1 %v5177_v45 }
 0x366   : > { %1770 = vmatpush1.bf16.msra.mxu0 %v5178_v32  ;;  %1811 = vmatpush1.bf16.msra.mxu1 %v5179_v47  ;;  %v5190_v47 = vld [vmem:[#allocation108_spill] sm:$0xff] }
 0x367   : > { %1771 = vmatprep.subr.bf16.mxu0 %v5180_v31  ;;  %1812 = vmatprep.subr.bf16.mxu1 %v5181_v54  ;;  %v5191_v31 = vld [vmem:[#allocation109_spill] sm:$0xff]  ;;  %v5192_v54 = vld [vmem:[#allocation110_spill] sm:$0xff] }
 0x36a   : > { %1772 = vmatpush1.bf16.msra.mxu0 %v5182_v29  ;;  %1813 = vmatpush1.bf16.msra.mxu1 %v5183_v14  ;;  %v5193_v29 = vld [vmem:[#allocation111_spill] sm:$0xff]  ;;  %v5194_v14 = vld [vmem:[#allocation112_spill] sm:$0xff] }
 0x36b   : > { %1773 = vmatprep.subr.bf16.mxu0 %v5184_v48  ;;  %1814 = vmatprep.subr.bf16.mxu1 %v5185_v24 }
 0x36e   : > { %1774 = vmatpush1.bf16.msra.mxu0 %v5186_v3  ;;  %1815 = vmatpush1.bf16.msra.mxu1 %v5187_v23  ;;  %v5195_v23 = vld [vmem:[#allocation116_spill] sm:$0xff] }
 0x36f   : > { %1775 = vmatprep.subr.bf16.mxu0 %v5188_v22  ;;  %1816 = vmatprep.subr.bf16.mxu1 %v5189_v53 }
 0x372   : > { %1776 = vmatpush1.bf16.msra.mxu0 %v5190_v47  ;;  %1817 = vmatpush1.bf16.msra.mxu1 %v5191_v31 }
 0x373   : > { %1777 = vmatprep.subr.bf16.mxu0 %v5192_v54  ;;  %1818 = vmatprep.subr.bf16.mxu1 %v5193_v29 }
 0x376   : > { %1778 = vmatpush1.bf16.msra.mxu0 %v5194_v14  ;;  %1819 = vmatpush1.bf16.msra.mxu1 %v5117_v2 }
 0x377   : > { %1779 = vmatprep.subr.bf16.mxu0 %v5118_v52  ;;  %1820 = vmatprep.subr.bf16.mxu1 %v5119_v51 }
 0x37a   : > { %1780 = vmatpush1.bf16.msra.mxu0 %v5195_v23  ;;  %1821 = vmatpush1.bf16.msra.mxu1 %v5121_v41 }
 0x37b   : > { %1781 = vmatprep.subr.bf16.mxu0 %v5122_v60  ;;  %1822 = vmatprep.subr.bf16.mxu1 %v5123_v36 }
 0x37e   : > { %1782 = vmatpush1.bf16.msra.mxu0 %v5124_v10  ;;  %1823 = vmatpush1.bf16.msra.mxu1 %v5125_v9 }
 0x37f   : > { %1783 = vmatprep.subr.bf16.mxu0 %v5126_v50  ;;  %1824 = vmatprep.subr.bf16.mxu1 %v5127_v49 }
 0x382   : > { %1784 = vmatpush1.bf16.msra.mxu0 %v4161_v7  ;;  %1825 = vmatpush1.bf16.msra.mxu1 %v4165_v19 }
 0x383   : > { %1785 = vmatprep.subr.bf16.mxu0 %v4167_v5  ;;  %1826 = vmatprep.subr.bf16.mxu1 %v5128_v18 }
 0x386   : > { %1786 = vmatpush1.bf16.msra.mxu0 %v4173_v33  ;;  %1827 = vmatpush1.bf16.msra.mxu1 %v4177_v61  ;;  %v2960_v33 = vld [vmem:[%s3791_s24 + $0x40] sm:$0xff] }
 0x387   : > { %1787 = vmatprep.subr.bf16.mxu0 %v4179_v35  ;;  %1828 = vmatprep.subr.bf16.mxu1 %v4182_v56  ;;  %v1669_v18 = vunpack.c.l.bf16 %v2960_v33  ;;  %v1670_v5 = vunpack.c.h.bf16 %v2960_v33 }
 0x38a   : > { %1788 = vmatpush1.bf16.msra.mxu0 %v4185_v34  ;;  %1829 = vmatpush1.bf16.msra.mxu1 %v4189_v58  ;;  %v5202_v58 = vld [vmem:[#allocation21_spill] sm:$0xff] }
 0x38b   : > { %1789 = vmatprep.subr.bf16.mxu0 %v4191_v59  ;;  %1830 = vmatprep.subr.bf16.mxu1 %v4194_v62  ;;  %v5196_v59 = vld [vmem:[#allocation15_spill] sm:$0xff]  ;;  %v5197_v62 = vld [vmem:[#allocation16_spill] sm:$0xff] }
 0x38e   : > { %1790 = vmatpush1.bf16.msra.mxu0 %v4197_v20  ;;  %1831 = vmatpush1.bf16.msra.mxu1 %v4201_v16  ;;  %v5198_v20 = vld [vmem:[#allocation17_spill] sm:$0xff]  ;;  %v5199_v16 = vld [vmem:[#allocation18_spill] sm:$0xff] }
 0x38f   : > { %1922 = vmatprep.subr.bf16.mxu0 %v3806_v6  ;;  %1963 = vmatprep.subr.bf16.mxu1 %v3810_v11  ;;  %v5200_v6 = vld [vmem:[#allocation19_spill] sm:$0xff]  ;;  %v5201_v11 = vld [vmem:[#allocation20_spill] sm:$0xff] }
 0x391   : > { %1792 = vmatmul.mubr.bf16.vlgmr.msra.gmra.mrb[20].mxu0 %v4434_v55  ;;  %1833 = vmatmul.mubr.bf16.vlgmr.msra.gmra.mrb[20].mxu1 %v4434_v55  ;;  %v5203_v55 = vld [vmem:[#allocation22_spill] sm:$0xff] }
 0x392   : > { %1923 = vmatpush1.bf16.msra.mxu0 %v3808_v8  ;;  %1964 = vmatpush1.bf16.msra.mxu1 %v3812_v12  ;;  %v5204_v8 = vld [vmem:[#allocation23_spill] sm:$0xff]  ;;  %v5205_v12 = vld [vmem:[#allocation24_spill] sm:$0xff] }
 0x393   : > { %1924 = vmatprep.subr.bf16.mxu0 %v3814_v13  ;;  %1965 = vmatprep.subr.bf16.mxu1 %v5196_v59  ;;  %v5206_v13 = vld [vmem:[#allocation25_spill] sm:$0xff]  ;;  %v5207_v59 = vld [vmem:[#allocation26_spill] sm:$0xff] }
 0x396   : > { %1925 = vmatpush1.bf16.msra.mxu0 %v5197_v62  ;;  %1966 = vmatpush1.bf16.msra.mxu1 %v5198_v20  ;;  %v5208_v62 = vld [vmem:[#allocation27_spill] sm:$0xff]  ;;  %v5209_v20 = vld [vmem:[#allocation28_spill] sm:$0xff] }
 0x397   : > { %1926 = vmatprep.subr.bf16.mxu0 %v5199_v16  ;;  %1967 = vmatprep.subr.bf16.mxu1 %v5200_v6  ;;  %v5210_v16 = vld [vmem:[#allocation29_spill] sm:$0xff]  ;;  %v5211_v6 = vld [vmem:[#allocation30_spill] sm:$0xff] }
 0x39a   : > { %1927 = vmatpush1.bf16.msra.mxu0 %v5201_v11  ;;  %1968 = vmatpush1.bf16.msra.mxu1 %v5202_v58  ;;  %v5212_v11 = vld [vmem:[#allocation31_spill] sm:$0xff]  ;;  %v5213_v58 = vld [vmem:[#allocation32_spill] sm:$0xff] }
 0x39b   : > { %1928 = vmatprep.subr.bf16.mxu0 %v5203_v55  ;;  %1969 = vmatprep.subr.bf16.mxu1 %v5204_v8  ;;  %v5214_v55 = vld [vmem:[#allocation33_spill] sm:$0xff]  ;;  %v5215_v8 = vld [vmem:[#allocation34_spill] sm:$0xff] }
 0x39e   : > { %1929 = vmatpush1.bf16.msra.mxu0 %v5205_v12  ;;  %1970 = vmatpush1.bf16.msra.mxu1 %v5206_v13  ;;  %v5216_v12 = vld [vmem:[#allocation35_spill] sm:$0xff]  ;;  %v5217_v13 = vld [vmem:[#allocation36_spill] sm:$0xff] }
 0x39f   : > { %1930 = vmatprep.subr.bf16.mxu0 %v5207_v59  ;;  %1971 = vmatprep.subr.bf16.mxu1 %v5208_v62  ;;  %v5218_v59 = vld [vmem:[#allocation37_spill] sm:$0xff]  ;;  %v5219_v62 = vld [vmem:[#allocation38_spill] sm:$0xff] }
 0x3a2   : > { %1931 = vmatpush1.bf16.msra.mxu0 %v5209_v20  ;;  %1972 = vmatpush1.bf16.msra.mxu1 %v5210_v16  ;;  %v5220_v20 = vld [vmem:[#allocation39_spill] sm:$0xff]  ;;  %v5221_v16 = vld [vmem:[#allocation40_spill] sm:$0xff] }
 0x3a3   : > { %1932 = vmatprep.subr.bf16.mxu0 %v5211_v6  ;;  %1973 = vmatprep.subr.bf16.mxu1 %v5212_v11  ;;  %v5222_v6 = vld [vmem:[#allocation41_spill] sm:$0xff]  ;;  %v5223_v11 = vld [vmem:[#allocation42_spill] sm:$0xff] }
 0x3a6   : > { %1933 = vmatpush1.bf16.msra.mxu0 %v5213_v58  ;;  %1974 = vmatpush1.bf16.msra.mxu1 %v5214_v55  ;;  %v5224_v58 = vld [vmem:[#allocation43_spill] sm:$0xff]  ;;  %v5225_v55 = vld [vmem:[#allocation44_spill] sm:$0xff] }
 0x3a7   : > { %1934 = vmatprep.subr.bf16.mxu0 %v5215_v8  ;;  %1975 = vmatprep.subr.bf16.mxu1 %v5216_v12  ;;  %v5226_v8 = vld [vmem:[#allocation45_spill] sm:$0xff]  ;;  %v5227_v12 = vld [vmem:[#allocation46_spill] sm:$0xff] }
 0x3aa   : > { %1935 = vmatpush1.bf16.msra.mxu0 %v5217_v13  ;;  %1976 = vmatpush1.bf16.msra.mxu1 %v5218_v59  ;;  %v5228_v13 = vld [vmem:[#allocation47_spill] sm:$0xff]  ;;  %v5229_v59 = vld [vmem:[#allocation48_spill] sm:$0xff] }
 0x3ab   : > { %1936 = vmatprep.subr.bf16.mxu0 %v5219_v62  ;;  %1977 = vmatprep.subr.bf16.mxu1 %v5220_v20  ;;  %v5230_v62 = vld [vmem:[#allocation49_spill] sm:$0xff]  ;;  %v5231_v20 = vld [vmem:[#allocation50_spill] sm:$0xff] }
 0x3ae   : > { %1937 = vmatpush1.bf16.msra.mxu0 %v5221_v16  ;;  %1978 = vmatpush1.bf16.msra.mxu1 %v5222_v6  ;;  %v5232_v16 = vld [vmem:[#allocation51_spill] sm:$0xff]  ;;  %v5233_v6 = vld [vmem:[#allocation52_spill] sm:$0xff] }
 0x3af   : > { %1938 = vmatprep.subr.bf16.mxu0 %v5223_v11  ;;  %1979 = vmatprep.subr.bf16.mxu1 %v5224_v58  ;;  %v5234_v11 = vld [vmem:[#allocation53_spill] sm:$0xff]  ;;  %v5235_v58 = vld [vmem:[#allocation54_spill] sm:$0xff] }
 0x3b2   : > { %1939 = vmatpush1.bf16.msra.mxu0 %v5225_v55  ;;  %1980 = vmatpush1.bf16.msra.mxu1 %v5226_v8  ;;  %v5236_v55 = vld [vmem:[#allocation55_spill] sm:$0xff]  ;;  %v5237_v8 = vld [vmem:[#allocation56_spill] sm:$0xff] }
 0x3b3   : > { %1940 = vmatprep.subr.bf16.mxu0 %v5227_v12  ;;  %1981 = vmatprep.subr.bf16.mxu1 %v5228_v13  ;;  %v5238_v12 = vld [vmem:[#allocation57_spill] sm:$0xff]  ;;  %v5239_v13 = vld [vmem:[#allocation58_spill] sm:$0xff] }
 0x3b6   : > { %1941 = vmatpush1.bf16.msra.mxu0 %v5229_v59  ;;  %1982 = vmatpush1.bf16.msra.mxu1 %v5230_v62  ;;  %v5240_v59 = vld [vmem:[#allocation59_spill] sm:$0xff]  ;;  %v5241_v62 = vld [vmem:[#allocation60_spill] sm:$0xff] }
 0x3b7   : > { %1942 = vmatprep.subr.bf16.mxu0 %v5231_v20  ;;  %1983 = vmatprep.subr.bf16.mxu1 %v5232_v16  ;;  %v5242_v20 = vld [vmem:[#allocation61_spill] sm:$0xff]  ;;  %v5243_v16 = vld [vmem:[#allocation62_spill] sm:$0xff] }
 0x3ba   : > { %1943 = vmatpush1.bf16.msra.mxu0 %v5233_v6  ;;  %1984 = vmatpush1.bf16.msra.mxu1 %v5234_v11  ;;  %v5244_v6 = vld [vmem:[#allocation63_spill] sm:$0xff]  ;;  %v5245_v11 = vld [vmem:[#allocation64_spill] sm:$0xff] }
 0x3bb   : > { %1944 = vmatprep.subr.bf16.mxu0 %v5235_v58  ;;  %1985 = vmatprep.subr.bf16.mxu1 %v5236_v55  ;;  %v5246_v58 = vld [vmem:[#allocation65_spill] sm:$0xff]  ;;  %v5247_v55 = vld [vmem:[#allocation66_spill] sm:$0xff] }
 0x3be   : > { %1945 = vmatpush1.bf16.msra.mxu0 %v5237_v8  ;;  %1986 = vmatpush1.bf16.msra.mxu1 %v5238_v12  ;;  %v5248_v8 = vld [vmem:[#allocation67_spill] sm:$0xff]  ;;  %v5249_v12 = vld [vmem:[#allocation68_spill] sm:$0xff] }
 0x3bf   : > { %1946 = vmatprep.subr.bf16.mxu0 %v5239_v13  ;;  %1987 = vmatprep.subr.bf16.mxu1 %v5240_v59  ;;  %v5250_v13 = vld [vmem:[#allocation69_spill] sm:$0xff]  ;;  %v5251_v59 = vld [vmem:[#allocation70_spill] sm:$0xff] }
 0x3c2   : > { %1947 = vmatpush1.bf16.msra.mxu0 %v5241_v62  ;;  %1988 = vmatpush1.bf16.msra.mxu1 %v5242_v20  ;;  %v5252_v62 = vld [vmem:[#allocation71_spill] sm:$0xff]  ;;  %v5253_v20 = vld [vmem:[#allocation72_spill] sm:$0xff] }
 0x3c3   : > { %1948 = vmatprep.subr.bf16.mxu0 %v5243_v16  ;;  %1989 = vmatprep.subr.bf16.mxu1 %v5244_v6  ;;  %v5254_v16 = vld [vmem:[#allocation73_spill] sm:$0xff]  ;;  %v5255_v6 = vld [vmem:[#allocation74_spill] sm:$0xff] }
 0x3c6   : > { %1949 = vmatpush1.bf16.msra.mxu0 %v5245_v11  ;;  %1990 = vmatpush1.bf16.msra.mxu1 %v5246_v58  ;;  %v5256_v11 = vld [vmem:[#allocation75_spill] sm:$0xff] }
 0x3c7   : > { %1950 = vmatprep.subr.bf16.mxu0 %v5247_v55  ;;  %1991 = vmatprep.subr.bf16.mxu1 %v5248_v8 }
 0x3ca   : > { %1951 = vmatpush1.bf16.msra.mxu0 %v5249_v12  ;;  %1992 = vmatpush1.bf16.msra.mxu1 %v5250_v13 }
 0x3cb   : > { %1952 = vmatprep.subr.bf16.mxu0 %v5251_v59  ;;  %1993 = vmatprep.subr.bf16.mxu1 %v5252_v62  ;;  %v2961_v59 = vld [vmem:[%s3791_s24 + $0x48] sm:$0xff] }
 0x3cc   : > { %v1671_v61 = vunpack.c.l.bf16 %v2961_v59  ;;  %v1672_v62 = vunpack.c.h.bf16 %v2961_v59 }
 0x3ce   : > { %1953 = vmatpush1.bf16.msra.mxu0 %v5253_v20  ;;  %1994 = vmatpush1.bf16.msra.mxu1 %v5254_v16 }
 0x3cf   : > { %2004 = vmatprep.subr.bf16.mxu0 %v5255_v6  ;;  %2045 = vmatprep.subr.bf16.mxu1 %v5256_v11 }
 0x424   : > { %v1711_v58 = vpop.f32.mrb[16].mxu0  ;;  %v1752_v55 = vpop.f32.mrb[16].mxu1 }
 0x425   : > { %v1713_v8 = vpop.f32.mrb[17].mxu0  ;;  %v1754_v12 = vpop.f32.mrb[17].mxu1  ;;  %v1753_v20 = vadd.f32 %v1752_v55, %v1671_v61  ;;  %v1712_v19 = vadd.f32 %v1711_v58, %v1669_v18  ;;  %v2962_v58 = vld [vmem:[%s3791_s24 + $0x50] sm:$0xff] }
 0x426   : > { %v1715_v34 = vpop.f32.mrb[18].mxu0  ;;  %v1756_v56 = vpop.f32.mrb[18].mxu1  ;;  %v1755_v16 = vadd.f32 %v1754_v12, %v1672_v62  ;;  %v1714_v7 = vadd.f32 %v1713_v8, %v1670_v5  ;;  %v2963_v5 = vld [vmem:[%s3791_s24 + $0x58] sm:$0xff] }
 0x427   : > { %v1716_v13 = vpop.f32.mrb[19].mxu0  ;;  %v1757_v35 = vpop.f32.mrb[19].mxu1  ;;  %v1843_v6 = vpack.c.bf16 %v1753_v20, %v1753_v20  ;;  %v1841_v49 = vpack.c.bf16 %v1712_v19, %v1712_v19  ;;  %v1673_v19 = vunpack.c.l.bf16 %v2962_v58  ;;  %v1675_v62 = vunpack.c.l.bf16 %v2963_v5 }
 0x428   : > { %v1844_v11 = vpack.c.bf16 %v1755_v16, %v1755_v16  ;;  %v1842_v34 = vpack.c.bf16 %v1714_v7, %v1714_v7 }
 0x429   : > { %v2966_v50 = vmul.bf16 3216621497, %v1843_v6  ;;  %v2964_v13 = vmul.bf16 3216621497, %v1841_v49  ;;  %v1674_v49 = vunpack.c.h.bf16 %v2962_v58 }
 0x42a   : > { %v2967_v56 = vmul.bf16 3216621497, %v1844_v11  ;;  %v2965_v35 = vmul.bf16 3216621497, %v1842_v34 }
 0x42b   : > { %3211 = vpow.bf16 %v2966_v50  ;;  %v1676_v50 = vunpack.c.h.bf16 %v2963_v5 }
 0x42c   : > { %3213 = vpow.bf16 %v2967_v56 }
 0x42d   : > { %3215 = vpow.bf16 %v2964_v13 }
 0x42e   : > { %3217 = vpow.bf16 %v2965_v35 }
 0x436   : > { %v3212_v59 = vpop.eup %3211 }
 0x437   : > { %v3214_v61 = vpop.eup %3213  ;;  %v1871_v33 = vadd.bf16 1065369472, %v3212_v59 }
 0x438   : > { %v3216_v55 = vpop.eup %3215  ;;  %v1872_v18 = vadd.bf16 1065369472, %v3214_v61 }
 0x439   : > { %v3218_v8 = vpop.eup %3217  ;;  %v1857_v12 = vadd.bf16 1065369472, %v3216_v55  ;;  %3219 = vrcp.bf16 %v1871_v33 }
 0x43a   : > { %v1858_v7 = vadd.bf16 1065369472, %v3218_v8  ;;  %3221 = vrcp.bf16 %v1872_v18 }
 0x43b   : > { %3223 = vrcp.bf16 %v1857_v12 }
 0x43c   : > { %3225 = vrcp.bf16 %v1858_v7 }
 0x444   : > { %v3220_v12 = vpop.eup %3219 }
 0x464   : > { %v1793_v20 = vpop.f32.mrb[20].mxu0  ;;  %v1834_v16 = vpop.f32.mrb[20].mxu1 }
 0x465   : > { %v1794_v6 = vadd.f32 %v1793_v20, %v1673_v19  ;;  %v1835_v11 = vadd.f32 %v1834_v16, %v1675_v62  ;;  %v1795_v34 = vpop.f32.mrb[21].mxu0  ;;  %v1836_v56 = vpop.f32.mrb[21].mxu1  ;;  %v1874_v62 = vmul.bf16 1065369472, %v3220_v12 }
 0x466   : > { %v1796_v13 = vadd.f32 %v1795_v34, %v1674_v49  ;;  %v1837_v35 = vadd.f32 %v1836_v56, %v1676_v50  ;;  %v1797_v59 = vpop.f32.mrb[22].mxu0  ;;  %v1838_v61 = vpop.f32.mrb[22].mxu1 }
 0x467   : > { %v1845_v55 = vpack.c.bf16 %v1794_v6, %v1794_v6  ;;  %v1847_v33 = vpack.c.bf16 %v1835_v11, %v1835_v11  ;;  %v1798_v9 = vpop.f32.mrb[23].mxu0  ;;  %v1839_v10 = vpop.f32.mrb[23].mxu1  ;;  %v1893_v16 = vunpack.c.l.bf16 %v1874_v62 }
 0x468   : > { %v1846_v8 = vpack.c.bf16 %v1796_v13, %v1796_v13  ;;  %v1848_v18 = vpack.c.bf16 %v1837_v35, %v1837_v35  ;;  %v3222_v19 = vpop.eup %3221 }
 0x469   : > { %3227 = vtanh.bf16 %v1845_v55  ;;  %v2968_v58 = vmul.bf16 3216621497, %v1847_v33  ;;  %v3224_v7 = vpop.eup %3223  ;;  %v1876_v49 = vmul.bf16 1065369472, %v3222_v19  ;;  %v1895_v59 = vmul.f32 %v1893_v16, %v4426_v46 }
 0x46a   : > { %3229 = vtanh.bf16 %v1846_v8  ;;  %v2969_v5 = vmul.bf16 3216621497, %v1848_v18  ;;  %v3226_v50 = vpop.eup %3225  ;;  %v1860_v20 = vmul.bf16 1065369472, %v3224_v7 }
 0x46b   : > { %3231 = vpow.bf16 %v2968_v58  ;;  %v1862_v11 = vmul.bf16 1065369472, %v3226_v50  ;;  %v1894_v9 = vunpack.c.l.bf16 %v1876_v49 }
 0x46c   : > { %3233 = vpow.bf16 %v2969_v5 }
 0x46d   : > { %v1896_v33 = vmul.f32 %v1894_v9, %v4428_v30 }
 0x474   : > { %v3228_v6 = vpop.eup %3227 }
 0x475   : > { %v3230_v10 = vpop.eup %3229  ;;  %v1897_v34 = vmul.bf16 %v3228_v6, %v1860_v20 }
 0x476   : > { %v3232_v56 = vpop.eup %3231  ;;  %v1898_v13 = vmul.bf16 %v3230_v10, %v1862_v11 }
 0x477   : > { %v3234_v35 = vpop.eup %3233  ;;  %v1899_v61 = vunpack.c.l.bf16 %v1897_v34  ;;  %v1887_v55 = vadd.bf16 1065369472, %v3232_v56 }
 0x478   : > { %v1900_v8 = vunpack.c.l.bf16 %v1898_v13  ;;  %v1888_v18 = vadd.bf16 1065369472, %v3234_v35 }
 0x479   : > { %v4574_v58 = vadd.f32 %v1899_v61, %v1895_v59 }
 0x47a   : > { %v4576_v5 = vadd.f32 %v1900_v8, %v1896_v33  ;;  %3235 = vrcp.bf16 %v1888_v18 }
 0x47b   : > { %v1903_v12 = vpack.c.bf16 %v4574_v58, %v4574_v58  ;;  %3237 = vrcp.bf16 %v1887_v55 }
 0x47c   : > { %v1904_v19 = vpack.c.bf16 %v4576_v5, %v4576_v5 }
 0x47d   : > { %3239 = vtanh.bf16 %v1903_v12 }
 0x47e   : > { %3241 = vtanh.bf16 %v1904_v19 }
 0x485   : > { %v3236_v46 = vpop.eup %3235 }
 0x486   : > { %v3238_v62 = vpop.eup %3237  ;;  %v1892_v30 = vmul.bf16 1065369472, %v3236_v46 }
 0x487   : > { %v1890_v50 = vmul.bf16 1065369472, %v3238_v62  ;;  %v2972_v62 = vld [vmem:[%s3791_s24 + $0x70] sm:$0xff] }
 0x488   : > { %v3240_v7 = vpop.eup %3239 }
 0x489   : > { %v3242_v49 = vpop.eup %3241  ;;  %v4582_v16 = vmul.bf16 %v3240_v7, %v1890_v50  ;;  %v2973_v7 = vld [vmem:[%s3791_s24 + $0x78] sm:$0xff]  ;;  %v1918_v50 = vunpack.c.l.bf16 %v2972_v62 }
 0x48a   : > { %v1908_v20 = vmul.bf16 %v3242_v49, %v1892_v30 }
 0x48c   : > { %1954 = vmatprep.mubr.bf16.mxu0 %v1908_v20  ;;  %1995 = vmatprep.mubr.bf16.mxu1 %v1908_v20 }
 0x48d   : > { %1955 = vmatmul.mubr.bf16.vlgmr.msra.gmra.mrb[24].mxu0 %v4582_v16  ;;  %1996 = vmatmul.mubr.bf16.vlgmr.msra.gmra.mrb[24].mxu1 %v4582_v16 }
 0x48e   : > { %2005 = vmatpush1.bf16.msra.mxu0 %v5080_v42  ;;  %2046 = vmatpush1.bf16.msra.mxu1 %v5081_v27  ;;  %v5257_v42 = vld [vmem:[#allocation97_spill] sm:$0xff]  ;;  %v5258_v27 = vld [vmem:[#allocation98_spill] sm:$0xff] }
 0x48f   : > { %2036 = vmatprep.mubr.bf16.mxu0 %v1908_v20  ;;  %2077 = vmatprep.mubr.bf16.mxu1 %v1908_v20  ;;  %v1920_v20 = vunpack.c.l.bf16 %v2973_v7 }
 0x490   : > { %2006 = vmatprep.subr.bf16.mxu0 %v5082_v1  ;;  %2047 = vmatprep.subr.bf16.mxu1 %v5083_v43  ;;  %v5259_v1 = vld [vmem:[#allocation99_spill] sm:$0xff]  ;;  %v5260_v43 = vld [vmem:[#allocation100_spill] sm:$0xff] }
 0x492   : > { %2007 = vmatpush1.bf16.msra.mxu0 %v5084_v26  ;;  %2048 = vmatpush1.bf16.msra.mxu1 %v5085_v15  ;;  %v5261_v26 = vld [vmem:[#allocation101_spill] sm:$0xff] }
 0x493   : > { %2008 = vmatprep.subr.bf16.mxu0 %v5086_v25  ;;  %2049 = vmatprep.subr.bf16.mxu1 %v5087_v44  ;;  %v5262_v15 = vld [vmem:[#allocation105_spill] sm:$0xff]  ;;  %v5263_v25 = vld [vmem:[#allocation120_spill] sm:$0xff] }
 0x494   : > { %v5264_v44 = vld [vmem:[#allocation121_spill] sm:$0xff] }
 0x496   : > { %2009 = vmatpush1.bf16.msra.mxu0 %v5088_v4  ;;  %2050 = vmatpush1.bf16.msra.mxu1 %v5167_v57  ;;  %v5265_v4 = vld [vmem:[#allocation122_spill] sm:$0xff]  ;;  %v5266_v57 = vld [vmem:[#allocation123_spill] sm:$0xff] }
 0x497   : > { %2010 = vmatprep.subr.bf16.mxu0 %v5168_v0  ;;  %2051 = vmatprep.subr.bf16.mxu1 %v5169_v21  ;;  %v5270_v0 = vld [vmem:[#allocation127_spill] sm:$0xff] }
 0x498   : > { %v5274_v21 = vld [vmem:[#allocation131_spill] sm:$0xff] }
 0x49a   : > { %2011 = vmatpush1.bf16.msra.mxu0 %v5170_v17  ;;  %2052 = vmatpush1.bf16.msra.mxu1 %v5171_v40  ;;  %v5275_v17 = vld [vmem:[#allocation132_spill] sm:$0xff]  ;;  %v5276_v40 = vld [vmem:[#allocation133_spill] sm:$0xff] }
 0x49b   : > { %2012 = vmatprep.subr.bf16.mxu0 %v5172_v39  ;;  %2053 = vmatprep.subr.bf16.mxu1 %v5173_v63  ;;  %v5277_v39 = vld [vmem:[#allocation134_spill] sm:$0xff]  ;;  %v5278_v63 = vld [vmem:[#allocation135_spill] sm:$0xff] }
 0x49e   : > { %2013 = vmatpush1.bf16.msra.mxu0 %v5174_v38  ;;  %2054 = vmatpush1.bf16.msra.mxu1 %v5175_v28  ;;  %v5279_v38 = vld [vmem:[#allocation136_spill] sm:$0xff]  ;;  %v5280_v28 = vld [vmem:[#allocation137_spill] sm:$0xff] }
 0x49f   : > { %2014 = vmatprep.subr.bf16.mxu0 %v5176_v37  ;;  %2055 = vmatprep.subr.bf16.mxu1 %v5177_v45 }
 0x4a2   : > { %2015 = vmatpush1.bf16.msra.mxu0 %v5178_v32  ;;  %2056 = vmatpush1.bf16.msra.mxu1 %v5257_v42  ;;  %v1919_v42 = vunpack.c.h.bf16 %v2972_v62  ;;  %v3278_v62 = vld [vmem:[#allocation9 + $0x14] ss:$8 sps:$4 sm:$0xff] (!%p2981_p9)  }
 0x4a3   : > { %2016 = vmatprep.subr.bf16.mxu0 %v5258_v27  ;;  %2057 = vmatprep.subr.bf16.mxu1 %v5259_v1  ;;  %v1921_v27 = vunpack.c.h.bf16 %v2973_v7  ;;  %v3280_v7 = vld [vmem:[#allocation9 + $0x10] ss:$8 sps:$4 sm:$0xff] (!%p2981_p9)  }
 0x4a6   : > { %2017 = vmatpush1.bf16.msra.mxu0 %v5260_v43  ;;  %2058 = vmatpush1.bf16.msra.mxu1 %v5261_v26 }
 0x4a7   : > { %2018 = vmatprep.subr.bf16.mxu0 %v5184_v48  ;;  %2059 = vmatprep.subr.bf16.mxu1 %v5185_v24  ;;  %v2971_v48 = vld [vmem:[%s3791_s24 + $0x68] sm:$0xff] }
 0x4a8   : > { %v1916_v24 = vunpack.c.l.bf16 %v2971_v48 }
 0x4aa   : > { %2019 = vmatpush1.bf16.msra.mxu0 %v5186_v3  ;;  %2060 = vmatpush1.bf16.msra.mxu1 %v5262_v15  ;;  %v2970_v3 = vld [vmem:[%s3791_s24 + $0x60] sm:$0xff] }
 0x4ab   : > { %2020 = vmatprep.subr.bf16.mxu0 %v5188_v22  ;;  %2061 = vmatprep.subr.bf16.mxu1 %v5189_v53  ;;  %v1914_v22 = vunpack.c.l.bf16 %v2970_v3  ;;  %v1915_v6 = vunpack.c.h.bf16 %v2970_v3 }
 0x4ae   : > { %2021 = vmatpush1.bf16.msra.mxu0 %v5190_v47  ;;  %2062 = vmatpush1.bf16.msra.mxu1 %v5191_v31 }
 0x4af   : > { %2022 = vmatprep.subr.bf16.mxu0 %v5192_v54  ;;  %2063 = vmatprep.subr.bf16.mxu1 %v5193_v29 }
 0x4b2   : > { %2023 = vmatpush1.bf16.msra.mxu0 %v5194_v14  ;;  %2064 = vmatpush1.bf16.msra.mxu1 %v5117_v2  ;;  %v5267_v2 = vld [vmem:[#allocation124_spill] sm:$0xff] }
 0x4b3   : > { %2024 = vmatprep.subr.bf16.mxu0 %v5118_v52  ;;  %2065 = vmatprep.subr.bf16.mxu1 %v5119_v51  ;;  %v5268_v52 = vld [vmem:[#allocation125_spill] sm:$0xff]  ;;  %v5269_v51 = vld [vmem:[#allocation126_spill] sm:$0xff] }
 0x4b6   : > { %2025 = vmatpush1.bf16.msra.mxu0 %v5195_v23  ;;  %2066 = vmatpush1.bf16.msra.mxu1 %v5121_v41  ;;  %v5271_v41 = vld [vmem:[#allocation128_spill] sm:$0xff]  ;;  %v1917_v23 = vunpack.c.h.bf16 %v2971_v48 }
 0x4b7   : > { %2026 = vmatprep.subr.bf16.mxu0 %v5122_v60  ;;  %2067 = vmatprep.subr.bf16.mxu1 %v5123_v36  ;;  %v5272_v60 = vld [vmem:[#allocation129_spill] sm:$0xff]  ;;  %v5273_v36 = vld [vmem:[#allocation130_spill] sm:$0xff] }
 0x4ba   : > { %2027 = vmatpush1.bf16.msra.mxu0 %v5263_v25  ;;  %2068 = vmatpush1.bf16.msra.mxu1 %v5264_v44 }
 0x4bb   : > { %2028 = vmatprep.subr.bf16.mxu0 %v5265_v4  ;;  %2069 = vmatprep.subr.bf16.mxu1 %v5266_v57 }
 0x4be   : > { %2029 = vmatpush1.bf16.msra.mxu0 %v5267_v2  ;;  %2070 = vmatpush1.bf16.msra.mxu1 %v5268_v52 }
 0x4bf   : > { %2030 = vmatprep.subr.bf16.mxu0 %v5269_v51  ;;  %2071 = vmatprep.subr.bf16.mxu1 %v5270_v0 }
 0x4c2   : > { %2031 = vmatpush1.bf16.msra.mxu0 %v5271_v41  ;;  %2072 = vmatpush1.bf16.msra.mxu1 %v5272_v60 }
 0x4c3   : > { %2032 = vmatprep.subr.bf16.mxu0 %v5273_v36  ;;  %2073 = vmatprep.subr.bf16.mxu1 %v5274_v21 }
 0x4c6   : > { %2033 = vmatpush1.bf16.msra.mxu0 %v5275_v17  ;;  %2074 = vmatpush1.bf16.msra.mxu1 %v5276_v40 }
 0x4c7   : > { %2034 = vmatprep.subr.bf16.mxu0 %v5277_v39  ;;  %2075 = vmatprep.subr.bf16.mxu1 %v5278_v63 }
 0x4ca   : > { %2035 = vmatpush1.bf16.msra.mxu0 %v5279_v38  ;;  %2076 = vmatpush1.bf16.msra.mxu1 %v5280_v28 }
 0x4cd   : > { %2037 = vmatmul.mubr.bf16.vlgmr.msra.gmra.mrb[28].mxu0 %v4582_v16  ;;  %2078 = vmatmul.mubr.bf16.vlgmr.msra.gmra.mrb[28].mxu1 %v4582_v16 }
 0x560   : > { %v1956_v37 = vpop.f32.mrb[24].mxu0  ;;  %v1997_v45 = vpop.f32.mrb[24].mxu1 }
 0x561   : > { %v1958_v32 = vpop.f32.mrb[25].mxu0  ;;  %v1999_v47 = vpop.f32.mrb[25].mxu1  ;;  %v1998_v53 = vadd.f32 %v1997_v45, %v1916_v24  ;;  %v1957_v9 = vadd.f32 %v1956_v37, %v1914_v22 }
 0x562   : > { %v1960_v31 = vpop.f32.mrb[26].mxu0  ;;  %v2001_v54 = vpop.f32.mrb[26].mxu1  ;;  %v2000_v11 = vadd.f32 %v1999_v47, %v1917_v23  ;;  %v1959_v34 = vadd.f32 %v1958_v32, %v1915_v6 }
 0x563   : > { %v1961_v29 = vpop.f32.mrb[27].mxu0  ;;  %v2002_v14 = vpop.f32.mrb[27].mxu1  ;;  %v2088_v10 = vpack.c.bf16 %v1998_v53, %v1998_v53  ;;  %v2086_v13 = vpack.c.bf16 %v1957_v9, %v1957_v9 }
 0x564   : > { %v2089_v56 = vpack.c.bf16 %v2000_v11, %v2000_v11  ;;  %v2087_v59 = vpack.c.bf16 %v1959_v34, %v1959_v34 }
 0x565   : > { %v2976_v35 = vmul.bf16 3216621497, %v2088_v10  ;;  %v2974_v55 = vmul.bf16 3216621497, %v2086_v13 }
 0x566   : > { %v2977_v61 = vmul.bf16 3216621497, %v2089_v56  ;;  %v2975_v33 = vmul.bf16 3216621497, %v2087_v59 }
 0x567   : > { %3243 = vpow.bf16 %v2976_v35 }
 0x568   : > { %3245 = vpow.bf16 %v2977_v61 }
 0x569   : > { %3247 = vpow.bf16 %v2974_v55 }
 0x56a   : > { %3249 = vpow.bf16 %v2975_v33 }
 0x572   : > { %v3244_v8 = vpop.eup %3243 }
 0x573   : > { %v3246_v18 = vpop.eup %3245  ;;  %v2116_v12 = vadd.bf16 1065369472, %v3244_v8 }
 0x574   : > { %v3248_v19 = vpop.eup %3247  ;;  %v2117_v46 = vadd.bf16 1065369472, %v3246_v18 }
 0x575   : > { %v3250_v30 = vpop.eup %3249  ;;  %v2102_v49 = vadd.bf16 1065369472, %v3248_v19  ;;  %3251 = vrcp.bf16 %v2116_v12  ;;  %v3275_v19 = vld [vmem:[#allocation9 + $0x4] ss:$8 sps:$4 sm:$0xff] (!%p2981_p9)  }
 0x576   : > { %v2103_v16 = vadd.bf16 1065369472, %v3250_v30  ;;  %3253 = vrcp.bf16 %v2117_v46  ;;  %v3277_v46 = vld [vmem:[#allocation9] ss:$8 sps:$4 sm:$0xff] (!%p2981_p9)   ;;  %2371 = vmatprep.subr.bf16.mxu0 (!%p2981_p9), %v3275_v19  ;;  %v3281_v30 = vld [vmem:[#allocation9 + $0x24] ss:$8 sps:$4 sm:$0xff] (!%p2981_p9)  }
 0x577   : > { %3255 = vrcp.bf16 %v2102_v49  ;;  %2372 = vmatpush1.bf16.msra.mxu0 (!%p2981_p9), %v3277_v46  ;;  %v3283_v49 = vld [vmem:[#allocation9 + $0x20] ss:$8 sps:$4 sm:$0xff] (!%p2981_p9)   ;;  %v3370_v19 = vld [vmem:[#allocation10 + $0xf0] ss:$8 sps:$4 sm:$0xff] (!%p2981_p9)   ;;  %v2201_v46 = vlaneseq (!%p2981_p9) }
 0x578   : > { %3257 = vrcp.bf16 %v2103_v16  ;;  %2373 = vmatprep.subr.bf16.mxu0 (!%p2981_p9), %v3278_v62  ;;  %v3287_v16 = vld [vmem:[#allocation9 + $0x44] ss:$8 sps:$4 sm:$0xff] (!%p2981_p9)  }
 0x57b   : > { %2374 = vmatpush1.bf16.msra.mxu0 (!%p2981_p9), %v3280_v7  ;;  %v2199_v7 = vld [vmem:[%s4694_s3] sm:$0x3] (!%p2981_p9) }
 0x57c   : > { %2375 = vmatprep.subr.bf16.mxu0 (!%p2981_p9), %v3281_v30 }
 0x57f   : > { %2376 = vmatpush1.bf16.msra.mxu0 (!%p2981_p9), %v3283_v49 }
 0x580   : > { %v3252_v39 = vpop.eup %3251 }
 0x581   : > { %v3254_v63 = vpop.eup %3253  ;;  %v2119_v38 = vmul.bf16 1065369472, %v3252_v39  ;;  %v3305_v39 = vld [vmem:[#allocation9 + $0xa4] ss:$8 sps:$4 sm:$0xff] (!%p2981_p9)  }
 0x582   : > { %v3256_v28 = vpop.eup %3255  ;;  %v2121_v37 = vmul.bf16 1065369472, %v3254_v63  ;;  %v3337_v63 = vld [vmem:[#allocation10 + $0x40] ss:$8 sps:$4 sm:$0xff] (!%p2981_p9)  }
 0x583   : > { %v3258_v45 = vpop.eup %3257  ;;  %v2105_v32 = vmul.bf16 1065369472, %v3256_v28  ;;  %v2138_v47 = vunpack.c.l.bf16 %v2119_v38  ;;  %v3338_v38 = vld [vmem:[#allocation10 + $0x54] ss:$8 sps:$4 sm:$0xff] (!%p2981_p9)   ;;  %v3307_v28 = vld [vmem:[#allocation9 + $0xa0] ss:$8 sps:$4 sm:$0xff] (!%p2981_p9)  }
 0x584   : > { %v2107_v54 = vmul.bf16 1065369472, %v3258_v45  ;;  %v2139_v29 = vunpack.c.l.bf16 %v2121_v37  ;;  %v3308_v37 = vld [vmem:[#allocation9 + $0xb4] ss:$8 sps:$4 sm:$0xff] (!%p2981_p9)   ;;  %v3340_v45 = vld [vmem:[#allocation10 + $0x50] ss:$8 sps:$4 sm:$0xff] (!%p2981_p9)  }
 0x585   : > { %v2140_v22 = vmul.f32 %v2138_v47, %v4574_v58  ;;  %v3310_v47 = vld [vmem:[#allocation9 + $0xb0] ss:$8 sps:$4 sm:$0xff] (!%p2981_p9)  }
 0x586   : > { %v2141_v11 = vmul.f32 %v2139_v29, %v4576_v5  ;;  %v3344_v29 = vld [vmem:[#allocation10 + $0x74] ss:$8 sps:$4 sm:$0xff] (!%p2981_p9)  }
 0x5a0   : > { %v2038_v1 = vpop.f32.mrb[28].mxu0  ;;  %v2079_v43 = vpop.f32.mrb[28].mxu1 }
 0x5a1   : > { %v2039_v26 = vadd.f32 %v2038_v1, %v1918_v50  ;;  %v2080_v15 = vadd.f32 %v2079_v43, %v1920_v20  ;;  %v2040_v25 = vpop.f32.mrb[29].mxu0  ;;  %v2081_v44 = vpop.f32.mrb[29].mxu1  ;;  %v3284_v50 = vld [vmem:[#allocation9 + $0x34] ss:$8 sps:$4 sm:$0xff] (!%p2981_p9)   ;;  %v3286_v20 = vld [vmem:[#allocation9 + $0x30] ss:$8 sps:$4 sm:$0xff] (!%p2981_p9)  }
 0x5a2   : > { %v2041_v4 = vadd.f32 %v2040_v25, %v1919_v42  ;;  %v2082_v57 = vadd.f32 %v2081_v44, %v1921_v27  ;;  %v2042_v2 = vpop.f32.mrb[30].mxu0  ;;  %v2083_v52 = vpop.f32.mrb[30].mxu1  ;;  %2377 = vmatprep.subr.bf16.mxu0 (!%p2981_p9), %v3284_v50  ;;  %v3289_v42 = vld [vmem:[#allocation9 + $0x40] ss:$8 sps:$4 sm:$0xff] (!%p2981_p9)   ;;  %v3290_v27 = vld [vmem:[#allocation9 + $0x54] ss:$8 sps:$4 sm:$0xff] (!%p2981_p9)  }
 0x5a3   : > { %v2090_v51 = vpack.c.bf16 %v2039_v26, %v2039_v26  ;;  %v2092_v0 = vpack.c.bf16 %v2080_v15, %v2080_v15  ;;  %v2043_v41 = vpop.f32.mrb[31].mxu0  ;;  %v2084_v60 = vpop.f32.mrb[31].mxu1  ;;  %2378 = vmatpush1.bf16.msra.mxu0 (!%p2981_p9), %v3286_v20  ;;  %v3292_v1 = vld [vmem:[#allocation9 + $0x50] ss:$8 sps:$4 sm:$0xff] (!%p2981_p9)   ;;  %v3293_v43 = vld [vmem:[#allocation9 + $0x64] ss:$8 sps:$4 sm:$0xff] (!%p2981_p9)  }
 0x5a4   : > { %v2091_v36 = vpack.c.bf16 %v2041_v4, %v2041_v4  ;;  %v2093_v21 = vpack.c.bf16 %v2082_v57, %v2082_v57  ;;  %2379 = vmatprep.subr.bf16.mxu0 (!%p2981_p9), %v3287_v16  ;;  %v3323_v26 = vld [vmem:[#allocation10 + $0x4] ss:$8 sps:$4 sm:$0xff] (!%p2981_p9)   ;;  %v3325_v15 = vld [vmem:[#allocation10] ss:$8 sps:$4 sm:$0xff] (!%p2981_p9)   ;;  %v3326_v44 = vld [vmem:[#allocation10 + $0x14] ss:$8 sps:$4 sm:$0xff] (!%p2981_p9)  }
 0x5a5   : > { %3259 = vtanh.bf16 %v2090_v51  ;;  %v2978_v17 = vmul.bf16 3216621497, %v2092_v0  ;;  %v3295_v25 = vld [vmem:[#allocation9 + $0x60] ss:$8 sps:$4 sm:$0xff] (!%p2981_p9)   ;;  %v3296_v4 = vld [vmem:[#allocation9 + $0x74] ss:$8 sps:$4 sm:$0xff] (!%p2981_p9)   ;;  %2620 = vmatprep.subr.bf16.mxu1 (!%p2981_p9), %v3323_v26 }
 0x5a6   : > { %3261 = vtanh.bf16 %v2091_v36  ;;  %v2979_v40 = vmul.bf16 3216621497, %v2093_v21  ;;  %2621 = vmatpush1.bf16.msra.mxu1 (!%p2981_p9), %v3325_v15  ;;  %v3328_v57 = vld [vmem:[#allocation10 + $0x10] ss:$8 sps:$4 sm:$0xff] (!%p2981_p9)   ;;  %v3329_v2 = vld [vmem:[#allocation10 + $0x24] ss:$8 sps:$4 sm:$0xff] (!%p2981_p9)  }
 0x5a7   : > { %3263 = vpow.bf16 %v2978_v17  ;;  %2380 = vmatpush1.bf16.msra.mxu0 (!%p2981_p9), %v3289_v42  ;;  %2622 = vmatprep.subr.bf16.mxu1 (!%p2981_p9), %v3326_v44  ;;  %v3298_v52 = vld [vmem:[#allocation9 + $0x70] ss:$8 sps:$4 sm:$0xff] (!%p2981_p9)   ;;  %v3299_v51 = vld [vmem:[#allocation9 + $0x84] ss:$8 sps:$4 sm:$0xff] (!%p2981_p9)   ;;  %v3331_v0 = vld [vmem:[#allocation10 + $0x20] ss:$8 sps:$4 sm:$0xff] (!%p2981_p9)  }
 0x5a8   : > { %3265 = vpow.bf16 %v2979_v40  ;;  %2381 = vmatprep.subr.bf16.mxu0 (!%p2981_p9), %v3290_v27  ;;  %v3332_v41 = vld [vmem:[#allocation10 + $0x34] ss:$8 sps:$4 sm:$0xff] (!%p2981_p9)   ;;  %v3301_v60 = vld [vmem:[#allocation9 + $0x80] ss:$8 sps:$4 sm:$0xff] (!%p2981_p9)   ;;  %v3334_v21 = vld [vmem:[#allocation10 + $0x30] ss:$8 sps:$4 sm:$0xff] (!%p2981_p9)  }
 0x5a9   : > { %v3302_v36 = vld [vmem:[#allocation9 + $0x94] ss:$8 sps:$4 sm:$0xff] (!%p2981_p9)   ;;  %v3335_v17 = vld [vmem:[#allocation10 + $0x44] ss:$8 sps:$4 sm:$0xff] (!%p2981_p9)   ;;  %v3304_v40 = vld [vmem:[#allocation9 + $0x90] ss:$8 sps:$4 sm:$0xff] (!%p2981_p9)  }
 0x5aa   : > { %2623 = vmatpush1.bf16.msra.mxu1 (!%p2981_p9), %v3328_v57 }
 0x5ab   : > { %2382 = vmatpush1.bf16.msra.mxu0 (!%p2981_p9), %v3292_v1  ;;  %2624 = vmatprep.subr.bf16.mxu1 (!%p2981_p9), %v3329_v2 }
 0x5ac   : > { %2383 = vmatprep.subr.bf16.mxu0 (!%p2981_p9), %v3293_v43 }
 0x5ae   : > { %2625 = vmatpush1.bf16.msra.mxu1 (!%p2981_p9), %v3331_v0 }
 0x5af   : > { %2384 = vmatpush1.bf16.msra.mxu0 (!%p2981_p9), %v3295_v25  ;;  %2626 = vmatprep.subr.bf16.mxu1 (!%p2981_p9), %v3332_v41 }
 0x5b0   : > { %v3260_v31 = vpop.eup %3259  ;;  %2385 = vmatprep.subr.bf16.mxu0 (!%p2981_p9), %v3296_v4  ;;  %v2448_v4 = vld [vmem:[%s4696_s5] sm:$0x3] (!%p2981_p9) }
 0x5b1   : > { %v3262_v14 = vpop.eup %3261  ;;  %v2142_v48 = vmul.bf16 %v3260_v31, %v2105_v32  ;;  %v3341_v32 = vld [vmem:[#allocation10 + $0x64] ss:$8 sps:$4 sm:$0xff] (!%p2981_p9)  }
 0x5b2   : > { %v3264_v24 = vpop.eup %3263  ;;  %v2143_v3 = vmul.bf16 %v3262_v14, %v2107_v54  ;;  %2627 = vmatpush1.bf16.msra.mxu1 (!%p2981_p9), %v3334_v21  ;;  %v3311_v31 = vld [vmem:[#allocation9 + $0xc4] ss:$8 sps:$4 sm:$0xff] (!%p2981_p9)   ;;  %v3343_v54 = vld [vmem:[#allocation10 + $0x60] ss:$8 sps:$4 sm:$0xff] (!%p2981_p9)  }
 0x5b3   : > { %v3266_v23 = vpop.eup %3265  ;;  %v2144_v53 = vunpack.c.l.bf16 %v2142_v48  ;;  %v2132_v6 = vadd.bf16 1065369472, %v3264_v24  ;;  %2386 = vmatpush1.bf16.msra.mxu0 (!%p2981_p9), %v3298_v52  ;;  %2628 = vmatprep.subr.bf16.mxu1 (!%p2981_p9), %v3335_v17  ;;  %v3313_v14 = vld [vmem:[#allocation9 + $0xc0] ss:$8 sps:$4 sm:$0xff] (!%p2981_p9)   ;;  %v3314_v48 = vld [vmem:[#allocation9 + $0xd4] ss:$8 sps:$4 sm:$0xff] (!%p2981_p9)  }
 0x5b4   : > { %v2145_v9 = vunpack.c.l.bf16 %v2143_v3  ;;  %v2133_v10 = vadd.bf16 1065369472, %v3266_v23  ;;  %2387 = vmatprep.subr.bf16.mxu0 (!%p2981_p9), %v3299_v51  ;;  %v3346_v24 = vld [vmem:[#allocation10 + $0x70] ss:$8 sps:$4 sm:$0xff] (!%p2981_p9)   ;;  %v3347_v3 = vld [vmem:[#allocation10 + $0x84] ss:$8 sps:$4 sm:$0xff] (!%p2981_p9)  }
 0x5b5   : > { %v2146_v34 = vadd.f32 %v2144_v53, %v2140_v22  ;;  %3267 = vrcp.bf16 %v2132_v6  ;;  %v3316_v23 = vld [vmem:[#allocation9 + $0xd0] ss:$8 sps:$4 sm:$0xff] (!%p2981_p9)   ;;  %v3317_v22 = vld [vmem:[#allocation9 + $0xe4] ss:$8 sps:$4 sm:$0xff] (!%p2981_p9)   ;;  %v3349_v53 = vld [vmem:[#allocation10 + $0x80] ss:$8 sps:$4 sm:$0xff] (!%p2981_p9)  }
 0x5b6   : > { %v2147_v56 = vadd.f32 %v2145_v9, %v2141_v11  ;;  %3269 = vrcp.bf16 %v2133_v10  ;;  %2629 = vmatpush1.bf16.msra.mxu1 (!%p2981_p9), %v3337_v63  ;;  %v3350_v6 = vld [vmem:[#allocation10 + $0x94] ss:$8 sps:$4 sm:$0xff] (!%p2981_p9)   ;;  %v3319_v11 = vld [vmem:[#allocation9 + $0xe0] ss:$8 sps:$4 sm:$0xff] (!%p2981_p9)   ;;  %v3352_v10 = vld [vmem:[#allocation10 + $0x90] ss:$8 sps:$4 sm:$0xff] (!%p2981_p9)  }
 0x5b7   : > { %v2148_v13 = vpack.c.bf16 %v2146_v34, %v2146_v34  ;;  %2161 = vst [vmem:[#allocation3] sm:$0xff] %v2146_v34  ;;  %2388 = vmatpush1.bf16.msra.mxu0 (!%p2981_p9), %v3301_v60  ;;  %2630 = vmatprep.subr.bf16.mxu1 (!%p2981_p9), %v3338_v38  ;;  %v3320_v9 = vld [vmem:[#allocation9 + $0xf4] ss:$8 sps:$4 sm:$0xff] (!%p2981_p9)   ;;  %v3353_v34 = vld [vmem:[#allocation10 + $0xa4] ss:$8 sps:$4 sm:$0xff] (!%p2981_p9)  }
 0x5b8   : > { %v2149_v35 = vpack.c.bf16 %v2147_v56, %v2147_v56  ;;  %2162 = vst [vmem:[#allocation3 + $0x8] sm:$0xff] %v2147_v56  ;;  %2389 = vmatprep.subr.bf16.mxu0 (!%p2981_p9), %v3302_v36  ;;  %v3322_v56 = vld [vmem:[#allocation9 + $0xf0] ss:$8 sps:$4 sm:$0xff] (!%p2981_p9)   ;;  %v2663_v52 = vld [vmem:[%s4697_s6] sm:$0x3] (!%p2981_p9) }
 0x5b9   : > { %3271 = vtanh.bf16 %v2148_v13  ;;  %v3355_v13 = vld [vmem:[#allocation10 + $0xa0] ss:$8 sps:$4 sm:$0xff] (!%p2981_p9)  }
 0x5ba   : > { %3273 = vtanh.bf16 %v2149_v35  ;;  %2631 = vmatpush1.bf16.msra.mxu1 (!%p2981_p9), %v3340_v45  ;;  %v3356_v35 = vld [vmem:[#allocation10 + $0xb4] ss:$8 sps:$4 sm:$0xff] (!%p2981_p9)  }
 0x5bb   : > { %2390 = vmatpush1.bf16.msra.mxu0 (!%p2981_p9), %v3304_v40  ;;  %2632 = vmatprep.subr.bf16.mxu1 (!%p2981_p9), %v3341_v32  ;;  %v3046_v45 = vld [vmem:[#allocation4] ss:$0 sm:$0xff] (!%p2981_p9) }
 0x5bc   : > { %2391 = vmatprep.subr.bf16.mxu0 (!%p2981_p9), %v3305_v39 }
 0x5be   : > { %2633 = vmatpush1.bf16.msra.mxu1 (!%p2981_p9), %v3343_v54 }
 0x5bf   : > { %2392 = vmatpush1.bf16.msra.mxu0 (!%p2981_p9), %v3307_v28  ;;  %2634 = vmatprep.subr.bf16.mxu1 (!%p2981_p9), %v3344_v29 }
 0x5c0   : > { %v3268_v59 = vpop.eup %3267  ;;  %2393 = vmatprep.subr.bf16.mxu0 (!%p2981_p9), %v3308_v37 }
 0x5c1   : > { %v3270_v61 = vpop.eup %3269  ;;  %v2135_v55 = vmul.bf16 1065369472, %v3268_v59  ;;  %v3358_v59 = vld [vmem:[#allocation10 + $0xb0] ss:$8 sps:$4 sm:$0xff] (!%p2981_p9)  }
 0x5c2   : > { %v2137_v33 = vmul.bf16 1065369472, %v3270_v61  ;;  %2635 = vmatpush1.bf16.msra.mxu1 (!%p2981_p9), %v3346_v24  ;;  %v3359_v61 = vld [vmem:[#allocation10 + $0xc4] ss:$8 sps:$4 sm:$0xff] (!%p2981_p9)  }
 0x5c3   : > { %2394 = vmatpush1.bf16.msra.mxu0 (!%p2981_p9), %v3310_v47  ;;  %2636 = vmatprep.subr.bf16.mxu1 (!%p2981_p9), %v3347_v3 }
 0x5c4   : > { %v3272_v58 = vpop.eup %3271  ;;  %2166 = sbr.rel (%p2981_p9) target bundleno = 2106 (0x83a), region = 76  ;;  %2395 = vmatprep.subr.bf16.mxu0 (!%p2981_p9), %v3311_v31 }
 0x5c5   : > { %v3274_v8 = vpop.eup %3273  ;;  %v4656_v18 = vmul.bf16 %v3272_v58, %v2135_v55  ;;  %v3361_v55 = vld [vmem:[#allocation10 + $0xc0] ss:$8 sps:$4 sm:$0xff] (!%p2981_p9)   ;;  %v3362_v58 = vld [vmem:[#allocation10 + $0xd4] ss:$8 sps:$4 sm:$0xff] (!%p2981_p9)  }
 0x5c6   : > { %v2153_v5 = vmul.bf16 %v3274_v8, %v2137_v33  ;;  %2637 = vmatpush1.bf16.msra.mxu1 (!%p2981_p9), %v3349_v53  ;;  %v3364_v33 = vld [vmem:[#allocation10 + $0xd0] ss:$8 sps:$4 sm:$0xff] (!%p2981_p9)   ;;  %v3365_v8 = vld [vmem:[#allocation10 + $0xe4] ss:$8 sps:$4 sm:$0xff] (!%p2981_p9)  }
 0x5c7   : > { %2396 = vmatpush1.bf16.msra.mxu0 (!%p2981_p9), %v3313_v14  ;;  %2638 = vmatprep.subr.bf16.mxu1 (!%p2981_p9), %v3350_v6 }
 0x5c8   : > { %v2980_v12 = vcombine.low %v4656_v18, %v2153_v5  ;;  %2403 = vmatprep.mubr.bf16.mxu0 (!%p2981_p9), %v2153_v5  ;;  %2397 = vmatprep.subr.bf16.mxu0 (!%p2981_p9), %v3314_v48  ;;  %v3367_v5 = vld [vmem:[#allocation10 + $0xe0] ss:$8 sps:$4 sm:$0xff] (!%p2981_p9)  }
 0x5ca   : > { %2160 = vst [vmem:[#allocation2] sm:$0xff] %v2980_v12  ;;  %2639 = vmatpush1.bf16.msra.mxu1 (!%p2981_p9), %v3352_v10  ;;  %v3368_v12 = vld [vmem:[#allocation10 + $0xf4] ss:$8 sps:$4 sm:$0xff] (!%p2981_p9)  }
 0x5cb   : > { %2398 = vmatpush1.bf16.msra.mxu0 %v3316_v23  ;;  %2640 = vmatprep.subr.bf16.mxu1 %v3353_v34 }
 0x5cc   : > { %2399 = vmatprep.subr.bf16.mxu0 %v3317_v22 }
 0x5ce   : > { %2641 = vmatpush1.bf16.msra.mxu1 %v3355_v13 }
 0x5cf   : > { %2400 = vmatpush1.bf16.msra.mxu0 %v3319_v11  ;;  %2642 = vmatprep.subr.bf16.mxu1 %v3356_v35 }
 0x5d0   : > { %2401 = vmatprep.subr.bf16.mxu0 %v3320_v9 }
 0x5d2   : > { %2643 = vmatpush1.bf16.msra.mxu1 %v3358_v59 }
 0x5d3   : > { %2402 = vmatpush1.bf16.msra.mxu0 %v3322_v56  ;;  %2644 = vmatprep.subr.bf16.mxu1 %v3359_v61 }
 0x5d6   : > { %2404 = vmatmul.mubr.bf16.vlgmr.msra.gmra.mrb[0].mxu0 %v4656_v18  ;;  %2645 = vmatpush1.bf16.msra.mxu1 %v3361_v55  ;;  %v2202_v18 = vshrl.u32 %v2201_v46, 7 }
 0x5d7   : > { %2646 = vmatprep.subr.bf16.mxu1 %v3362_v58 }
 0x5d8   : > { %v2203_v62 = vsub.s32 0, %v2202_v18  ;;  %v2207_v30 = vsub.s32 1, %v2202_v18 }
 0x5da   : > { %2647 = vmatpush1.bf16.msra.mxu1 %v3364_v33  ;;  %v2204_v49 = vrot.slane %v2199_v7, %v2203_v62  ;;  %v2208_v50 = vrot.slane %v2199_v7, %v2207_v30  ;;  %v2453_v57 = vrot.slane %v2448_v4, %v2203_v62  ;;  %v2457_v2 = vrot.slane %v2448_v4, %v2207_v30 }
 0x5db   : > { %2648 = vmatprep.subr.bf16.mxu1 %v3365_v8  ;;  %v2668_v60 = vrot.slane %v2663_v52, %v2203_v62  ;;  %v2672_v17 = vrot.slane %v2663_v52, %v2207_v30 }
 0x5de   : > { %2649 = vmatpush1.bf16.msra.mxu1 %v3367_v5 }
 0x5df   : > { %2650 = vmatprep.subr.bf16.mxu1 %v3368_v12 }
 0x5e2   : > { %2651 = vmatpush1.bf16.msra.mxu1 %v3370_v19 }
 0x6a9   : > { %v2405_v20 = vpop.f32.mrb[0].mxu0 }
 0x6aa   : > { %v2406_v16 = vadd.f32 %v2405_v20, %v2204_v49  ;;  %v2407_v42 = vpop.f32.mrb[1].mxu0 }
 0x6ab   : > { %v2408_v27 = vadd.f32 %v2407_v42, %v2208_v50  ;;  %v2409_v1 = vpop.f32.mrb[2].mxu0 }
 0x6ac   : > { %v2412_v43 = vmax.f32 %v2406_v16, 0.0  ;;  %v2410_v26 = vpop.f32.mrb[3].mxu0 }
 0x6ad   : > { %v2413_v15 = vmax.f32 %v2408_v27, 0.0 }
 0x6ae   : > { %v2414_v44 = vpack.c.bf16 %v2412_v43, %v2412_v43 }
 0x6af   : > { %v2415_v25 = vpack.c.bf16 %v2413_v15, %v2413_v15 }
 0x6b1   : > { %2652 = vmatprep.mubr.bf16.mxu1 %v2415_v25 }
 0x6b2   : > { %2653 = vmatmul.mubr.bf16.vlgmr.msra.gmra.mrb[0].mxu1 %v2414_v44 }
 0x785   : > { %v2654_v51 = vpop.f32.mrb[0].mxu1 }
 0x786   : > { %v2655_v0 = vadd.f32 %v2654_v51, %v2453_v57  ;;  %v2656_v41 = vpop.f32.mrb[1].mxu1 }
 0x787   : > { %v2657_v36 = vadd.f32 %v2656_v41, %v2457_v2  ;;  %v2658_v21 = vpop.f32.mrb[2].mxu1 }
 0x788   : > { %v2661_v40 = vmax.f32 %v2655_v0, 0.0  ;;  %v2659_v39 = vpop.f32.mrb[3].mxu1 }
 0x789   : > { %v2662_v63 = vmax.f32 %v2657_v36, 0.0 }
 0x78a   : > { %v2675_v38 = vmul.f32 %v2668_v60, %v2661_v40 }
 0x78b   : > { %v2676_v28 = vmul.f32 %v2672_v17, %v2662_v63 }
 0x78d   : > { %v2677_v37 = vadd.f32 %v2676_v28, %v2675_v38 }
 0x78f   : > { %2678 = vadd.xlane.f32.xlu0 %v2677_v37 }
 0x81c   : > { %v2679_v32 = vpop.xlane.xlu0 %2678 }
 0x81d   : > { %v2687_v47 = vadd.f32 %v3046_v45, %v2679_v32 }
 0x81f   : > { %v3047_v31 = vmul.f32 -1.442695, %v2687_v47 }
 0x821   : > { %3371 = vpow2.f32 %v3047_v31 }
 0x82b   : > { %v3372_v54 = vpop.eup %3371 }
 0x82c   : > { %v2691_v29 = vadd.f32 1.0, %v3372_v54 }
 0x82e   : > { %3373 = vrcp.f32 %v2691_v29 }
 0x838   : > { %v3374_v14 = vpop.eup %3373 }
 0x839   : > { %2695 = vst.msk [vmem:[%s4699_s8] sm:$0xff] %vm2694_vm0, %v3374_v14 }
 0x83a PF: > { %s25_s12 = sadd.s32 1, %s3547_s12   ;;  %s5281_s29 = smov %s3531_s30 }
 0x83b   : > { %p22_p1 = scmp.ge.s32.totalorder %s25_s12, 4   ;;  %s5282_s30 = smov %s3535_s9 }
 0x83c   : > { %s5283_s9 = smov %s3744_s27  ;;  %s5284_s10 = smov %s3543_s11 }
 0x83d   : > { %s5285_s11 = smov %s5287_s1  ;;  %24 = sbr.rel (!%p22_p1) target bundleno = 9 (0x9), region = 115 }
 0x844   :  { %2715 = vsyncpa [#allocation6], 1 }
 0x845   :  { %2717 = vsyncpa [#allocation6 + $0x1], 1 }
 0x846   :  { %2718 = vsyncpa [#allocation8], 1 }
 0x847   :  { %2719 = vsyncpa [#allocation11], 1 }

</bundles_post_ra>
